<compile_context>
chip_gen: v5e
topology: v5e:2x2
jax: 0.10.0
libtpu: 0.0.40
codegen_flags: <defaults>
</compile_context>

<pallas_src>
import jax
import jax.numpy as jnp
from jax.experimental import pallas as pl
from jax.experimental.pallas import tpu as pltpu

# Small shapes consistent with the module (Conv3d expects 64 input channels).
N, C_IN, D, H, W = 2, 64, 9, 17, 17
C_CONV = 96          # conv branch output channels
KVOL = 27            # 3*3*3 taps
EPS = 1e-3           # BatchNorm3d eps


def _mixed3a_kernel(cols_ref, cmax_ref, w_ref, s_ref, t_ref, out_ref):
    """One row-block of the fused Mixed3a forward.

    cols_ref : (BS, 27*C)  bf16   im2col patches (tap-major, channel-minor)
    cmax_ref : (27, BS, C) f32    same taps, tap-leading (for exact maxpool)
    w_ref    : (27*C, 96)  bf16   conv weight as a single im2col matrix
    s_ref    : (1, 96)     f32    folded BN scale
    t_ref    : (1, 96)     f32    folded BN bias
    out_ref  : (BS, C+96)  f32    concat(maxpool, conv) output rows
    """
    num_taps = cmax_ref.shape[0]

    # ---- maxpool branch: exact f32 running max over the 27 taps ----
    m = cmax_ref[0]
    for k in range(1, num_taps):
        m = jnp.maximum(m, cmax_ref[k])

    # ---- conv branch: single large-K bf16 matmul, f32 accumulate, BN, ReLU ----
    conv = jnp.dot(cols_ref[...], w_ref[...], preferred_element_type=jnp.float32)
    conv = jnp.maximum(conv * s_ref[...] + t_ref[...], 0.0)

    # ---- channel concat (maxpool first, matching torch.cat((x0, x1), 1)) ----
    out_ref[...] = jnp.concatenate([m, conv], axis=-1)


def _extract_taps(x_ndhwc, do, ho, wo):
    """Strided 3x3x3 window taps -> (27, N, Do, Ho, Wo, C)."""
    taps = []
    for kd in range(3):
        for kh in range(3):
            for kw in range(3):
                taps.append(x_ndhwc[:, kd:kd + 2 * do:2,
                                    kh:kh + 2 * ho:2,
                                    kw:kw + 2 * wo:2, :])
    return jnp.stack(taps, axis=0)


@jax.jit
def mixed3a(x_ncdhw, p):
    n, c, d, h, w = x_ncdhw.shape
    do, ho, wo = (d - 3) // 2 + 1, (h - 3) // 2 + 1, (w - 3) // 2 + 1
    s_rows = n * do * ho * wo
    c_out = c + C_CONV

    x_ndhwc = jnp.transpose(x_ncdhw, (0, 2, 3, 4, 1))
    taps = _extract_taps(x_ndhwc, do, ho, wo)                 # (27,N,Do,Ho,Wo,C)

    cols_max = taps.reshape(KVOL, s_rows, c)                  # f32, tap-leading
    cols_mm = jnp.transpose(taps, (1, 2, 3, 4, 0, 5)
                            ).reshape(s_rows, KVOL * c).astype(jnp.bfloat16)

    # Conv3d weight (O, I, kd, kh, kw) -> im2col matrix (kd,kh,kw,I) x O, bf16.
    w_mat = jnp.transpose(p['w_conv'], (2, 3, 4, 1, 0)
                          ).reshape(KVOL * c, C_CONV).astype(jnp.bfloat16)

    # Fold eval-mode BN into per-channel scale/bias (f32).
    bn_s = p['gamma'] / jnp.sqrt(p['var'] + EPS)
    bn_t = p['beta'] - p['mean'] * bn_s
    bn_s = bn_s[None, :]
    bn_t = bn_t[None, :]

    block_s = 128 if s_rows % 128 == 0 else s_rows
    grid = (s_rows // block_s,)

    out_flat = pl.pallas_call(
        _mixed3a_kernel,
        out_shape=jax.ShapeDtypeStruct((s_rows, c_out), jnp.float32),
        grid=grid,
        in_specs=[
            pl.BlockSpec((block_s, KVOL * c), lambda i: (i, 0)),
            pl.BlockSpec((KVOL, block_s, c), lambda i: (0, i, 0)),
            pl.BlockSpec((KVOL * c, C_CONV), lambda i: (0, 0)),
            pl.BlockSpec((1, C_CONV), lambda i: (0, 0)),
            pl.BlockSpec((1, C_CONV), lambda i: (0, 0)),
        ],
        out_specs=pl.BlockSpec((block_s, c_out), lambda i: (i, 0)),
        compiler_params=pltpu.CompilerParams(
            dimension_semantics=("parallel",)),
    )(cols_mm, cols_max, w_mat, bn_s, bn_t)

    out = out_flat.reshape(n, do, ho, wo, c_out)
    return jnp.transpose(out, (0, 4, 1, 2, 3))                # back to NCDHW


def make_params(key):
    k1, k2, k3, k4, k5 = jax.random.split(key, 5)
    fan_in = C_IN * KVOL
    return {
        'w_conv': jax.random.normal(k1, (C_CONV, C_IN, 3, 3, 3), jnp.float32)
                  * fan_in ** -0.5,
        'gamma': 1.0 + 0.1 * jax.random.normal(k2, (C_CONV,), jnp.float32),
        'beta': 0.1 * jax.random.normal(k3, (C_CONV,), jnp.float32),
        'mean': 0.1 * jax.random.normal(k4, (C_CONV,), jnp.float32),
        'var': 1.0 + 0.1 * jax.random.uniform(k5, (C_CONV,), jnp.float32),
    }


def reference_forward(x_ncdhw, p):
    """Pure-JAX (f32) reference mirroring the PyTorch module in eval mode."""
    x0 = jax.lax.reduce_window(x_ncdhw, -jnp.inf, jax.lax.max,
                               window_dimensions=(1, 1, 3, 3, 3),
                               window_strides=(1, 1, 2, 2, 2),
                               padding='VALID')
    x1 = jax.lax.conv_general_dilated(
        x_ncdhw, p['w_conv'], window_strides=(2, 2, 2), padding='VALID',
        dimension_numbers=('NCDHW', 'OIDHW', 'NCDHW'),
        precision=jax.lax.Precision.HIGHEST)
    s = p['gamma'] / jnp.sqrt(p['var'] + EPS)
    t = p['beta'] - p['mean'] * s
    x1 = jnp.maximum(x1 * s[None, :, None, None, None]
                     + t[None, :, None, None, None], 0.0)
    return jnp.concatenate([x0, x1], axis=1)


if __name__ == "__main__":
    key = jax.random.PRNGKey(0)
    kp, kx = jax.random.split(key)
    params = make_params(kp)
    x = jax.random.normal(kx, (N, C_IN, D, H, W), jnp.float32)

    out = jax.block_until_ready(mixed3a(x, params))
    ref = reference_forward(x, params)

    do, ho, wo = (D - 3) // 2 + 1, (H - 3) // 2 + 1, (W - 3) // 2 + 1
    assert out.shape == (N, C_IN + C_CONV, do, ho, wo), out.shape
    max_err = float(jnp.max(jnp.abs(out - ref)))
    assert max_err < 5e-2, f"max abs error {max_err}"

    print("KERNEL_OK")
</pallas_src>

<mosaic_0001>
module attributes {stable_mosaic.version = 11 : i64} {
  func.func @_mixed3a_kernel(%arg0: i32, %arg1: memref<128x1728xbf16, #tpu.memory_space<vmem>>, %arg2: memref<27x128x64xf32, #tpu.memory_space<vmem>>, %arg3: memref<1728x96xbf16, #tpu.memory_space<vmem>>, %arg4: memref<1x96xf32, #tpu.memory_space<vmem>>, %arg5: memref<1x96xf32, #tpu.memory_space<vmem>>, %arg6: memref<128x160xf32, #tpu.memory_space<vmem>>) attributes {dimension_semantics = [#tpu.dimension_semantics<parallel>], iteration_bounds = array<i64: 4>, scalar_prefetch = 0 : i64, scratch_operands = 0 : i64, tpu.core_type = #tpu.core_type<tc>, window_params = [{transform_indices = @transform_0, window_bounds = array<i64: 128, 1728>}, {transform_indices = @transform_1, window_bounds = array<i64: 27, 128, 64>}, {pipeline_mode = #tpu.pipeline_mode<synchronous>, transform_indices = @transform_2, window_bounds = array<i64: 1728, 96>}, {pipeline_mode = #tpu.pipeline_mode<synchronous>, transform_indices = @transform_3, window_bounds = array<i64: 1, 96>}, {pipeline_mode = #tpu.pipeline_mode<synchronous>, transform_indices = @transform_4, window_bounds = array<i64: 1, 96>}, {transform_indices = @transform_5, window_bounds = array<i64: 128, 160>}]} {
    %c0 = arith.constant 0 : index
    %c0_0 = arith.constant 0 : index
    %c0_1 = arith.constant 0 : index
    %0 = vector.load %arg2[%c0, %c0_0, %c0_1] : memref<27x128x64xf32, #tpu.memory_space<vmem>>, vector<1x128x64xf32>
    %1 = vector.shape_cast %0 : vector<1x128x64xf32> to vector<128x64xf32>
    %c1 = arith.constant 1 : index
    %c0_2 = arith.constant 0 : index
    %c0_3 = arith.constant 0 : index
    %2 = vector.load %arg2[%c1, %c0_2, %c0_3] : memref<27x128x64xf32, #tpu.memory_space<vmem>>, vector<1x128x64xf32>
    %3 = vector.shape_cast %2 : vector<1x128x64xf32> to vector<128x64xf32>
    %4 = arith.maximumf %1, %3 : vector<128x64xf32>
    %c2 = arith.constant 2 : index
    %c0_4 = arith.constant 0 : index
    %c0_5 = arith.constant 0 : index
    %5 = vector.load %arg2[%c2, %c0_4, %c0_5] : memref<27x128x64xf32, #tpu.memory_space<vmem>>, vector<1x128x64xf32>
    %6 = vector.shape_cast %5 : vector<1x128x64xf32> to vector<128x64xf32>
    %7 = arith.maximumf %4, %6 : vector<128x64xf32>
    %c3 = arith.constant 3 : index
    %c0_6 = arith.constant 0 : index
    %c0_7 = arith.constant 0 : index
    %8 = vector.load %arg2[%c3, %c0_6, %c0_7] : memref<27x128x64xf32, #tpu.memory_space<vmem>>, vector<1x128x64xf32>
    %9 = vector.shape_cast %8 : vector<1x128x64xf32> to vector<128x64xf32>
    %10 = arith.maximumf %7, %9 : vector<128x64xf32>
    %c4 = arith.constant 4 : index
    %c0_8 = arith.constant 0 : index
    %c0_9 = arith.constant 0 : index
    %11 = vector.load %arg2[%c4, %c0_8, %c0_9] : memref<27x128x64xf32, #tpu.memory_space<vmem>>, vector<1x128x64xf32>
    %12 = vector.shape_cast %11 : vector<1x128x64xf32> to vector<128x64xf32>
    %13 = arith.maximumf %10, %12 : vector<128x64xf32>
    %c5 = arith.constant 5 : index
    %c0_10 = arith.constant 0 : index
    %c0_11 = arith.constant 0 : index
    %14 = vector.load %arg2[%c5, %c0_10, %c0_11] : memref<27x128x64xf32, #tpu.memory_space<vmem>>, vector<1x128x64xf32>
    %15 = vector.shape_cast %14 : vector<1x128x64xf32> to vector<128x64xf32>
    %16 = arith.maximumf %13, %15 : vector<128x64xf32>
    %c6 = arith.constant 6 : index
    %c0_12 = arith.constant 0 : index
    %c0_13 = arith.constant 0 : index
    %17 = vector.load %arg2[%c6, %c0_12, %c0_13] : memref<27x128x64xf32, #tpu.memory_space<vmem>>, vector<1x128x64xf32>
    %18 = vector.shape_cast %17 : vector<1x128x64xf32> to vector<128x64xf32>
    %19 = arith.maximumf %16, %18 : vector<128x64xf32>
    %c7 = arith.constant 7 : index
    %c0_14 = arith.constant 0 : index
    %c0_15 = arith.constant 0 : index
    %20 = vector.load %arg2[%c7, %c0_14, %c0_15] : memref<27x128x64xf32, #tpu.memory_space<vmem>>, vector<1x128x64xf32>
    %21 = vector.shape_cast %20 : vector<1x128x64xf32> to vector<128x64xf32>
    %22 = arith.maximumf %19, %21 : vector<128x64xf32>
    %c8 = arith.constant 8 : index
    %c0_16 = arith.constant 0 : index
    %c0_17 = arith.constant 0 : index
    %23 = vector.load %arg2[%c8, %c0_16, %c0_17] : memref<27x128x64xf32, #tpu.memory_space<vmem>>, vector<1x128x64xf32>
    %24 = vector.shape_cast %23 : vector<1x128x64xf32> to vector<128x64xf32>
    %25 = arith.maximumf %22, %24 : vector<128x64xf32>
    %c9 = arith.constant 9 : index
    %c0_18 = arith.constant 0 : index
    %c0_19 = arith.constant 0 : index
    %26 = vector.load %arg2[%c9, %c0_18, %c0_19] : memref<27x128x64xf32, #tpu.memory_space<vmem>>, vector<1x128x64xf32>
    %27 = vector.shape_cast %26 : vector<1x128x64xf32> to vector<128x64xf32>
    %28 = arith.maximumf %25, %27 : vector<128x64xf32>
    %c10 = arith.constant 10 : index
    %c0_20 = arith.constant 0 : index
    %c0_21 = arith.constant 0 : index
    %29 = vector.load %arg2[%c10, %c0_20, %c0_21] : memref<27x128x64xf32, #tpu.memory_space<vmem>>, vector<1x128x64xf32>
    %30 = vector.shape_cast %29 : vector<1x128x64xf32> to vector<128x64xf32>
    %31 = arith.maximumf %28, %30 : vector<128x64xf32>
    %c11 = arith.constant 11 : index
    %c0_22 = arith.constant 0 : index
    %c0_23 = arith.constant 0 : index
    %32 = vector.load %arg2[%c11, %c0_22, %c0_23] : memref<27x128x64xf32, #tpu.memory_space<vmem>>, vector<1x128x64xf32>
    %33 = vector.shape_cast %32 : vector<1x128x64xf32> to vector<128x64xf32>
    %34 = arith.maximumf %31, %33 : vector<128x64xf32>
    %c12 = arith.constant 12 : index
    %c0_24 = arith.constant 0 : index
    %c0_25 = arith.constant 0 : index
    %35 = vector.load %arg2[%c12, %c0_24, %c0_25] : memref<27x128x64xf32, #tpu.memory_space<vmem>>, vector<1x128x64xf32>
    %36 = vector.shape_cast %35 : vector<1x128x64xf32> to vector<128x64xf32>
    %37 = arith.maximumf %34, %36 : vector<128x64xf32>
    %c13 = arith.constant 13 : index
    %c0_26 = arith.constant 0 : index
    %c0_27 = arith.constant 0 : index
    %38 = vector.load %arg2[%c13, %c0_26, %c0_27] : memref<27x128x64xf32, #tpu.memory_space<vmem>>, vector<1x128x64xf32>
    %39 = vector.shape_cast %38 : vector<1x128x64xf32> to vector<128x64xf32>
    %40 = arith.maximumf %37, %39 : vector<128x64xf32>
    %c14 = arith.constant 14 : index
    %c0_28 = arith.constant 0 : index
    %c0_29 = arith.constant 0 : index
    %41 = vector.load %arg2[%c14, %c0_28, %c0_29] : memref<27x128x64xf32, #tpu.memory_space<vmem>>, vector<1x128x64xf32>
    %42 = vector.shape_cast %41 : vector<1x128x64xf32> to vector<128x64xf32>
    %43 = arith.maximumf %40, %42 : vector<128x64xf32>
    %c15 = arith.constant 15 : index
    %c0_30 = arith.constant 0 : index
    %c0_31 = arith.constant 0 : index
    %44 = vector.load %arg2[%c15, %c0_30, %c0_31] : memref<27x128x64xf32, #tpu.memory_space<vmem>>, vector<1x128x64xf32>
    %45 = vector.shape_cast %44 : vector<1x128x64xf32> to vector<128x64xf32>
    %46 = arith.maximumf %43, %45 : vector<128x64xf32>
    %c16 = arith.constant 16 : index
    %c0_32 = arith.constant 0 : index
    %c0_33 = arith.constant 0 : index
    %47 = vector.load %arg2[%c16, %c0_32, %c0_33] : memref<27x128x64xf32, #tpu.memory_space<vmem>>, vector<1x128x64xf32>
    %48 = vector.shape_cast %47 : vector<1x128x64xf32> to vector<128x64xf32>
    %49 = arith.maximumf %46, %48 : vector<128x64xf32>
    %c17 = arith.constant 17 : index
    %c0_34 = arith.constant 0 : index
    %c0_35 = arith.constant 0 : index
    %50 = vector.load %arg2[%c17, %c0_34, %c0_35] : memref<27x128x64xf32, #tpu.memory_space<vmem>>, vector<1x128x64xf32>
    %51 = vector.shape_cast %50 : vector<1x128x64xf32> to vector<128x64xf32>
    %52 = arith.maximumf %49, %51 : vector<128x64xf32>
    %c18 = arith.constant 18 : index
    %c0_36 = arith.constant 0 : index
    %c0_37 = arith.constant 0 : index
    %53 = vector.load %arg2[%c18, %c0_36, %c0_37] : memref<27x128x64xf32, #tpu.memory_space<vmem>>, vector<1x128x64xf32>
    %54 = vector.shape_cast %53 : vector<1x128x64xf32> to vector<128x64xf32>
    %55 = arith.maximumf %52, %54 : vector<128x64xf32>
    %c19 = arith.constant 19 : index
    %c0_38 = arith.constant 0 : index
    %c0_39 = arith.constant 0 : index
    %56 = vector.load %arg2[%c19, %c0_38, %c0_39] : memref<27x128x64xf32, #tpu.memory_space<vmem>>, vector<1x128x64xf32>
    %57 = vector.shape_cast %56 : vector<1x128x64xf32> to vector<128x64xf32>
    %58 = arith.maximumf %55, %57 : vector<128x64xf32>
    %c20 = arith.constant 20 : index
    %c0_40 = arith.constant 0 : index
    %c0_41 = arith.constant 0 : index
    %59 = vector.load %arg2[%c20, %c0_40, %c0_41] : memref<27x128x64xf32, #tpu.memory_space<vmem>>, vector<1x128x64xf32>
    %60 = vector.shape_cast %59 : vector<1x128x64xf32> to vector<128x64xf32>
    %61 = arith.maximumf %58, %60 : vector<128x64xf32>
    %c21 = arith.constant 21 : index
    %c0_42 = arith.constant 0 : index
    %c0_43 = arith.constant 0 : index
    %62 = vector.load %arg2[%c21, %c0_42, %c0_43] : memref<27x128x64xf32, #tpu.memory_space<vmem>>, vector<1x128x64xf32>
    %63 = vector.shape_cast %62 : vector<1x128x64xf32> to vector<128x64xf32>
    %64 = arith.maximumf %61, %63 : vector<128x64xf32>
    %c22 = arith.constant 22 : index
    %c0_44 = arith.constant 0 : index
    %c0_45 = arith.constant 0 : index
    %65 = vector.load %arg2[%c22, %c0_44, %c0_45] : memref<27x128x64xf32, #tpu.memory_space<vmem>>, vector<1x128x64xf32>
    %66 = vector.shape_cast %65 : vector<1x128x64xf32> to vector<128x64xf32>
    %67 = arith.maximumf %64, %66 : vector<128x64xf32>
    %c23 = arith.constant 23 : index
    %c0_46 = arith.constant 0 : index
    %c0_47 = arith.constant 0 : index
    %68 = vector.load %arg2[%c23, %c0_46, %c0_47] : memref<27x128x64xf32, #tpu.memory_space<vmem>>, vector<1x128x64xf32>
    %69 = vector.shape_cast %68 : vector<1x128x64xf32> to vector<128x64xf32>
    %70 = arith.maximumf %67, %69 : vector<128x64xf32>
    %c24 = arith.constant 24 : index
    %c0_48 = arith.constant 0 : index
    %c0_49 = arith.constant 0 : index
    %71 = vector.load %arg2[%c24, %c0_48, %c0_49] : memref<27x128x64xf32, #tpu.memory_space<vmem>>, vector<1x128x64xf32>
    %72 = vector.shape_cast %71 : vector<1x128x64xf32> to vector<128x64xf32>
    %73 = arith.maximumf %70, %72 : vector<128x64xf32>
    %c25 = arith.constant 25 : index
    %c0_50 = arith.constant 0 : index
    %c0_51 = arith.constant 0 : index
    %74 = vector.load %arg2[%c25, %c0_50, %c0_51] : memref<27x128x64xf32, #tpu.memory_space<vmem>>, vector<1x128x64xf32>
    %75 = vector.shape_cast %74 : vector<1x128x64xf32> to vector<128x64xf32>
    %76 = arith.maximumf %73, %75 : vector<128x64xf32>
    %c26 = arith.constant 26 : index
    %c0_52 = arith.constant 0 : index
    %c0_53 = arith.constant 0 : index
    %77 = vector.load %arg2[%c26, %c0_52, %c0_53] : memref<27x128x64xf32, #tpu.memory_space<vmem>>, vector<1x128x64xf32>
    %78 = vector.shape_cast %77 : vector<1x128x64xf32> to vector<128x64xf32>
    %79 = arith.maximumf %76, %78 : vector<128x64xf32>
    %c0_54 = arith.constant 0 : index
    %c0_55 = arith.constant 0 : index
    %80 = vector.load %arg1[%c0_54, %c0_55] : memref<128x1728xbf16, #tpu.memory_space<vmem>>, vector<128x1728xbf16>
    %c0_56 = arith.constant 0 : index
    %c0_57 = arith.constant 0 : index
    %81 = vector.load %arg3[%c0_56, %c0_57] : memref<1728x96xbf16, #tpu.memory_space<vmem>>, vector<1728x96xbf16>
    %cst = arith.constant dense<0.000000e+00> : vector<128x96xf32>
    %82 = tpu.matmul %80, %81, %cst {dimension_numbers = #tpu.dot_dimension_numbers<[1], [0], [0], [1], [0, 0, 1, 1], [], []>} : vector<128x1728xbf16>, vector<1728x96xbf16>, vector<128x96xf32> -> vector<128x96xf32>
    %c0_58 = arith.constant 0 : index
    %c0_59 = arith.constant 0 : index
    %83 = vector.load %arg4[%c0_58, %c0_59] : memref<1x96xf32, #tpu.memory_space<vmem>>, vector<1x96xf32>
    %84 = vector.broadcast %83 : vector<1x96xf32> to vector<128x96xf32>
    %85 = arith.mulf %82, %84 : vector<128x96xf32>
    %c0_60 = arith.constant 0 : index
    %c0_61 = arith.constant 0 : index
    %86 = vector.load %arg5[%c0_60, %c0_61] : memref<1x96xf32, #tpu.memory_space<vmem>>, vector<1x96xf32>
    %87 = vector.broadcast %86 : vector<1x96xf32> to vector<128x96xf32>
    %88 = arith.addf %85, %87 : vector<128x96xf32>
    %cst_62 = arith.constant 0.000000e+00 : f32
    %89 = vector.broadcast %cst_62 : f32 to vector<128x96xf32>
    %90 = arith.maximumf %88, %89 : vector<128x96xf32>
    %91 = tpu.concatenate %79, %90 in 1 : vector<128x64xf32>, vector<128x96xf32> -> vector<128x160xf32>
    %c0_63 = arith.constant 0 : index
    %c0_64 = arith.constant 0 : index
    %92 = vector.load %arg6[%c0_63, %c0_64] : memref<128x160xf32, #tpu.memory_space<vmem>>, vector<128x160xf32>
    tpu.vector_store %arg6[%c0_63, %c0_64], %91 {strides = array<i32>} : memref<128x160xf32, #tpu.memory_space<vmem>>, vector<128x160xf32>,
    return
  }
  func.func @transform_0(%arg0: i32) -> (i32, i32) {
    %c0_i32 = arith.constant 0 : i32
    %c0_i32_0 = arith.constant 0 : i32
    return %arg0, %c0_i32 : i32, i32
  }
  func.func @transform_1(%arg0: i32) -> (i32, i32, i32) {
    %c0_i32 = arith.constant 0 : i32
    %c0_i32_0 = arith.constant 0 : i32
    %c0_i32_1 = arith.constant 0 : i32
    return %c0_i32, %arg0, %c0_i32_0 : i32, i32, i32
  }
  func.func @transform_2(%arg0: i32) -> (i32, i32) {
    %c0_i32 = arith.constant 0 : i32
    %c0_i32_0 = arith.constant 0 : i32
    %c0_i32_1 = arith.constant 0 : i32
    return %c0_i32, %c0_i32_0 : i32, i32
  }
  func.func @transform_3(%arg0: i32) -> (i32, i32) {
    %c0_i32 = arith.constant 0 : i32
    %c0_i32_0 = arith.constant 0 : i32
    %c0_i32_1 = arith.constant 0 : i32
    return %c0_i32, %c0_i32_0 : i32, i32
  }
  func.func @transform_4(%arg0: i32) -> (i32, i32) {
    %c0_i32 = arith.constant 0 : i32
    %c0_i32_0 = arith.constant 0 : i32
    %c0_i32_1 = arith.constant 0 : i32
    return %c0_i32, %c0_i32_0 : i32, i32
  }
  func.func @transform_5(%arg0: i32) -> (i32, i32) {
    %c0_i32 = arith.constant 0 : i32
    %c0_i32_0 = arith.constant 0 : i32
    return %arg0, %c0_i32 : i32, i32
  }
}

</mosaic_0001>

<bundles_post_ra>
// kernel: mixed3a.1
= control target key start
LH: loop header
LB: loop body
LE: loop exit
PB: predicated region body
PF: predicated region fallthrough
CT: control target
= control target key end

     0   :  { %10 = vsyncpa [#allocation4], 0  ;;  %s11146_s0 = inlined_call_operand.vmem [shape: bf16[512,1728], index: 0, kind: input, shape index: {}]   ;;  %s11147_s1 = inlined_call_operand.vmem [shape: f32[27,512,64], index: 1, kind: input, shape index: {}]   ;;  %s11148_s2 = inlined_call_operand.vmem [shape: bf16[1728,96], index: 2, kind: input, shape index: {}]   ;;  %s11149_s3 = inlined_call_operand.vmem [shape: f32[1,96], index: 3, kind: input, shape index: {}]   ;;  %s11150_s4 = inlined_call_operand.vmem [shape: f32[1,96], index: 4, kind: input, shape index: {}]   ;;  %s11151_s5 = inlined_call_operand.hbm [shape: f32[512,160], index: 5, kind: output, shape index: {}]  }
   0x1   :  { %12 = vsyncpa [#allocation4 + $0x1], 0  ;;  %s8867_s18 = smov 0   ;;  %s8869_s19 = smov 0  }
   0x2   :  { %s8871_s20 = smov 0   ;;  %s8873_s21 = smov 0  }
   0x3 LB: > { %s8888_s22 = sadd.s32 4294967295, %s8832_s21   ;;  %s7163_s23 = sadd.s32 4294967294, %s8832_s21   ;;  %s8832_s21 = sphi %s8873_s21, %s11157_s21   ;;  %s8828_s20 = sphi %s8871_s20, %s11156_s20   ;;  %s8824_s19 = sphi %s8869_s19, %s11155_s19   ;;  %s8820_s18 = sphi %s8867_s18, %s11154_s18  }
   0x4   : > { %s8892_s24 = sadd.s32 1, %s8832_s21   ;;  %s51_s25 = sadd.s32 1, %s8828_s20 }
   0x5   : > { %s48_s26 = ssub.s32 %s8832_s21, %s8892_s24  ;;  %p58_p0 = scmp.ne.s32.totalorder %s8828_s20, %s8824_s19 }
   0x6   : > { %p49_p1 = scmp.eq.s32.totalorder %s48_s26, 0  ;;  %p59_p2 = scmp.eq.s32.totalorder %s8832_s21, 0 }
   0x7   : > { %p151_p3 = scmp.eq.s32.totalorder %s8888_s22, 3  ;;  %p156_p4 = scmp.ne.s32.totalorder %s8824_s19, %s8820_s18 }
   0x8   : > { %s8904_s27 = scalar_select %p49_p1, %s8828_s20, %s51_s25  }
   0x9   : > { %p60_p5 = por %p59_p2, %p58_p0  ;;  %p8906_p6 = por %p151_p3, %p58_p0 }
   0xa   : > { %p157_p7 = scmp.eq.s32.totalorder %s7163_s23, 3  ;;  %p7165_p9 = scmp.ge.s32.totalorder %s8832_s21, 4 }
   0xc   : > { %p8910_p8 = por %p157_p7, %p156_p4  ;;  %182 = sbr.rel (%p7165_p9) target bundleno = 453 (0x1c5), region = 28 }
  0x11   : > { %195 = sbr.rel (!%p60_p5) target bundleno = 453 (0x1c5), region = 36  ;;  %s197_s30 = sand.u32 (%p60_p5), 1, %s8828_s20  }
  0x12   : > { %s8482_s6 = sshll.u32 (%p60_p5), %s8832_s21, 7  ;;  %s8721_s7 = smul.u32 (%p60_p5), 3456, %s197_s30 }
  0x13   : > { %s8920_s10 = scalar_lea.vmem (%p60_p5), %s11147_s1, %s8482_s6 }
  0x14   : > { %v1094_v0 = vld [vmem:[%s8920_s10] sm:$0xff] (%p60_p5)  ;;  %v1096_v1 = vld [vmem:[%s8920_s10 + $0x8] sm:$0xff] (%p60_p5)  ;;  %v1098_v2 = vld [vmem:[%s8920_s10 + $0x10] sm:$0xff] (%p60_p5)  ;;  %s8925_s11 = scalar_lea.vmem (%p60_p5), [#allocation2], %s8721_s7 }
  0x15   : > { %1095 = vst [vmem:[%s8925_s11] sm:$0xff] (%p60_p5), %v1094_v0  ;;  %v1100_v3 = vld [vmem:[%s8920_s10 + $0x18] sm:$0xff] (%p60_p5)  ;;  %v1102_v4 = vld [vmem:[%s8920_s10 + $0x20] sm:$0xff] (%p60_p5)  ;;  %v1104_v5 = vld [vmem:[%s8920_s10 + $0x28] sm:$0xff] (%p60_p5) }
  0x16   : > { %1097 = vst [vmem:[%s8925_s11 + $0x8] sm:$0xff] %v1096_v1  ;;  %v1106_v6 = vld [vmem:[%s8920_s10 + $0x30] sm:$0xff]  ;;  %v1108_v7 = vld [vmem:[%s8920_s10 + $0x38] sm:$0xff]  ;;  %v1110_v8 = vld [vmem:[%s8920_s10 + $0x40] sm:$0xff] }
  0x17   : > { %1099 = vst [vmem:[%s8925_s11 + $0x10] sm:$0xff] %v1098_v2  ;;  %v1112_v9 = vld [vmem:[%s8920_s10 + $0x48] sm:$0xff]  ;;  %v1114_v10 = vld [vmem:[%s8920_s10 + $0x50] sm:$0xff]  ;;  %v1116_v11 = vld [vmem:[%s8920_s10 + $0x58] sm:$0xff] }
  0x18   : > { %1101 = vst [vmem:[%s8925_s11 + $0x18] sm:$0xff] %v1100_v3  ;;  %v1118_v12 = vld [vmem:[%s8920_s10 + $0x60] sm:$0xff]  ;;  %v1120_v13 = vld [vmem:[%s8920_s10 + $0x68] sm:$0xff]  ;;  %v1122_v14 = vld [vmem:[%s8920_s10 + $0x70] sm:$0xff] }
  0x19   : > { %1103 = vst [vmem:[%s8925_s11 + $0x20] sm:$0xff] %v1102_v4  ;;  %v1124_v15 = vld [vmem:[%s8920_s10 + $0x78] sm:$0xff]  ;;  %v1126_v16 = vld [vmem:[%s8920_s10 + $0x200] sm:$0xff]  ;;  %v1128_v17 = vld [vmem:[%s8920_s10 + $0x208] sm:$0xff] }
  0x1a   : > { %1105 = vst [vmem:[%s8925_s11 + $0x28] sm:$0xff] %v1104_v5  ;;  %v1130_v18 = vld [vmem:[%s8920_s10 + $0x210] sm:$0xff]  ;;  %v1132_v19 = vld [vmem:[%s8920_s10 + $0x218] sm:$0xff]  ;;  %v1134_v20 = vld [vmem:[%s8920_s10 + $0x220] sm:$0xff] }
  0x1b   : > { %1107 = vst [vmem:[%s8925_s11 + $0x30] sm:$0xff] %v1106_v6  ;;  %v1136_v21 = vld [vmem:[%s8920_s10 + $0x228] sm:$0xff]  ;;  %v1138_v22 = vld [vmem:[%s8920_s10 + $0x230] sm:$0xff]  ;;  %v1140_v23 = vld [vmem:[%s8920_s10 + $0x238] sm:$0xff] }
  0x1c   : > { %1109 = vst [vmem:[%s8925_s11 + $0x38] sm:$0xff] %v1108_v7  ;;  %v1142_v24 = vld [vmem:[%s8920_s10 + $0x240] sm:$0xff]  ;;  %v1144_v25 = vld [vmem:[%s8920_s10 + $0x248] sm:$0xff]  ;;  %v1146_v26 = vld [vmem:[%s8920_s10 + $0x250] sm:$0xff] }
  0x1d   : > { %1111 = vst [vmem:[%s8925_s11 + $0x40] sm:$0xff] %v1110_v8  ;;  %v1148_v27 = vld [vmem:[%s8920_s10 + $0x258] sm:$0xff]  ;;  %v1150_v28 = vld [vmem:[%s8920_s10 + $0x260] sm:$0xff]  ;;  %v1152_v29 = vld [vmem:[%s8920_s10 + $0x268] sm:$0xff] }
  0x1e   : > { %1113 = vst [vmem:[%s8925_s11 + $0x48] sm:$0xff] %v1112_v9  ;;  %v1154_v30 = vld [vmem:[%s8920_s10 + $0x270] sm:$0xff]  ;;  %v1156_v31 = vld [vmem:[%s8920_s10 + $0x278] sm:$0xff]  ;;  %v1158_v32 = vld [vmem:[%s8920_s10 + $0x400] sm:$0xff] }
  0x1f   : > { %1115 = vst [vmem:[%s8925_s11 + $0x50] sm:$0xff] %v1114_v10  ;;  %v1160_v33 = vld [vmem:[%s8920_s10 + $0x408] sm:$0xff]  ;;  %v1162_v34 = vld [vmem:[%s8920_s10 + $0x410] sm:$0xff]  ;;  %v1164_v35 = vld [vmem:[%s8920_s10 + $0x418] sm:$0xff] }
  0x20   : > { %1117 = vst [vmem:[%s8925_s11 + $0x58] sm:$0xff] %v1116_v11  ;;  %v1166_v36 = vld [vmem:[%s8920_s10 + $0x420] sm:$0xff]  ;;  %v1168_v37 = vld [vmem:[%s8920_s10 + $0x428] sm:$0xff]  ;;  %v1170_v38 = vld [vmem:[%s8920_s10 + $0x430] sm:$0xff] }
  0x21   : > { %1119 = vst [vmem:[%s8925_s11 + $0x60] sm:$0xff] %v1118_v12  ;;  %v1172_v39 = vld [vmem:[%s8920_s10 + $0x438] sm:$0xff]  ;;  %v1174_v40 = vld [vmem:[%s8920_s10 + $0x440] sm:$0xff]  ;;  %v1176_v41 = vld [vmem:[%s8920_s10 + $0x448] sm:$0xff] }
  0x22   : > { %1121 = vst [vmem:[%s8925_s11 + $0x68] sm:$0xff] %v1120_v13  ;;  %v1178_v42 = vld [vmem:[%s8920_s10 + $0x450] sm:$0xff]  ;;  %v1180_v43 = vld [vmem:[%s8920_s10 + $0x458] sm:$0xff]  ;;  %v1182_v44 = vld [vmem:[%s8920_s10 + $0x460] sm:$0xff] }
  0x23   : > { %1123 = vst [vmem:[%s8925_s11 + $0x70] sm:$0xff] %v1122_v14  ;;  %v1184_v45 = vld [vmem:[%s8920_s10 + $0x468] sm:$0xff]  ;;  %v1186_v46 = vld [vmem:[%s8920_s10 + $0x470] sm:$0xff]  ;;  %v1188_v47 = vld [vmem:[%s8920_s10 + $0x478] sm:$0xff] }
  0x24   : > { %1125 = vst [vmem:[%s8925_s11 + $0x78] sm:$0xff] %v1124_v15  ;;  %v1190_v48 = vld [vmem:[%s8920_s10 + $0x600] sm:$0xff]  ;;  %v1192_v49 = vld [vmem:[%s8920_s10 + $0x608] sm:$0xff]  ;;  %v1194_v50 = vld [vmem:[%s8920_s10 + $0x610] sm:$0xff] }
  0x25   : > { %1127 = vst [vmem:[%s8925_s11 + $0x80] sm:$0xff] %v1126_v16  ;;  %v1196_v51 = vld [vmem:[%s8920_s10 + $0x618] sm:$0xff]  ;;  %v1198_v52 = vld [vmem:[%s8920_s10 + $0x620] sm:$0xff]  ;;  %v1200_v53 = vld [vmem:[%s8920_s10 + $0x628] sm:$0xff] }
  0x26   : > { %1129 = vst [vmem:[%s8925_s11 + $0x88] sm:$0xff] %v1128_v17  ;;  %v1202_v54 = vld [vmem:[%s8920_s10 + $0x630] sm:$0xff]  ;;  %v1204_v55 = vld [vmem:[%s8920_s10 + $0x638] sm:$0xff]  ;;  %v1206_v56 = vld [vmem:[%s8920_s10 + $0x640] sm:$0xff] }
  0x27   : > { %1131 = vst [vmem:[%s8925_s11 + $0x90] sm:$0xff] %v1130_v18  ;;  %v1208_v57 = vld [vmem:[%s8920_s10 + $0x648] sm:$0xff]  ;;  %v1210_v58 = vld [vmem:[%s8920_s10 + $0x650] sm:$0xff]  ;;  %v1212_v59 = vld [vmem:[%s8920_s10 + $0x658] sm:$0xff] }
  0x28   : > { %1133 = vst [vmem:[%s8925_s11 + $0x98] sm:$0xff] %v1132_v19  ;;  %v1214_v60 = vld [vmem:[%s8920_s10 + $0x660] sm:$0xff]  ;;  %v1216_v61 = vld [vmem:[%s8920_s10 + $0x668] sm:$0xff]  ;;  %v1218_v62 = vld [vmem:[%s8920_s10 + $0x670] sm:$0xff] }
  0x29   : > { %1135 = vst [vmem:[%s8925_s11 + $0xa0] sm:$0xff] %v1134_v20  ;;  %v1220_v63 = vld [vmem:[%s8920_s10 + $0x678] sm:$0xff]  ;;  %v1222_v0 = vld [vmem:[%s8920_s10 + $0x800] sm:$0xff]  ;;  %v1224_v1 = vld [vmem:[%s8920_s10 + $0x808] sm:$0xff] }
  0x2a   : > { %1137 = vst [vmem:[%s8925_s11 + $0xa8] sm:$0xff] %v1136_v21  ;;  %v1226_v2 = vld [vmem:[%s8920_s10 + $0x810] sm:$0xff]  ;;  %v1228_v3 = vld [vmem:[%s8920_s10 + $0x818] sm:$0xff]  ;;  %v1230_v4 = vld [vmem:[%s8920_s10 + $0x820] sm:$0xff] }
  0x2b   : > { %1139 = vst [vmem:[%s8925_s11 + $0xb0] sm:$0xff] %v1138_v22  ;;  %v1232_v5 = vld [vmem:[%s8920_s10 + $0x828] sm:$0xff]  ;;  %v1234_v6 = vld [vmem:[%s8920_s10 + $0x830] sm:$0xff]  ;;  %v1236_v7 = vld [vmem:[%s8920_s10 + $0x838] sm:$0xff] }
  0x2c   : > { %1141 = vst [vmem:[%s8925_s11 + $0xb8] sm:$0xff] %v1140_v23  ;;  %v1238_v8 = vld [vmem:[%s8920_s10 + $0x840] sm:$0xff]  ;;  %v1240_v9 = vld [vmem:[%s8920_s10 + $0x848] sm:$0xff]  ;;  %v1242_v10 = vld [vmem:[%s8920_s10 + $0x850] sm:$0xff] }
  0x2d   : > { %1143 = vst [vmem:[%s8925_s11 + $0xc0] sm:$0xff] %v1142_v24  ;;  %v1244_v11 = vld [vmem:[%s8920_s10 + $0x858] sm:$0xff]  ;;  %v1246_v12 = vld [vmem:[%s8920_s10 + $0x860] sm:$0xff]  ;;  %v1248_v13 = vld [vmem:[%s8920_s10 + $0x868] sm:$0xff] }
  0x2e   : > { %1145 = vst [vmem:[%s8925_s11 + $0xc8] sm:$0xff] %v1144_v25  ;;  %v1250_v14 = vld [vmem:[%s8920_s10 + $0x870] sm:$0xff]  ;;  %v1252_v15 = vld [vmem:[%s8920_s10 + $0x878] sm:$0xff]  ;;  %v1254_v16 = vld [vmem:[%s8920_s10 + $0xa00] sm:$0xff] }
  0x2f   : > { %1147 = vst [vmem:[%s8925_s11 + $0xd0] sm:$0xff] %v1146_v26  ;;  %v1256_v17 = vld [vmem:[%s8920_s10 + $0xa08] sm:$0xff]  ;;  %v1258_v18 = vld [vmem:[%s8920_s10 + $0xa10] sm:$0xff]  ;;  %v1260_v19 = vld [vmem:[%s8920_s10 + $0xa18] sm:$0xff] }
  0x30   : > { %1149 = vst [vmem:[%s8925_s11 + $0xd8] sm:$0xff] %v1148_v27  ;;  %v1262_v20 = vld [vmem:[%s8920_s10 + $0xa20] sm:$0xff]  ;;  %v1264_v21 = vld [vmem:[%s8920_s10 + $0xa28] sm:$0xff]  ;;  %v1266_v22 = vld [vmem:[%s8920_s10 + $0xa30] sm:$0xff] }
  0x31   : > { %1151 = vst [vmem:[%s8925_s11 + $0xe0] sm:$0xff] %v1150_v28  ;;  %v1268_v23 = vld [vmem:[%s8920_s10 + $0xa38] sm:$0xff]  ;;  %v1270_v24 = vld [vmem:[%s8920_s10 + $0xa40] sm:$0xff]  ;;  %v1272_v25 = vld [vmem:[%s8920_s10 + $0xa48] sm:$0xff] }
  0x32   : > { %1153 = vst [vmem:[%s8925_s11 + $0xe8] sm:$0xff] %v1152_v29  ;;  %v1274_v26 = vld [vmem:[%s8920_s10 + $0xa50] sm:$0xff]  ;;  %v1276_v27 = vld [vmem:[%s8920_s10 + $0xa58] sm:$0xff]  ;;  %v1278_v28 = vld [vmem:[%s8920_s10 + $0xa60] sm:$0xff] }
  0x33   : > { %1155 = vst [vmem:[%s8925_s11 + $0xf0] sm:$0xff] %v1154_v30  ;;  %v1280_v29 = vld [vmem:[%s8920_s10 + $0xa68] sm:$0xff]  ;;  %v1282_v30 = vld [vmem:[%s8920_s10 + $0xa70] sm:$0xff] }
  0x34   : > { %1157 = vst [vmem:[%s8925_s11 + $0xf8] sm:$0xff] %v1156_v31  ;;  %v1284_v31 = vld [vmem:[%s8920_s10 + $0xa78] sm:$0xff] }
  0x35   : > { %1159 = vst [vmem:[%s8925_s11 + $0x100] sm:$0xff] %v1158_v32  ;;  %v1286_v32 = vld [vmem:[%s8920_s10 + $0xc00] sm:$0xff] }
  0x36   : > { %1161 = vst [vmem:[%s8925_s11 + $0x108] sm:$0xff] %v1160_v33  ;;  %v1288_v33 = vld [vmem:[%s8920_s10 + $0xc08] sm:$0xff] }
  0x37   : > { %1163 = vst [vmem:[%s8925_s11 + $0x110] sm:$0xff] %v1162_v34  ;;  %v1290_v34 = vld [vmem:[%s8920_s10 + $0xc10] sm:$0xff] }
  0x38   : > { %1165 = vst [vmem:[%s8925_s11 + $0x118] sm:$0xff] %v1164_v35  ;;  %v1292_v35 = vld [vmem:[%s8920_s10 + $0xc18] sm:$0xff] }
  0x39   : > { %1167 = vst [vmem:[%s8925_s11 + $0x120] sm:$0xff] %v1166_v36  ;;  %v1294_v36 = vld [vmem:[%s8920_s10 + $0xc20] sm:$0xff] }
  0x3a   : > { %1169 = vst [vmem:[%s8925_s11 + $0x128] sm:$0xff] %v1168_v37  ;;  %v1296_v37 = vld [vmem:[%s8920_s10 + $0xc28] sm:$0xff] }
  0x3b   : > { %1171 = vst [vmem:[%s8925_s11 + $0x130] sm:$0xff] %v1170_v38  ;;  %v1298_v38 = vld [vmem:[%s8920_s10 + $0xc30] sm:$0xff] }
  0x3c   : > { %1173 = vst [vmem:[%s8925_s11 + $0x138] sm:$0xff] %v1172_v39  ;;  %v1300_v39 = vld [vmem:[%s8920_s10 + $0xc38] sm:$0xff] }
  0x3d   : > { %1175 = vst [vmem:[%s8925_s11 + $0x140] sm:$0xff] %v1174_v40  ;;  %v1302_v40 = vld [vmem:[%s8920_s10 + $0xc40] sm:$0xff] }
  0x3e   : > { %1177 = vst [vmem:[%s8925_s11 + $0x148] sm:$0xff] %v1176_v41  ;;  %v1304_v41 = vld [vmem:[%s8920_s10 + $0xc48] sm:$0xff] }
  0x3f   : > { %1179 = vst [vmem:[%s8925_s11 + $0x150] sm:$0xff] %v1178_v42  ;;  %v1306_v42 = vld [vmem:[%s8920_s10 + $0xc50] sm:$0xff] }
  0x40   : > { %1181 = vst [vmem:[%s8925_s11 + $0x158] sm:$0xff] %v1180_v43  ;;  %v1308_v43 = vld [vmem:[%s8920_s10 + $0xc58] sm:$0xff] }
  0x41   : > { %1183 = vst [vmem:[%s8925_s11 + $0x160] sm:$0xff] %v1182_v44  ;;  %v1310_v44 = vld [vmem:[%s8920_s10 + $0xc60] sm:$0xff] }
  0x42   : > { %1185 = vst [vmem:[%s8925_s11 + $0x168] sm:$0xff] %v1184_v45  ;;  %v1312_v45 = vld [vmem:[%s8920_s10 + $0xc68] sm:$0xff] }
  0x43   : > { %1187 = vst [vmem:[%s8925_s11 + $0x170] sm:$0xff] %v1186_v46  ;;  %v1314_v46 = vld [vmem:[%s8920_s10 + $0xc70] sm:$0xff] }
  0x44   : > { %1189 = vst [vmem:[%s8925_s11 + $0x178] sm:$0xff] %v1188_v47  ;;  %v1316_v47 = vld [vmem:[%s8920_s10 + $0xc78] sm:$0xff] }
  0x45   : > { %1191 = vst [vmem:[%s8925_s11 + $0x180] sm:$0xff] %v1190_v48  ;;  %v1318_v48 = vld [vmem:[%s8920_s10 + $0xe00] sm:$0xff] }
  0x46   : > { %1193 = vst [vmem:[%s8925_s11 + $0x188] sm:$0xff] %v1192_v49  ;;  %v1320_v49 = vld [vmem:[%s8920_s10 + $0xe08] sm:$0xff] }
  0x47   : > { %1195 = vst [vmem:[%s8925_s11 + $0x190] sm:$0xff] %v1194_v50  ;;  %v1322_v50 = vld [vmem:[%s8920_s10 + $0xe10] sm:$0xff] }
  0x48   : > { %1197 = vst [vmem:[%s8925_s11 + $0x198] sm:$0xff] %v1196_v51  ;;  %v1324_v51 = vld [vmem:[%s8920_s10 + $0xe18] sm:$0xff] }
  0x49   : > { %1199 = vst [vmem:[%s8925_s11 + $0x1a0] sm:$0xff] %v1198_v52  ;;  %v1326_v52 = vld [vmem:[%s8920_s10 + $0xe20] sm:$0xff] }
  0x4a   : > { %1201 = vst [vmem:[%s8925_s11 + $0x1a8] sm:$0xff] %v1200_v53  ;;  %v1328_v53 = vld [vmem:[%s8920_s10 + $0xe28] sm:$0xff] }
  0x4b   : > { %1203 = vst [vmem:[%s8925_s11 + $0x1b0] sm:$0xff] %v1202_v54  ;;  %v1330_v54 = vld [vmem:[%s8920_s10 + $0xe30] sm:$0xff] }
  0x4c   : > { %1205 = vst [vmem:[%s8925_s11 + $0x1b8] sm:$0xff] %v1204_v55  ;;  %v1332_v55 = vld [vmem:[%s8920_s10 + $0xe38] sm:$0xff] }
  0x4d   : > { %1207 = vst [vmem:[%s8925_s11 + $0x1c0] sm:$0xff] %v1206_v56  ;;  %v1334_v56 = vld [vmem:[%s8920_s10 + $0xe40] sm:$0xff] }
  0x4e   : > { %1209 = vst [vmem:[%s8925_s11 + $0x1c8] sm:$0xff] %v1208_v57  ;;  %v1336_v57 = vld [vmem:[%s8920_s10 + $0xe48] sm:$0xff] }
  0x4f   : > { %1211 = vst [vmem:[%s8925_s11 + $0x1d0] sm:$0xff] %v1210_v58  ;;  %v1338_v58 = vld [vmem:[%s8920_s10 + $0xe50] sm:$0xff] }
  0x50   : > { %1213 = vst [vmem:[%s8925_s11 + $0x1d8] sm:$0xff] %v1212_v59  ;;  %v1340_v59 = vld [vmem:[%s8920_s10 + $0xe58] sm:$0xff] }
  0x51   : > { %1215 = vst [vmem:[%s8925_s11 + $0x1e0] sm:$0xff] %v1214_v60  ;;  %v1342_v60 = vld [vmem:[%s8920_s10 + $0xe60] sm:$0xff] }
  0x52   : > { %1217 = vst [vmem:[%s8925_s11 + $0x1e8] sm:$0xff] %v1216_v61  ;;  %v1344_v61 = vld [vmem:[%s8920_s10 + $0xe68] sm:$0xff] }
  0x53   : > { %1219 = vst [vmem:[%s8925_s11 + $0x1f0] sm:$0xff] %v1218_v62  ;;  %v1346_v62 = vld [vmem:[%s8920_s10 + $0xe70] sm:$0xff] }
  0x54   : > { %1221 = vst [vmem:[%s8925_s11 + $0x1f8] sm:$0xff] %v1220_v63  ;;  %v1348_v63 = vld [vmem:[%s8920_s10 + $0xe78] sm:$0xff] }
  0x55   : > { %1223 = vst [vmem:[%s8925_s11 + $0x200] sm:$0xff] %v1222_v0  ;;  %v1350_v0 = vld [vmem:[%s8920_s10 + $0x1000] sm:$0xff] }
  0x56   : > { %1225 = vst [vmem:[%s8925_s11 + $0x208] sm:$0xff] %v1224_v1  ;;  %v1352_v1 = vld [vmem:[%s8920_s10 + $0x1008] sm:$0xff] }
  0x57   : > { %1227 = vst [vmem:[%s8925_s11 + $0x210] sm:$0xff] %v1226_v2  ;;  %v1354_v2 = vld [vmem:[%s8920_s10 + $0x1010] sm:$0xff] }
  0x58   : > { %1229 = vst [vmem:[%s8925_s11 + $0x218] sm:$0xff] %v1228_v3  ;;  %v1356_v3 = vld [vmem:[%s8920_s10 + $0x1018] sm:$0xff] }
  0x59   : > { %1231 = vst [vmem:[%s8925_s11 + $0x220] sm:$0xff] %v1230_v4  ;;  %v1358_v4 = vld [vmem:[%s8920_s10 + $0x1020] sm:$0xff] }
  0x5a   : > { %1233 = vst [vmem:[%s8925_s11 + $0x228] sm:$0xff] %v1232_v5  ;;  %v1360_v5 = vld [vmem:[%s8920_s10 + $0x1028] sm:$0xff] }
  0x5b   : > { %1235 = vst [vmem:[%s8925_s11 + $0x230] sm:$0xff] %v1234_v6  ;;  %v1362_v6 = vld [vmem:[%s8920_s10 + $0x1030] sm:$0xff] }
  0x5c   : > { %1237 = vst [vmem:[%s8925_s11 + $0x238] sm:$0xff] %v1236_v7  ;;  %v1364_v7 = vld [vmem:[%s8920_s10 + $0x1038] sm:$0xff] }
  0x5d   : > { %1239 = vst [vmem:[%s8925_s11 + $0x240] sm:$0xff] %v1238_v8  ;;  %v1366_v8 = vld [vmem:[%s8920_s10 + $0x1040] sm:$0xff] }
  0x5e   : > { %1241 = vst [vmem:[%s8925_s11 + $0x248] sm:$0xff] %v1240_v9  ;;  %v1368_v9 = vld [vmem:[%s8920_s10 + $0x1048] sm:$0xff] }
  0x5f   : > { %1243 = vst [vmem:[%s8925_s11 + $0x250] sm:$0xff] %v1242_v10  ;;  %v1370_v10 = vld [vmem:[%s8920_s10 + $0x1050] sm:$0xff] }
  0x60   : > { %1245 = vst [vmem:[%s8925_s11 + $0x258] sm:$0xff] %v1244_v11  ;;  %v1372_v11 = vld [vmem:[%s8920_s10 + $0x1058] sm:$0xff] }
  0x61   : > { %1247 = vst [vmem:[%s8925_s11 + $0x260] sm:$0xff] %v1246_v12  ;;  %v1374_v12 = vld [vmem:[%s8920_s10 + $0x1060] sm:$0xff] }
  0x62   : > { %1249 = vst [vmem:[%s8925_s11 + $0x268] sm:$0xff] %v1248_v13  ;;  %v1376_v13 = vld [vmem:[%s8920_s10 + $0x1068] sm:$0xff] }
  0x63   : > { %1251 = vst [vmem:[%s8925_s11 + $0x270] sm:$0xff] %v1250_v14  ;;  %v1378_v14 = vld [vmem:[%s8920_s10 + $0x1070] sm:$0xff] }
  0x64   : > { %1253 = vst [vmem:[%s8925_s11 + $0x278] sm:$0xff] %v1252_v15  ;;  %v1380_v15 = vld [vmem:[%s8920_s10 + $0x1078] sm:$0xff] }
  0x65   : > { %1255 = vst [vmem:[%s8925_s11 + $0x280] sm:$0xff] %v1254_v16  ;;  %v1382_v16 = vld [vmem:[%s8920_s10 + $0x1200] sm:$0xff] }
  0x66   : > { %1257 = vst [vmem:[%s8925_s11 + $0x288] sm:$0xff] %v1256_v17  ;;  %v1384_v17 = vld [vmem:[%s8920_s10 + $0x1208] sm:$0xff] }
  0x67   : > { %1259 = vst [vmem:[%s8925_s11 + $0x290] sm:$0xff] %v1258_v18  ;;  %v1386_v18 = vld [vmem:[%s8920_s10 + $0x1210] sm:$0xff] }
  0x68   : > { %1261 = vst [vmem:[%s8925_s11 + $0x298] sm:$0xff] %v1260_v19  ;;  %v1388_v19 = vld [vmem:[%s8920_s10 + $0x1218] sm:$0xff] }
  0x69   : > { %1263 = vst [vmem:[%s8925_s11 + $0x2a0] sm:$0xff] %v1262_v20  ;;  %v1390_v20 = vld [vmem:[%s8920_s10 + $0x1220] sm:$0xff] }
  0x6a   : > { %1265 = vst [vmem:[%s8925_s11 + $0x2a8] sm:$0xff] %v1264_v21  ;;  %v1392_v21 = vld [vmem:[%s8920_s10 + $0x1228] sm:$0xff] }
  0x6b   : > { %1267 = vst [vmem:[%s8925_s11 + $0x2b0] sm:$0xff] %v1266_v22  ;;  %v1394_v22 = vld [vmem:[%s8920_s10 + $0x1230] sm:$0xff] }
  0x6c   : > { %1269 = vst [vmem:[%s8925_s11 + $0x2b8] sm:$0xff] %v1268_v23  ;;  %v1396_v23 = vld [vmem:[%s8920_s10 + $0x1238] sm:$0xff] }
  0x6d   : > { %1271 = vst [vmem:[%s8925_s11 + $0x2c0] sm:$0xff] %v1270_v24  ;;  %v1398_v24 = vld [vmem:[%s8920_s10 + $0x1240] sm:$0xff] }
  0x6e   : > { %1273 = vst [vmem:[%s8925_s11 + $0x2c8] sm:$0xff] %v1272_v25  ;;  %v1400_v25 = vld [vmem:[%s8920_s10 + $0x1248] sm:$0xff] }
  0x6f   : > { %1275 = vst [vmem:[%s8925_s11 + $0x2d0] sm:$0xff] %v1274_v26  ;;  %v1402_v26 = vld [vmem:[%s8920_s10 + $0x1250] sm:$0xff] }
  0x70   : > { %1277 = vst [vmem:[%s8925_s11 + $0x2d8] sm:$0xff] %v1276_v27  ;;  %v1404_v27 = vld [vmem:[%s8920_s10 + $0x1258] sm:$0xff] }
  0x71   : > { %1279 = vst [vmem:[%s8925_s11 + $0x2e0] sm:$0xff] %v1278_v28  ;;  %v1406_v28 = vld [vmem:[%s8920_s10 + $0x1260] sm:$0xff] }
  0x72   : > { %1281 = vst [vmem:[%s8925_s11 + $0x2e8] sm:$0xff] %v1280_v29  ;;  %v1408_v29 = vld [vmem:[%s8920_s10 + $0x1268] sm:$0xff] }
  0x73   : > { %1283 = vst [vmem:[%s8925_s11 + $0x2f0] sm:$0xff] %v1282_v30  ;;  %v1410_v30 = vld [vmem:[%s8920_s10 + $0x1270] sm:$0xff] }
  0x74   : > { %1285 = vst [vmem:[%s8925_s11 + $0x2f8] sm:$0xff] %v1284_v31  ;;  %v1412_v31 = vld [vmem:[%s8920_s10 + $0x1278] sm:$0xff] }
  0x75   : > { %1287 = vst [vmem:[%s8925_s11 + $0x300] sm:$0xff] %v1286_v32  ;;  %v1414_v32 = vld [vmem:[%s8920_s10 + $0x1400] sm:$0xff] }
  0x76   : > { %1289 = vst [vmem:[%s8925_s11 + $0x308] sm:$0xff] %v1288_v33  ;;  %v1416_v33 = vld [vmem:[%s8920_s10 + $0x1408] sm:$0xff] }
  0x77   : > { %1291 = vst [vmem:[%s8925_s11 + $0x310] sm:$0xff] %v1290_v34  ;;  %v1418_v34 = vld [vmem:[%s8920_s10 + $0x1410] sm:$0xff] }
  0x78   : > { %1293 = vst [vmem:[%s8925_s11 + $0x318] sm:$0xff] %v1292_v35  ;;  %v1420_v35 = vld [vmem:[%s8920_s10 + $0x1418] sm:$0xff] }
  0x79   : > { %1295 = vst [vmem:[%s8925_s11 + $0x320] sm:$0xff] %v1294_v36  ;;  %v1422_v36 = vld [vmem:[%s8920_s10 + $0x1420] sm:$0xff] }
  0x7a   : > { %1297 = vst [vmem:[%s8925_s11 + $0x328] sm:$0xff] %v1296_v37  ;;  %v1424_v37 = vld [vmem:[%s8920_s10 + $0x1428] sm:$0xff] }
  0x7b   : > { %1299 = vst [vmem:[%s8925_s11 + $0x330] sm:$0xff] %v1298_v38  ;;  %v1426_v38 = vld [vmem:[%s8920_s10 + $0x1430] sm:$0xff] }
  0x7c   : > { %1301 = vst [vmem:[%s8925_s11 + $0x338] sm:$0xff] %v1300_v39  ;;  %v1428_v39 = vld [vmem:[%s8920_s10 + $0x1438] sm:$0xff] }
  0x7d   : > { %1303 = vst [vmem:[%s8925_s11 + $0x340] sm:$0xff] %v1302_v40  ;;  %v1430_v40 = vld [vmem:[%s8920_s10 + $0x1440] sm:$0xff] }
  0x7e   : > { %1305 = vst [vmem:[%s8925_s11 + $0x348] sm:$0xff] %v1304_v41  ;;  %v1432_v41 = vld [vmem:[%s8920_s10 + $0x1448] sm:$0xff] }
  0x7f   : > { %1307 = vst [vmem:[%s8925_s11 + $0x350] sm:$0xff] %v1306_v42  ;;  %v1434_v42 = vld [vmem:[%s8920_s10 + $0x1450] sm:$0xff] }
  0x80   : > { %1309 = vst [vmem:[%s8925_s11 + $0x358] sm:$0xff] %v1308_v43  ;;  %v1436_v43 = vld [vmem:[%s8920_s10 + $0x1458] sm:$0xff] }
  0x81   : > { %1311 = vst [vmem:[%s8925_s11 + $0x360] sm:$0xff] %v1310_v44  ;;  %v1438_v44 = vld [vmem:[%s8920_s10 + $0x1460] sm:$0xff] }
  0x82   : > { %1313 = vst [vmem:[%s8925_s11 + $0x368] sm:$0xff] %v1312_v45  ;;  %v1440_v45 = vld [vmem:[%s8920_s10 + $0x1468] sm:$0xff] }
  0x83   : > { %1315 = vst [vmem:[%s8925_s11 + $0x370] sm:$0xff] %v1314_v46  ;;  %v1442_v46 = vld [vmem:[%s8920_s10 + $0x1470] sm:$0xff] }
  0x84   : > { %1317 = vst [vmem:[%s8925_s11 + $0x378] sm:$0xff] %v1316_v47  ;;  %v1444_v47 = vld [vmem:[%s8920_s10 + $0x1478] sm:$0xff] }
  0x85   : > { %1319 = vst [vmem:[%s8925_s11 + $0x380] sm:$0xff] %v1318_v48  ;;  %v1446_v48 = vld [vmem:[%s8920_s10 + $0x1600] sm:$0xff] }
  0x86   : > { %1321 = vst [vmem:[%s8925_s11 + $0x388] sm:$0xff] %v1320_v49  ;;  %v1448_v49 = vld [vmem:[%s8920_s10 + $0x1608] sm:$0xff] }
  0x87   : > { %1323 = vst [vmem:[%s8925_s11 + $0x390] sm:$0xff] %v1322_v50  ;;  %v1450_v50 = vld [vmem:[%s8920_s10 + $0x1610] sm:$0xff] }
  0x88   : > { %1325 = vst [vmem:[%s8925_s11 + $0x398] sm:$0xff] %v1324_v51  ;;  %v1452_v51 = vld [vmem:[%s8920_s10 + $0x1618] sm:$0xff] }
  0x89   : > { %1327 = vst [vmem:[%s8925_s11 + $0x3a0] sm:$0xff] %v1326_v52  ;;  %v1454_v52 = vld [vmem:[%s8920_s10 + $0x1620] sm:$0xff] }
  0x8a   : > { %1329 = vst [vmem:[%s8925_s11 + $0x3a8] sm:$0xff] %v1328_v53  ;;  %v1456_v53 = vld [vmem:[%s8920_s10 + $0x1628] sm:$0xff] }
  0x8b   : > { %1331 = vst [vmem:[%s8925_s11 + $0x3b0] sm:$0xff] %v1330_v54  ;;  %v1458_v54 = vld [vmem:[%s8920_s10 + $0x1630] sm:$0xff] }
  0x8c   : > { %1333 = vst [vmem:[%s8925_s11 + $0x3b8] sm:$0xff] %v1332_v55  ;;  %v1460_v55 = vld [vmem:[%s8920_s10 + $0x1638] sm:$0xff] }
  0x8d   : > { %1335 = vst [vmem:[%s8925_s11 + $0x3c0] sm:$0xff] %v1334_v56  ;;  %v1462_v56 = vld [vmem:[%s8920_s10 + $0x1640] sm:$0xff] }
  0x8e   : > { %1337 = vst [vmem:[%s8925_s11 + $0x3c8] sm:$0xff] %v1336_v57  ;;  %v1464_v57 = vld [vmem:[%s8920_s10 + $0x1648] sm:$0xff] }
  0x8f   : > { %1339 = vst [vmem:[%s8925_s11 + $0x3d0] sm:$0xff] %v1338_v58  ;;  %v1466_v58 = vld [vmem:[%s8920_s10 + $0x1650] sm:$0xff] }
  0x90   : > { %1341 = vst [vmem:[%s8925_s11 + $0x3d8] sm:$0xff] %v1340_v59  ;;  %v1468_v59 = vld [vmem:[%s8920_s10 + $0x1658] sm:$0xff] }
  0x91   : > { %1343 = vst [vmem:[%s8925_s11 + $0x3e0] sm:$0xff] %v1342_v60  ;;  %v1470_v60 = vld [vmem:[%s8920_s10 + $0x1660] sm:$0xff] }
  0x92   : > { %1345 = vst [vmem:[%s8925_s11 + $0x3e8] sm:$0xff] %v1344_v61  ;;  %v1472_v61 = vld [vmem:[%s8920_s10 + $0x1668] sm:$0xff] }
  0x93   : > { %1347 = vst [vmem:[%s8925_s11 + $0x3f0] sm:$0xff] %v1346_v62  ;;  %v1474_v62 = vld [vmem:[%s8920_s10 + $0x1670] sm:$0xff] }
  0x94   : > { %1349 = vst [vmem:[%s8925_s11 + $0x3f8] sm:$0xff] %v1348_v63  ;;  %v1476_v63 = vld [vmem:[%s8920_s10 + $0x1678] sm:$0xff] }
  0x95   : > { %1351 = vst [vmem:[%s8925_s11 + $0x400] sm:$0xff] %v1350_v0  ;;  %v1478_v0 = vld [vmem:[%s8920_s10 + $0x1800] sm:$0xff] }
  0x96   : > { %1353 = vst [vmem:[%s8925_s11 + $0x408] sm:$0xff] %v1352_v1  ;;  %v1480_v1 = vld [vmem:[%s8920_s10 + $0x1808] sm:$0xff] }
  0x97   : > { %1355 = vst [vmem:[%s8925_s11 + $0x410] sm:$0xff] %v1354_v2  ;;  %v1482_v2 = vld [vmem:[%s8920_s10 + $0x1810] sm:$0xff] }
  0x98   : > { %1357 = vst [vmem:[%s8925_s11 + $0x418] sm:$0xff] %v1356_v3  ;;  %v1484_v3 = vld [vmem:[%s8920_s10 + $0x1818] sm:$0xff] }
  0x99   : > { %1359 = vst [vmem:[%s8925_s11 + $0x420] sm:$0xff] %v1358_v4  ;;  %v1486_v4 = vld [vmem:[%s8920_s10 + $0x1820] sm:$0xff] }
  0x9a   : > { %1361 = vst [vmem:[%s8925_s11 + $0x428] sm:$0xff] %v1360_v5  ;;  %v1488_v5 = vld [vmem:[%s8920_s10 + $0x1828] sm:$0xff] }
  0x9b   : > { %1363 = vst [vmem:[%s8925_s11 + $0x430] sm:$0xff] %v1362_v6  ;;  %v1490_v6 = vld [vmem:[%s8920_s10 + $0x1830] sm:$0xff] }
  0x9c   : > { %1365 = vst [vmem:[%s8925_s11 + $0x438] sm:$0xff] %v1364_v7  ;;  %v1492_v7 = vld [vmem:[%s8920_s10 + $0x1838] sm:$0xff] }
  0x9d   : > { %1367 = vst [vmem:[%s8925_s11 + $0x440] sm:$0xff] %v1366_v8  ;;  %v1494_v8 = vld [vmem:[%s8920_s10 + $0x1840] sm:$0xff] }
  0x9e   : > { %1369 = vst [vmem:[%s8925_s11 + $0x448] sm:$0xff] %v1368_v9  ;;  %v1496_v9 = vld [vmem:[%s8920_s10 + $0x1848] sm:$0xff] }
  0x9f   : > { %1371 = vst [vmem:[%s8925_s11 + $0x450] sm:$0xff] %v1370_v10  ;;  %v1498_v10 = vld [vmem:[%s8920_s10 + $0x1850] sm:$0xff] }
  0xa0   : > { %1373 = vst [vmem:[%s8925_s11 + $0x458] sm:$0xff] %v1372_v11  ;;  %v1500_v11 = vld [vmem:[%s8920_s10 + $0x1858] sm:$0xff] }
  0xa1   : > { %1375 = vst [vmem:[%s8925_s11 + $0x460] sm:$0xff] %v1374_v12  ;;  %v1502_v12 = vld [vmem:[%s8920_s10 + $0x1860] sm:$0xff] }
  0xa2   : > { %1377 = vst [vmem:[%s8925_s11 + $0x468] sm:$0xff] %v1376_v13  ;;  %v1504_v13 = vld [vmem:[%s8920_s10 + $0x1868] sm:$0xff] }
  0xa3   : > { %1379 = vst [vmem:[%s8925_s11 + $0x470] sm:$0xff] %v1378_v14  ;;  %v1506_v14 = vld [vmem:[%s8920_s10 + $0x1870] sm:$0xff] }
  0xa4   : > { %1381 = vst [vmem:[%s8925_s11 + $0x478] sm:$0xff] %v1380_v15  ;;  %v1508_v15 = vld [vmem:[%s8920_s10 + $0x1878] sm:$0xff] }
  0xa5   : > { %1383 = vst [vmem:[%s8925_s11 + $0x480] sm:$0xff] %v1382_v16  ;;  %v1510_v16 = vld [vmem:[%s8920_s10 + $0x1a00] sm:$0xff] }
  0xa6   : > { %1385 = vst [vmem:[%s8925_s11 + $0x488] sm:$0xff] %v1384_v17  ;;  %v1512_v17 = vld [vmem:[%s8920_s10 + $0x1a08] sm:$0xff] }
  0xa7   : > { %1387 = vst [vmem:[%s8925_s11 + $0x490] sm:$0xff] %v1386_v18  ;;  %v1514_v18 = vld [vmem:[%s8920_s10 + $0x1a10] sm:$0xff] }
  0xa8   : > { %1389 = vst [vmem:[%s8925_s11 + $0x498] sm:$0xff] %v1388_v19  ;;  %v1516_v19 = vld [vmem:[%s8920_s10 + $0x1a18] sm:$0xff] }
  0xa9   : > { %1391 = vst [vmem:[%s8925_s11 + $0x4a0] sm:$0xff] %v1390_v20  ;;  %v1518_v20 = vld [vmem:[%s8920_s10 + $0x1a20] sm:$0xff] }
  0xaa   : > { %1393 = vst [vmem:[%s8925_s11 + $0x4a8] sm:$0xff] %v1392_v21  ;;  %v1520_v21 = vld [vmem:[%s8920_s10 + $0x1a28] sm:$0xff] }
  0xab   : > { %1395 = vst [vmem:[%s8925_s11 + $0x4b0] sm:$0xff] %v1394_v22  ;;  %v1522_v22 = vld [vmem:[%s8920_s10 + $0x1a30] sm:$0xff] }
  0xac   : > { %1397 = vst [vmem:[%s8925_s11 + $0x4b8] sm:$0xff] %v1396_v23  ;;  %v1524_v23 = vld [vmem:[%s8920_s10 + $0x1a38] sm:$0xff] }
  0xad   : > { %1399 = vst [vmem:[%s8925_s11 + $0x4c0] sm:$0xff] %v1398_v24  ;;  %v1526_v24 = vld [vmem:[%s8920_s10 + $0x1a40] sm:$0xff] }
  0xae   : > { %1401 = vst [vmem:[%s8925_s11 + $0x4c8] sm:$0xff] %v1400_v25  ;;  %v1528_v25 = vld [vmem:[%s8920_s10 + $0x1a48] sm:$0xff] }
  0xaf   : > { %1403 = vst [vmem:[%s8925_s11 + $0x4d0] sm:$0xff] %v1402_v26  ;;  %v1530_v26 = vld [vmem:[%s8920_s10 + $0x1a50] sm:$0xff] }
  0xb0   : > { %1405 = vst [vmem:[%s8925_s11 + $0x4d8] sm:$0xff] %v1404_v27  ;;  %v1532_v27 = vld [vmem:[%s8920_s10 + $0x1a58] sm:$0xff] }
  0xb1   : > { %1407 = vst [vmem:[%s8925_s11 + $0x4e0] sm:$0xff] %v1406_v28  ;;  %v1534_v28 = vld [vmem:[%s8920_s10 + $0x1a60] sm:$0xff] }
  0xb2   : > { %1409 = vst [vmem:[%s8925_s11 + $0x4e8] sm:$0xff] %v1408_v29  ;;  %v1536_v29 = vld [vmem:[%s8920_s10 + $0x1a68] sm:$0xff] }
  0xb3   : > { %1411 = vst [vmem:[%s8925_s11 + $0x4f0] sm:$0xff] %v1410_v30  ;;  %v1538_v30 = vld [vmem:[%s8920_s10 + $0x1a70] sm:$0xff] }
  0xb4   : > { %1413 = vst [vmem:[%s8925_s11 + $0x4f8] sm:$0xff] %v1412_v31  ;;  %v1540_v31 = vld [vmem:[%s8920_s10 + $0x1a78] sm:$0xff] }
  0xb5   : > { %1415 = vst [vmem:[%s8925_s11 + $0x500] sm:$0xff] %v1414_v32  ;;  %v1542_v32 = vld [vmem:[%s8920_s10 + $0x1c00] sm:$0xff] }
  0xb6   : > { %1417 = vst [vmem:[%s8925_s11 + $0x508] sm:$0xff] %v1416_v33  ;;  %v1544_v33 = vld [vmem:[%s8920_s10 + $0x1c08] sm:$0xff] }
  0xb7   : > { %1419 = vst [vmem:[%s8925_s11 + $0x510] sm:$0xff] %v1418_v34  ;;  %v1546_v34 = vld [vmem:[%s8920_s10 + $0x1c10] sm:$0xff] }
  0xb8   : > { %1421 = vst [vmem:[%s8925_s11 + $0x518] sm:$0xff] %v1420_v35  ;;  %v1548_v35 = vld [vmem:[%s8920_s10 + $0x1c18] sm:$0xff] }
  0xb9   : > { %1423 = vst [vmem:[%s8925_s11 + $0x520] sm:$0xff] %v1422_v36  ;;  %v1550_v36 = vld [vmem:[%s8920_s10 + $0x1c20] sm:$0xff] }
  0xba   : > { %1425 = vst [vmem:[%s8925_s11 + $0x528] sm:$0xff] %v1424_v37  ;;  %v1552_v37 = vld [vmem:[%s8920_s10 + $0x1c28] sm:$0xff] }
  0xbb   : > { %1427 = vst [vmem:[%s8925_s11 + $0x530] sm:$0xff] %v1426_v38  ;;  %v1554_v38 = vld [vmem:[%s8920_s10 + $0x1c30] sm:$0xff] }
  0xbc   : > { %1429 = vst [vmem:[%s8925_s11 + $0x538] sm:$0xff] %v1428_v39  ;;  %v1556_v39 = vld [vmem:[%s8920_s10 + $0x1c38] sm:$0xff] }
  0xbd   : > { %1431 = vst [vmem:[%s8925_s11 + $0x540] sm:$0xff] %v1430_v40  ;;  %v1558_v40 = vld [vmem:[%s8920_s10 + $0x1c40] sm:$0xff] }
  0xbe   : > { %1433 = vst [vmem:[%s8925_s11 + $0x548] sm:$0xff] %v1432_v41  ;;  %v1560_v41 = vld [vmem:[%s8920_s10 + $0x1c48] sm:$0xff] }
  0xbf   : > { %1435 = vst [vmem:[%s8925_s11 + $0x550] sm:$0xff] %v1434_v42  ;;  %v1562_v42 = vld [vmem:[%s8920_s10 + $0x1c50] sm:$0xff] }
  0xc0   : > { %1437 = vst [vmem:[%s8925_s11 + $0x558] sm:$0xff] %v1436_v43  ;;  %v1564_v43 = vld [vmem:[%s8920_s10 + $0x1c58] sm:$0xff] }
  0xc1   : > { %1439 = vst [vmem:[%s8925_s11 + $0x560] sm:$0xff] %v1438_v44  ;;  %v1566_v44 = vld [vmem:[%s8920_s10 + $0x1c60] sm:$0xff] }
  0xc2   : > { %1441 = vst [vmem:[%s8925_s11 + $0x568] sm:$0xff] %v1440_v45  ;;  %v1568_v45 = vld [vmem:[%s8920_s10 + $0x1c68] sm:$0xff] }
  0xc3   : > { %1443 = vst [vmem:[%s8925_s11 + $0x570] sm:$0xff] %v1442_v46  ;;  %v1570_v46 = vld [vmem:[%s8920_s10 + $0x1c70] sm:$0xff] }
  0xc4   : > { %1445 = vst [vmem:[%s8925_s11 + $0x578] sm:$0xff] %v1444_v47  ;;  %v1572_v47 = vld [vmem:[%s8920_s10 + $0x1c78] sm:$0xff] }
  0xc5   : > { %1447 = vst [vmem:[%s8925_s11 + $0x580] sm:$0xff] %v1446_v48  ;;  %v1574_v48 = vld [vmem:[%s8920_s10 + $0x1e00] sm:$0xff] }
  0xc6   : > { %1449 = vst [vmem:[%s8925_s11 + $0x588] sm:$0xff] %v1448_v49  ;;  %v1576_v49 = vld [vmem:[%s8920_s10 + $0x1e08] sm:$0xff] }
  0xc7   : > { %1451 = vst [vmem:[%s8925_s11 + $0x590] sm:$0xff] %v1450_v50  ;;  %v1578_v50 = vld [vmem:[%s8920_s10 + $0x1e10] sm:$0xff] }
  0xc8   : > { %1453 = vst [vmem:[%s8925_s11 + $0x598] sm:$0xff] %v1452_v51  ;;  %v1580_v51 = vld [vmem:[%s8920_s10 + $0x1e18] sm:$0xff] }
  0xc9   : > { %1455 = vst [vmem:[%s8925_s11 + $0x5a0] sm:$0xff] %v1454_v52  ;;  %v1582_v52 = vld [vmem:[%s8920_s10 + $0x1e20] sm:$0xff] }
  0xca   : > { %1457 = vst [vmem:[%s8925_s11 + $0x5a8] sm:$0xff] %v1456_v53  ;;  %v1584_v53 = vld [vmem:[%s8920_s10 + $0x1e28] sm:$0xff] }
  0xcb   : > { %1459 = vst [vmem:[%s8925_s11 + $0x5b0] sm:$0xff] %v1458_v54  ;;  %v1586_v54 = vld [vmem:[%s8920_s10 + $0x1e30] sm:$0xff] }
  0xcc   : > { %1461 = vst [vmem:[%s8925_s11 + $0x5b8] sm:$0xff] %v1460_v55  ;;  %v1588_v55 = vld [vmem:[%s8920_s10 + $0x1e38] sm:$0xff] }
  0xcd   : > { %1463 = vst [vmem:[%s8925_s11 + $0x5c0] sm:$0xff] %v1462_v56  ;;  %v1590_v56 = vld [vmem:[%s8920_s10 + $0x1e40] sm:$0xff] }
  0xce   : > { %1465 = vst [vmem:[%s8925_s11 + $0x5c8] sm:$0xff] %v1464_v57  ;;  %v1592_v57 = vld [vmem:[%s8920_s10 + $0x1e48] sm:$0xff] }
  0xcf   : > { %1467 = vst [vmem:[%s8925_s11 + $0x5d0] sm:$0xff] %v1466_v58  ;;  %v1594_v58 = vld [vmem:[%s8920_s10 + $0x1e50] sm:$0xff] }
  0xd0   : > { %1469 = vst [vmem:[%s8925_s11 + $0x5d8] sm:$0xff] %v1468_v59  ;;  %v1596_v59 = vld [vmem:[%s8920_s10 + $0x1e58] sm:$0xff] }
  0xd1   : > { %1471 = vst [vmem:[%s8925_s11 + $0x5e0] sm:$0xff] %v1470_v60  ;;  %v1598_v60 = vld [vmem:[%s8920_s10 + $0x1e60] sm:$0xff] }
  0xd2   : > { %1473 = vst [vmem:[%s8925_s11 + $0x5e8] sm:$0xff] %v1472_v61  ;;  %v1600_v61 = vld [vmem:[%s8920_s10 + $0x1e68] sm:$0xff] }
  0xd3   : > { %1475 = vst [vmem:[%s8925_s11 + $0x5f0] sm:$0xff] %v1474_v62  ;;  %v1602_v62 = vld [vmem:[%s8920_s10 + $0x1e70] sm:$0xff] }
  0xd4   : > { %1477 = vst [vmem:[%s8925_s11 + $0x5f8] sm:$0xff] %v1476_v63  ;;  %v1604_v63 = vld [vmem:[%s8920_s10 + $0x1e78] sm:$0xff] }
  0xd5   : > { %1479 = vst [vmem:[%s8925_s11 + $0x600] sm:$0xff] %v1478_v0  ;;  %v1606_v0 = vld [vmem:[%s8920_s10 + $0x2000] sm:$0xff] }
  0xd6   : > { %1481 = vst [vmem:[%s8925_s11 + $0x608] sm:$0xff] %v1480_v1  ;;  %v1608_v1 = vld [vmem:[%s8920_s10 + $0x2008] sm:$0xff] }
  0xd7   : > { %1483 = vst [vmem:[%s8925_s11 + $0x610] sm:$0xff] %v1482_v2  ;;  %v1610_v2 = vld [vmem:[%s8920_s10 + $0x2010] sm:$0xff] }
  0xd8   : > { %1485 = vst [vmem:[%s8925_s11 + $0x618] sm:$0xff] %v1484_v3  ;;  %v1612_v3 = vld [vmem:[%s8920_s10 + $0x2018] sm:$0xff] }
  0xd9   : > { %1487 = vst [vmem:[%s8925_s11 + $0x620] sm:$0xff] %v1486_v4  ;;  %v1614_v4 = vld [vmem:[%s8920_s10 + $0x2020] sm:$0xff] }
  0xda   : > { %1489 = vst [vmem:[%s8925_s11 + $0x628] sm:$0xff] %v1488_v5  ;;  %v1616_v5 = vld [vmem:[%s8920_s10 + $0x2028] sm:$0xff] }
  0xdb   : > { %1491 = vst [vmem:[%s8925_s11 + $0x630] sm:$0xff] %v1490_v6  ;;  %v1618_v6 = vld [vmem:[%s8920_s10 + $0x2030] sm:$0xff] }
  0xdc   : > { %1493 = vst [vmem:[%s8925_s11 + $0x638] sm:$0xff] %v1492_v7  ;;  %v1620_v7 = vld [vmem:[%s8920_s10 + $0x2038] sm:$0xff] }
  0xdd   : > { %1495 = vst [vmem:[%s8925_s11 + $0x640] sm:$0xff] %v1494_v8  ;;  %v1622_v8 = vld [vmem:[%s8920_s10 + $0x2040] sm:$0xff] }
  0xde   : > { %1497 = vst [vmem:[%s8925_s11 + $0x648] sm:$0xff] %v1496_v9  ;;  %v1624_v9 = vld [vmem:[%s8920_s10 + $0x2048] sm:$0xff] }
  0xdf   : > { %1499 = vst [vmem:[%s8925_s11 + $0x650] sm:$0xff] %v1498_v10  ;;  %v1626_v10 = vld [vmem:[%s8920_s10 + $0x2050] sm:$0xff] }
  0xe0   : > { %1501 = vst [vmem:[%s8925_s11 + $0x658] sm:$0xff] %v1500_v11  ;;  %v1628_v11 = vld [vmem:[%s8920_s10 + $0x2058] sm:$0xff] }
  0xe1   : > { %1503 = vst [vmem:[%s8925_s11 + $0x660] sm:$0xff] %v1502_v12  ;;  %v1630_v12 = vld [vmem:[%s8920_s10 + $0x2060] sm:$0xff] }
  0xe2   : > { %1505 = vst [vmem:[%s8925_s11 + $0x668] sm:$0xff] %v1504_v13  ;;  %v1632_v13 = vld [vmem:[%s8920_s10 + $0x2068] sm:$0xff] }
  0xe3   : > { %1507 = vst [vmem:[%s8925_s11 + $0x670] sm:$0xff] %v1506_v14  ;;  %v1634_v14 = vld [vmem:[%s8920_s10 + $0x2070] sm:$0xff] }
  0xe4   : > { %1509 = vst [vmem:[%s8925_s11 + $0x678] sm:$0xff] %v1508_v15  ;;  %v1636_v15 = vld [vmem:[%s8920_s10 + $0x2078] sm:$0xff] }
  0xe5   : > { %1511 = vst [vmem:[%s8925_s11 + $0x680] sm:$0xff] %v1510_v16  ;;  %v1638_v16 = vld [vmem:[%s8920_s10 + $0x2200] sm:$0xff] }
  0xe6   : > { %1513 = vst [vmem:[%s8925_s11 + $0x688] sm:$0xff] %v1512_v17  ;;  %v1640_v17 = vld [vmem:[%s8920_s10 + $0x2208] sm:$0xff] }
  0xe7   : > { %1515 = vst [vmem:[%s8925_s11 + $0x690] sm:$0xff] %v1514_v18  ;;  %v1642_v18 = vld [vmem:[%s8920_s10 + $0x2210] sm:$0xff] }
  0xe8   : > { %1517 = vst [vmem:[%s8925_s11 + $0x698] sm:$0xff] %v1516_v19  ;;  %v1644_v19 = vld [vmem:[%s8920_s10 + $0x2218] sm:$0xff] }
  0xe9   : > { %1519 = vst [vmem:[%s8925_s11 + $0x6a0] sm:$0xff] %v1518_v20  ;;  %v1646_v20 = vld [vmem:[%s8920_s10 + $0x2220] sm:$0xff] }
  0xea   : > { %1521 = vst [vmem:[%s8925_s11 + $0x6a8] sm:$0xff] %v1520_v21  ;;  %v1648_v21 = vld [vmem:[%s8920_s10 + $0x2228] sm:$0xff] }
  0xeb   : > { %1523 = vst [vmem:[%s8925_s11 + $0x6b0] sm:$0xff] %v1522_v22  ;;  %v1650_v22 = vld [vmem:[%s8920_s10 + $0x2230] sm:$0xff] }
  0xec   : > { %1525 = vst [vmem:[%s8925_s11 + $0x6b8] sm:$0xff] %v1524_v23  ;;  %v1652_v23 = vld [vmem:[%s8920_s10 + $0x2238] sm:$0xff] }
  0xed   : > { %1527 = vst [vmem:[%s8925_s11 + $0x6c0] sm:$0xff] %v1526_v24  ;;  %v1654_v24 = vld [vmem:[%s8920_s10 + $0x2240] sm:$0xff] }
  0xee   : > { %1529 = vst [vmem:[%s8925_s11 + $0x6c8] sm:$0xff] %v1528_v25  ;;  %v1656_v25 = vld [vmem:[%s8920_s10 + $0x2248] sm:$0xff] }
  0xef   : > { %1531 = vst [vmem:[%s8925_s11 + $0x6d0] sm:$0xff] %v1530_v26  ;;  %v1658_v26 = vld [vmem:[%s8920_s10 + $0x2250] sm:$0xff] }
  0xf0   : > { %1533 = vst [vmem:[%s8925_s11 + $0x6d8] sm:$0xff] %v1532_v27  ;;  %v1660_v27 = vld [vmem:[%s8920_s10 + $0x2258] sm:$0xff] }
  0xf1   : > { %1535 = vst [vmem:[%s8925_s11 + $0x6e0] sm:$0xff] %v1534_v28  ;;  %v1662_v28 = vld [vmem:[%s8920_s10 + $0x2260] sm:$0xff] }
  0xf2   : > { %1537 = vst [vmem:[%s8925_s11 + $0x6e8] sm:$0xff] %v1536_v29  ;;  %v1664_v29 = vld [vmem:[%s8920_s10 + $0x2268] sm:$0xff] }
  0xf3   : > { %1539 = vst [vmem:[%s8925_s11 + $0x6f0] sm:$0xff] %v1538_v30  ;;  %v1666_v30 = vld [vmem:[%s8920_s10 + $0x2270] sm:$0xff] }
  0xf4   : > { %1541 = vst [vmem:[%s8925_s11 + $0x6f8] sm:$0xff] %v1540_v31  ;;  %v1668_v31 = vld [vmem:[%s8920_s10 + $0x2278] sm:$0xff] }
  0xf5   : > { %1543 = vst [vmem:[%s8925_s11 + $0x700] sm:$0xff] %v1542_v32  ;;  %v1670_v32 = vld [vmem:[%s8920_s10 + $0x2400] sm:$0xff] }
  0xf6   : > { %1545 = vst [vmem:[%s8925_s11 + $0x708] sm:$0xff] %v1544_v33  ;;  %v1672_v33 = vld [vmem:[%s8920_s10 + $0x2408] sm:$0xff] }
  0xf7   : > { %1547 = vst [vmem:[%s8925_s11 + $0x710] sm:$0xff] %v1546_v34  ;;  %v1674_v34 = vld [vmem:[%s8920_s10 + $0x2410] sm:$0xff] }
  0xf8   : > { %1549 = vst [vmem:[%s8925_s11 + $0x718] sm:$0xff] %v1548_v35  ;;  %v1676_v35 = vld [vmem:[%s8920_s10 + $0x2418] sm:$0xff] }
  0xf9   : > { %1551 = vst [vmem:[%s8925_s11 + $0x720] sm:$0xff] %v1550_v36  ;;  %v1678_v36 = vld [vmem:[%s8920_s10 + $0x2420] sm:$0xff] }
  0xfa   : > { %1553 = vst [vmem:[%s8925_s11 + $0x728] sm:$0xff] %v1552_v37  ;;  %v1680_v37 = vld [vmem:[%s8920_s10 + $0x2428] sm:$0xff] }
  0xfb   : > { %1555 = vst [vmem:[%s8925_s11 + $0x730] sm:$0xff] %v1554_v38  ;;  %v1682_v38 = vld [vmem:[%s8920_s10 + $0x2430] sm:$0xff] }
  0xfc   : > { %1557 = vst [vmem:[%s8925_s11 + $0x738] sm:$0xff] %v1556_v39  ;;  %v1684_v39 = vld [vmem:[%s8920_s10 + $0x2438] sm:$0xff] }
  0xfd   : > { %1559 = vst [vmem:[%s8925_s11 + $0x740] sm:$0xff] %v1558_v40  ;;  %v1686_v40 = vld [vmem:[%s8920_s10 + $0x2440] sm:$0xff] }
  0xfe   : > { %1561 = vst [vmem:[%s8925_s11 + $0x748] sm:$0xff] %v1560_v41  ;;  %v1688_v41 = vld [vmem:[%s8920_s10 + $0x2448] sm:$0xff] }
  0xff   : > { %1563 = vst [vmem:[%s8925_s11 + $0x750] sm:$0xff] %v1562_v42  ;;  %v1690_v42 = vld [vmem:[%s8920_s10 + $0x2450] sm:$0xff] }
 0x100   : > { %1565 = vst [vmem:[%s8925_s11 + $0x758] sm:$0xff] %v1564_v43  ;;  %v1692_v43 = vld [vmem:[%s8920_s10 + $0x2458] sm:$0xff] }
 0x101   : > { %1567 = vst [vmem:[%s8925_s11 + $0x760] sm:$0xff] %v1566_v44  ;;  %v1694_v44 = vld [vmem:[%s8920_s10 + $0x2460] sm:$0xff] }
 0x102   : > { %1569 = vst [vmem:[%s8925_s11 + $0x768] sm:$0xff] %v1568_v45  ;;  %v1696_v45 = vld [vmem:[%s8920_s10 + $0x2468] sm:$0xff] }
 0x103   : > { %1571 = vst [vmem:[%s8925_s11 + $0x770] sm:$0xff] %v1570_v46  ;;  %v1698_v46 = vld [vmem:[%s8920_s10 + $0x2470] sm:$0xff] }
 0x104   : > { %1573 = vst [vmem:[%s8925_s11 + $0x778] sm:$0xff] %v1572_v47  ;;  %v1700_v47 = vld [vmem:[%s8920_s10 + $0x2478] sm:$0xff] }
 0x105   : > { %1575 = vst [vmem:[%s8925_s11 + $0x780] sm:$0xff] %v1574_v48  ;;  %v1702_v48 = vld [vmem:[%s8920_s10 + $0x2600] sm:$0xff] }
 0x106   : > { %1577 = vst [vmem:[%s8925_s11 + $0x788] sm:$0xff] %v1576_v49  ;;  %v1704_v49 = vld [vmem:[%s8920_s10 + $0x2608] sm:$0xff] }
 0x107   : > { %1579 = vst [vmem:[%s8925_s11 + $0x790] sm:$0xff] %v1578_v50  ;;  %v1706_v50 = vld [vmem:[%s8920_s10 + $0x2610] sm:$0xff] }
 0x108   : > { %1581 = vst [vmem:[%s8925_s11 + $0x798] sm:$0xff] %v1580_v51  ;;  %v1708_v51 = vld [vmem:[%s8920_s10 + $0x2618] sm:$0xff] }
 0x109   : > { %1583 = vst [vmem:[%s8925_s11 + $0x7a0] sm:$0xff] %v1582_v52  ;;  %v1710_v52 = vld [vmem:[%s8920_s10 + $0x2620] sm:$0xff] }
 0x10a   : > { %1585 = vst [vmem:[%s8925_s11 + $0x7a8] sm:$0xff] %v1584_v53  ;;  %v1712_v53 = vld [vmem:[%s8920_s10 + $0x2628] sm:$0xff] }
 0x10b   : > { %1587 = vst [vmem:[%s8925_s11 + $0x7b0] sm:$0xff] %v1586_v54  ;;  %v1714_v54 = vld [vmem:[%s8920_s10 + $0x2630] sm:$0xff] }
 0x10c   : > { %1589 = vst [vmem:[%s8925_s11 + $0x7b8] sm:$0xff] %v1588_v55  ;;  %v1716_v55 = vld [vmem:[%s8920_s10 + $0x2638] sm:$0xff] }
 0x10d   : > { %1591 = vst [vmem:[%s8925_s11 + $0x7c0] sm:$0xff] %v1590_v56  ;;  %v1718_v56 = vld [vmem:[%s8920_s10 + $0x2640] sm:$0xff] }
 0x10e   : > { %1593 = vst [vmem:[%s8925_s11 + $0x7c8] sm:$0xff] %v1592_v57  ;;  %v1720_v57 = vld [vmem:[%s8920_s10 + $0x2648] sm:$0xff] }
 0x10f   : > { %1595 = vst [vmem:[%s8925_s11 + $0x7d0] sm:$0xff] %v1594_v58  ;;  %v1722_v58 = vld [vmem:[%s8920_s10 + $0x2650] sm:$0xff] }
 0x110   : > { %1597 = vst [vmem:[%s8925_s11 + $0x7d8] sm:$0xff] %v1596_v59  ;;  %v1724_v59 = vld [vmem:[%s8920_s10 + $0x2658] sm:$0xff] }
 0x111   : > { %1599 = vst [vmem:[%s8925_s11 + $0x7e0] sm:$0xff] %v1598_v60  ;;  %v1726_v60 = vld [vmem:[%s8920_s10 + $0x2660] sm:$0xff] }
 0x112   : > { %1601 = vst [vmem:[%s8925_s11 + $0x7e8] sm:$0xff] %v1600_v61  ;;  %v1728_v61 = vld [vmem:[%s8920_s10 + $0x2668] sm:$0xff] }
 0x113   : > { %1603 = vst [vmem:[%s8925_s11 + $0x7f0] sm:$0xff] %v1602_v62  ;;  %v1730_v62 = vld [vmem:[%s8920_s10 + $0x2670] sm:$0xff] }
 0x114   : > { %1605 = vst [vmem:[%s8925_s11 + $0x7f8] sm:$0xff] %v1604_v63  ;;  %v1732_v63 = vld [vmem:[%s8920_s10 + $0x2678] sm:$0xff] }
 0x115   : > { %1607 = vst [vmem:[%s8925_s11 + $0x800] sm:$0xff] %v1606_v0  ;;  %v1734_v0 = vld [vmem:[%s8920_s10 + $0x2800] sm:$0xff] }
 0x116   : > { %1609 = vst [vmem:[%s8925_s11 + $0x808] sm:$0xff] %v1608_v1  ;;  %v1736_v1 = vld [vmem:[%s8920_s10 + $0x2808] sm:$0xff] }
 0x117   : > { %1611 = vst [vmem:[%s8925_s11 + $0x810] sm:$0xff] %v1610_v2  ;;  %v1738_v2 = vld [vmem:[%s8920_s10 + $0x2810] sm:$0xff] }
 0x118   : > { %1613 = vst [vmem:[%s8925_s11 + $0x818] sm:$0xff] %v1612_v3  ;;  %v1740_v3 = vld [vmem:[%s8920_s10 + $0x2818] sm:$0xff] }
 0x119   : > { %1615 = vst [vmem:[%s8925_s11 + $0x820] sm:$0xff] %v1614_v4  ;;  %v1742_v4 = vld [vmem:[%s8920_s10 + $0x2820] sm:$0xff] }
 0x11a   : > { %1617 = vst [vmem:[%s8925_s11 + $0x828] sm:$0xff] %v1616_v5  ;;  %v1744_v5 = vld [vmem:[%s8920_s10 + $0x2828] sm:$0xff] }
 0x11b   : > { %1619 = vst [vmem:[%s8925_s11 + $0x830] sm:$0xff] %v1618_v6  ;;  %v1746_v6 = vld [vmem:[%s8920_s10 + $0x2830] sm:$0xff] }
 0x11c   : > { %1621 = vst [vmem:[%s8925_s11 + $0x838] sm:$0xff] %v1620_v7  ;;  %v1748_v7 = vld [vmem:[%s8920_s10 + $0x2838] sm:$0xff] }
 0x11d   : > { %1623 = vst [vmem:[%s8925_s11 + $0x840] sm:$0xff] %v1622_v8  ;;  %v1750_v8 = vld [vmem:[%s8920_s10 + $0x2840] sm:$0xff] }
 0x11e   : > { %1625 = vst [vmem:[%s8925_s11 + $0x848] sm:$0xff] %v1624_v9  ;;  %v1752_v9 = vld [vmem:[%s8920_s10 + $0x2848] sm:$0xff] }
 0x11f   : > { %1627 = vst [vmem:[%s8925_s11 + $0x850] sm:$0xff] %v1626_v10  ;;  %v1754_v10 = vld [vmem:[%s8920_s10 + $0x2850] sm:$0xff] }
 0x120   : > { %1629 = vst [vmem:[%s8925_s11 + $0x858] sm:$0xff] %v1628_v11  ;;  %v1756_v11 = vld [vmem:[%s8920_s10 + $0x2858] sm:$0xff] }
 0x121   : > { %1631 = vst [vmem:[%s8925_s11 + $0x860] sm:$0xff] %v1630_v12  ;;  %v1758_v12 = vld [vmem:[%s8920_s10 + $0x2860] sm:$0xff] }
 0x122   : > { %1633 = vst [vmem:[%s8925_s11 + $0x868] sm:$0xff] %v1632_v13  ;;  %v1760_v13 = vld [vmem:[%s8920_s10 + $0x2868] sm:$0xff] }
 0x123   : > { %1635 = vst [vmem:[%s8925_s11 + $0x870] sm:$0xff] %v1634_v14  ;;  %v1762_v14 = vld [vmem:[%s8920_s10 + $0x2870] sm:$0xff] }
 0x124   : > { %1637 = vst [vmem:[%s8925_s11 + $0x878] sm:$0xff] %v1636_v15  ;;  %v1764_v15 = vld [vmem:[%s8920_s10 + $0x2878] sm:$0xff] }
 0x125   : > { %1639 = vst [vmem:[%s8925_s11 + $0x880] sm:$0xff] %v1638_v16  ;;  %v1766_v16 = vld [vmem:[%s8920_s10 + $0x2a00] sm:$0xff] }
 0x126   : > { %1641 = vst [vmem:[%s8925_s11 + $0x888] sm:$0xff] %v1640_v17  ;;  %v1768_v17 = vld [vmem:[%s8920_s10 + $0x2a08] sm:$0xff] }
 0x127   : > { %1643 = vst [vmem:[%s8925_s11 + $0x890] sm:$0xff] %v1642_v18  ;;  %v1770_v18 = vld [vmem:[%s8920_s10 + $0x2a10] sm:$0xff] }
 0x128   : > { %1645 = vst [vmem:[%s8925_s11 + $0x898] sm:$0xff] %v1644_v19  ;;  %v1772_v19 = vld [vmem:[%s8920_s10 + $0x2a18] sm:$0xff] }
 0x129   : > { %1647 = vst [vmem:[%s8925_s11 + $0x8a0] sm:$0xff] %v1646_v20  ;;  %v1774_v20 = vld [vmem:[%s8920_s10 + $0x2a20] sm:$0xff] }
 0x12a   : > { %1649 = vst [vmem:[%s8925_s11 + $0x8a8] sm:$0xff] %v1648_v21  ;;  %v1776_v21 = vld [vmem:[%s8920_s10 + $0x2a28] sm:$0xff] }
 0x12b   : > { %1651 = vst [vmem:[%s8925_s11 + $0x8b0] sm:$0xff] %v1650_v22  ;;  %v1778_v22 = vld [vmem:[%s8920_s10 + $0x2a30] sm:$0xff] }
 0x12c   : > { %1653 = vst [vmem:[%s8925_s11 + $0x8b8] sm:$0xff] %v1652_v23  ;;  %v1780_v23 = vld [vmem:[%s8920_s10 + $0x2a38] sm:$0xff] }
 0x12d   : > { %1655 = vst [vmem:[%s8925_s11 + $0x8c0] sm:$0xff] %v1654_v24  ;;  %v1782_v24 = vld [vmem:[%s8920_s10 + $0x2a40] sm:$0xff] }
 0x12e   : > { %1657 = vst [vmem:[%s8925_s11 + $0x8c8] sm:$0xff] %v1656_v25  ;;  %v1784_v25 = vld [vmem:[%s8920_s10 + $0x2a48] sm:$0xff] }
 0x12f   : > { %1659 = vst [vmem:[%s8925_s11 + $0x8d0] sm:$0xff] %v1658_v26  ;;  %v1786_v26 = vld [vmem:[%s8920_s10 + $0x2a50] sm:$0xff] }
 0x130   : > { %1661 = vst [vmem:[%s8925_s11 + $0x8d8] sm:$0xff] %v1660_v27  ;;  %v1788_v27 = vld [vmem:[%s8920_s10 + $0x2a58] sm:$0xff] }
 0x131   : > { %1663 = vst [vmem:[%s8925_s11 + $0x8e0] sm:$0xff] %v1662_v28  ;;  %v1790_v28 = vld [vmem:[%s8920_s10 + $0x2a60] sm:$0xff] }
 0x132   : > { %1665 = vst [vmem:[%s8925_s11 + $0x8e8] sm:$0xff] %v1664_v29  ;;  %v1792_v29 = vld [vmem:[%s8920_s10 + $0x2a68] sm:$0xff] }
 0x133   : > { %1667 = vst [vmem:[%s8925_s11 + $0x8f0] sm:$0xff] %v1666_v30  ;;  %v1794_v30 = vld [vmem:[%s8920_s10 + $0x2a70] sm:$0xff] }
 0x134   : > { %1669 = vst [vmem:[%s8925_s11 + $0x8f8] sm:$0xff] %v1668_v31  ;;  %v1796_v31 = vld [vmem:[%s8920_s10 + $0x2a78] sm:$0xff] }
 0x135   : > { %1671 = vst [vmem:[%s8925_s11 + $0x900] sm:$0xff] %v1670_v32  ;;  %v1798_v32 = vld [vmem:[%s8920_s10 + $0x2c00] sm:$0xff] }
 0x136   : > { %1673 = vst [vmem:[%s8925_s11 + $0x908] sm:$0xff] %v1672_v33  ;;  %v1800_v33 = vld [vmem:[%s8920_s10 + $0x2c08] sm:$0xff] }
 0x137   : > { %1675 = vst [vmem:[%s8925_s11 + $0x910] sm:$0xff] %v1674_v34  ;;  %v1802_v34 = vld [vmem:[%s8920_s10 + $0x2c10] sm:$0xff] }
 0x138   : > { %1677 = vst [vmem:[%s8925_s11 + $0x918] sm:$0xff] %v1676_v35  ;;  %v1804_v35 = vld [vmem:[%s8920_s10 + $0x2c18] sm:$0xff] }
 0x139   : > { %1679 = vst [vmem:[%s8925_s11 + $0x920] sm:$0xff] %v1678_v36  ;;  %v1806_v36 = vld [vmem:[%s8920_s10 + $0x2c20] sm:$0xff] }
 0x13a   : > { %1681 = vst [vmem:[%s8925_s11 + $0x928] sm:$0xff] %v1680_v37  ;;  %v1808_v37 = vld [vmem:[%s8920_s10 + $0x2c28] sm:$0xff] }
 0x13b   : > { %1683 = vst [vmem:[%s8925_s11 + $0x930] sm:$0xff] %v1682_v38  ;;  %v1810_v38 = vld [vmem:[%s8920_s10 + $0x2c30] sm:$0xff] }
 0x13c   : > { %1685 = vst [vmem:[%s8925_s11 + $0x938] sm:$0xff] %v1684_v39  ;;  %v1812_v39 = vld [vmem:[%s8920_s10 + $0x2c38] sm:$0xff] }
 0x13d   : > { %1687 = vst [vmem:[%s8925_s11 + $0x940] sm:$0xff] %v1686_v40  ;;  %v1814_v40 = vld [vmem:[%s8920_s10 + $0x2c40] sm:$0xff] }
 0x13e   : > { %1689 = vst [vmem:[%s8925_s11 + $0x948] sm:$0xff] %v1688_v41  ;;  %v1816_v41 = vld [vmem:[%s8920_s10 + $0x2c48] sm:$0xff] }
 0x13f   : > { %1691 = vst [vmem:[%s8925_s11 + $0x950] sm:$0xff] %v1690_v42  ;;  %v1818_v42 = vld [vmem:[%s8920_s10 + $0x2c50] sm:$0xff] }
 0x140   : > { %1693 = vst [vmem:[%s8925_s11 + $0x958] sm:$0xff] %v1692_v43  ;;  %v1820_v43 = vld [vmem:[%s8920_s10 + $0x2c58] sm:$0xff] }
 0x141   : > { %1695 = vst [vmem:[%s8925_s11 + $0x960] sm:$0xff] %v1694_v44  ;;  %v1822_v44 = vld [vmem:[%s8920_s10 + $0x2c60] sm:$0xff] }
 0x142   : > { %1697 = vst [vmem:[%s8925_s11 + $0x968] sm:$0xff] %v1696_v45  ;;  %v1824_v45 = vld [vmem:[%s8920_s10 + $0x2c68] sm:$0xff] }
 0x143   : > { %1699 = vst [vmem:[%s8925_s11 + $0x970] sm:$0xff] %v1698_v46  ;;  %v1826_v46 = vld [vmem:[%s8920_s10 + $0x2c70] sm:$0xff] }
 0x144   : > { %1701 = vst [vmem:[%s8925_s11 + $0x978] sm:$0xff] %v1700_v47  ;;  %v1828_v47 = vld [vmem:[%s8920_s10 + $0x2c78] sm:$0xff] }
 0x145   : > { %1703 = vst [vmem:[%s8925_s11 + $0x980] sm:$0xff] %v1702_v48  ;;  %v1830_v48 = vld [vmem:[%s8920_s10 + $0x2e00] sm:$0xff] }
 0x146   : > { %1705 = vst [vmem:[%s8925_s11 + $0x988] sm:$0xff] %v1704_v49  ;;  %v1832_v49 = vld [vmem:[%s8920_s10 + $0x2e08] sm:$0xff] }
 0x147   : > { %1707 = vst [vmem:[%s8925_s11 + $0x990] sm:$0xff] %v1706_v50  ;;  %v1834_v50 = vld [vmem:[%s8920_s10 + $0x2e10] sm:$0xff] }
 0x148   : > { %1709 = vst [vmem:[%s8925_s11 + $0x998] sm:$0xff] %v1708_v51  ;;  %v1836_v51 = vld [vmem:[%s8920_s10 + $0x2e18] sm:$0xff] }
 0x149   : > { %1711 = vst [vmem:[%s8925_s11 + $0x9a0] sm:$0xff] %v1710_v52  ;;  %v1838_v52 = vld [vmem:[%s8920_s10 + $0x2e20] sm:$0xff] }
 0x14a   : > { %1713 = vst [vmem:[%s8925_s11 + $0x9a8] sm:$0xff] %v1712_v53  ;;  %v1840_v53 = vld [vmem:[%s8920_s10 + $0x2e28] sm:$0xff] }
 0x14b   : > { %1715 = vst [vmem:[%s8925_s11 + $0x9b0] sm:$0xff] %v1714_v54  ;;  %v1842_v54 = vld [vmem:[%s8920_s10 + $0x2e30] sm:$0xff] }
 0x14c   : > { %1717 = vst [vmem:[%s8925_s11 + $0x9b8] sm:$0xff] %v1716_v55  ;;  %v1844_v55 = vld [vmem:[%s8920_s10 + $0x2e38] sm:$0xff] }
 0x14d   : > { %1719 = vst [vmem:[%s8925_s11 + $0x9c0] sm:$0xff] %v1718_v56  ;;  %v1846_v56 = vld [vmem:[%s8920_s10 + $0x2e40] sm:$0xff] }
 0x14e   : > { %1721 = vst [vmem:[%s8925_s11 + $0x9c8] sm:$0xff] %v1720_v57  ;;  %v1848_v57 = vld [vmem:[%s8920_s10 + $0x2e48] sm:$0xff] }
 0x14f   : > { %1723 = vst [vmem:[%s8925_s11 + $0x9d0] sm:$0xff] %v1722_v58  ;;  %v1850_v58 = vld [vmem:[%s8920_s10 + $0x2e50] sm:$0xff] }
 0x150   : > { %1725 = vst [vmem:[%s8925_s11 + $0x9d8] sm:$0xff] %v1724_v59  ;;  %v1852_v59 = vld [vmem:[%s8920_s10 + $0x2e58] sm:$0xff] }
 0x151   : > { %1727 = vst [vmem:[%s8925_s11 + $0x9e0] sm:$0xff] %v1726_v60  ;;  %v1854_v60 = vld [vmem:[%s8920_s10 + $0x2e60] sm:$0xff] }
 0x152   : > { %1729 = vst [vmem:[%s8925_s11 + $0x9e8] sm:$0xff] %v1728_v61  ;;  %v1856_v61 = vld [vmem:[%s8920_s10 + $0x2e68] sm:$0xff] }
 0x153   : > { %1731 = vst [vmem:[%s8925_s11 + $0x9f0] sm:$0xff] %v1730_v62  ;;  %v1858_v62 = vld [vmem:[%s8920_s10 + $0x2e70] sm:$0xff] }
 0x154   : > { %1733 = vst [vmem:[%s8925_s11 + $0x9f8] sm:$0xff] %v1732_v63  ;;  %v1860_v63 = vld [vmem:[%s8920_s10 + $0x2e78] sm:$0xff] }
 0x155   : > { %1735 = vst [vmem:[%s8925_s11 + $0xa00] sm:$0xff] %v1734_v0  ;;  %v1862_v0 = vld [vmem:[%s8920_s10 + $0x3000] sm:$0xff] }
 0x156   : > { %1737 = vst [vmem:[%s8925_s11 + $0xa08] sm:$0xff] %v1736_v1  ;;  %v1864_v1 = vld [vmem:[%s8920_s10 + $0x3008] sm:$0xff] }
 0x157   : > { %1739 = vst [vmem:[%s8925_s11 + $0xa10] sm:$0xff] %v1738_v2  ;;  %v1866_v2 = vld [vmem:[%s8920_s10 + $0x3010] sm:$0xff] }
 0x158   : > { %1741 = vst [vmem:[%s8925_s11 + $0xa18] sm:$0xff] %v1740_v3  ;;  %v1868_v3 = vld [vmem:[%s8920_s10 + $0x3018] sm:$0xff] }
 0x159   : > { %1743 = vst [vmem:[%s8925_s11 + $0xa20] sm:$0xff] %v1742_v4  ;;  %v1870_v4 = vld [vmem:[%s8920_s10 + $0x3020] sm:$0xff] }
 0x15a   : > { %1745 = vst [vmem:[%s8925_s11 + $0xa28] sm:$0xff] %v1744_v5  ;;  %v1872_v5 = vld [vmem:[%s8920_s10 + $0x3028] sm:$0xff] }
 0x15b   : > { %1747 = vst [vmem:[%s8925_s11 + $0xa30] sm:$0xff] %v1746_v6  ;;  %v1874_v6 = vld [vmem:[%s8920_s10 + $0x3030] sm:$0xff] }
 0x15c   : > { %1749 = vst [vmem:[%s8925_s11 + $0xa38] sm:$0xff] %v1748_v7  ;;  %v1876_v7 = vld [vmem:[%s8920_s10 + $0x3038] sm:$0xff] }
 0x15d   : > { %1751 = vst [vmem:[%s8925_s11 + $0xa40] sm:$0xff] %v1750_v8  ;;  %v1878_v8 = vld [vmem:[%s8920_s10 + $0x3040] sm:$0xff] }
 0x15e   : > { %1753 = vst [vmem:[%s8925_s11 + $0xa48] sm:$0xff] %v1752_v9  ;;  %v1880_v9 = vld [vmem:[%s8920_s10 + $0x3048] sm:$0xff] }
 0x15f   : > { %1755 = vst [vmem:[%s8925_s11 + $0xa50] sm:$0xff] %v1754_v10  ;;  %v1882_v10 = vld [vmem:[%s8920_s10 + $0x3050] sm:$0xff] }
 0x160   : > { %1757 = vst [vmem:[%s8925_s11 + $0xa58] sm:$0xff] %v1756_v11  ;;  %v1884_v11 = vld [vmem:[%s8920_s10 + $0x3058] sm:$0xff] }
 0x161   : > { %1759 = vst [vmem:[%s8925_s11 + $0xa60] sm:$0xff] %v1758_v12  ;;  %v1886_v12 = vld [vmem:[%s8920_s10 + $0x3060] sm:$0xff] }
 0x162   : > { %1761 = vst [vmem:[%s8925_s11 + $0xa68] sm:$0xff] %v1760_v13  ;;  %v1888_v13 = vld [vmem:[%s8920_s10 + $0x3068] sm:$0xff] }
 0x163   : > { %1763 = vst [vmem:[%s8925_s11 + $0xa70] sm:$0xff] %v1762_v14  ;;  %v1890_v14 = vld [vmem:[%s8920_s10 + $0x3070] sm:$0xff] }
 0x164   : > { %1765 = vst [vmem:[%s8925_s11 + $0xa78] sm:$0xff] %v1764_v15  ;;  %v1892_v15 = vld [vmem:[%s8920_s10 + $0x3078] sm:$0xff] }
 0x165   : > { %1767 = vst [vmem:[%s8925_s11 + $0xa80] sm:$0xff] %v1766_v16  ;;  %v1894_v16 = vld [vmem:[%s8920_s10 + $0x3200] sm:$0xff] }
 0x166   : > { %1769 = vst [vmem:[%s8925_s11 + $0xa88] sm:$0xff] %v1768_v17  ;;  %v1896_v17 = vld [vmem:[%s8920_s10 + $0x3208] sm:$0xff] }
 0x167   : > { %1771 = vst [vmem:[%s8925_s11 + $0xa90] sm:$0xff] %v1770_v18  ;;  %v1898_v18 = vld [vmem:[%s8920_s10 + $0x3210] sm:$0xff] }
 0x168   : > { %1773 = vst [vmem:[%s8925_s11 + $0xa98] sm:$0xff] %v1772_v19  ;;  %v1900_v19 = vld [vmem:[%s8920_s10 + $0x3218] sm:$0xff] }
 0x169   : > { %1775 = vst [vmem:[%s8925_s11 + $0xaa0] sm:$0xff] %v1774_v20  ;;  %v1902_v20 = vld [vmem:[%s8920_s10 + $0x3220] sm:$0xff] }
 0x16a   : > { %1777 = vst [vmem:[%s8925_s11 + $0xaa8] sm:$0xff] %v1776_v21  ;;  %v1904_v21 = vld [vmem:[%s8920_s10 + $0x3228] sm:$0xff] }
 0x16b   : > { %1779 = vst [vmem:[%s8925_s11 + $0xab0] sm:$0xff] %v1778_v22  ;;  %v1906_v22 = vld [vmem:[%s8920_s10 + $0x3230] sm:$0xff] }
 0x16c   : > { %1781 = vst [vmem:[%s8925_s11 + $0xab8] sm:$0xff] %v1780_v23  ;;  %v1908_v23 = vld [vmem:[%s8920_s10 + $0x3238] sm:$0xff] }
 0x16d   : > { %1783 = vst [vmem:[%s8925_s11 + $0xac0] sm:$0xff] %v1782_v24  ;;  %v1910_v24 = vld [vmem:[%s8920_s10 + $0x3240] sm:$0xff] }
 0x16e   : > { %1785 = vst [vmem:[%s8925_s11 + $0xac8] sm:$0xff] %v1784_v25  ;;  %v1912_v25 = vld [vmem:[%s8920_s10 + $0x3248] sm:$0xff] }
 0x16f   : > { %1787 = vst [vmem:[%s8925_s11 + $0xad0] sm:$0xff] %v1786_v26  ;;  %v1914_v26 = vld [vmem:[%s8920_s10 + $0x3250] sm:$0xff] }
 0x170   : > { %1789 = vst [vmem:[%s8925_s11 + $0xad8] sm:$0xff] %v1788_v27  ;;  %v1916_v27 = vld [vmem:[%s8920_s10 + $0x3258] sm:$0xff] }
 0x171   : > { %1791 = vst [vmem:[%s8925_s11 + $0xae0] sm:$0xff] %v1790_v28  ;;  %v1918_v28 = vld [vmem:[%s8920_s10 + $0x3260] sm:$0xff] }
 0x172   : > { %1793 = vst [vmem:[%s8925_s11 + $0xae8] sm:$0xff] %v1792_v29  ;;  %v1920_v29 = vld [vmem:[%s8920_s10 + $0x3268] sm:$0xff] }
 0x173   : > { %1795 = vst [vmem:[%s8925_s11 + $0xaf0] sm:$0xff] %v1794_v30  ;;  %v1922_v30 = vld [vmem:[%s8920_s10 + $0x3270] sm:$0xff] }
 0x174   : > { %1797 = vst [vmem:[%s8925_s11 + $0xaf8] sm:$0xff] %v1796_v31  ;;  %v1924_v31 = vld [vmem:[%s8920_s10 + $0x3278] sm:$0xff] }
 0x175   : > { %1799 = vst [vmem:[%s8925_s11 + $0xb00] sm:$0xff] %v1798_v32  ;;  %v1926_v32 = vld [vmem:[%s8920_s10 + $0x3400] sm:$0xff] }
 0x176   : > { %1801 = vst [vmem:[%s8925_s11 + $0xb08] sm:$0xff] %v1800_v33  ;;  %v1928_v33 = vld [vmem:[%s8920_s10 + $0x3408] sm:$0xff] }
 0x177   : > { %1803 = vst [vmem:[%s8925_s11 + $0xb10] sm:$0xff] %v1802_v34  ;;  %v1930_v34 = vld [vmem:[%s8920_s10 + $0x3410] sm:$0xff] }
 0x178   : > { %1805 = vst [vmem:[%s8925_s11 + $0xb18] sm:$0xff] %v1804_v35  ;;  %v1932_v35 = vld [vmem:[%s8920_s10 + $0x3418] sm:$0xff] }
 0x179   : > { %1807 = vst [vmem:[%s8925_s11 + $0xb20] sm:$0xff] %v1806_v36  ;;  %v1934_v36 = vld [vmem:[%s8920_s10 + $0x3420] sm:$0xff] }
 0x17a   : > { %1809 = vst [vmem:[%s8925_s11 + $0xb28] sm:$0xff] %v1808_v37  ;;  %v1936_v37 = vld [vmem:[%s8920_s10 + $0x3428] sm:$0xff] }
 0x17b   : > { %1811 = vst [vmem:[%s8925_s11 + $0xb30] sm:$0xff] %v1810_v38  ;;  %v1938_v38 = vld [vmem:[%s8920_s10 + $0x3430] sm:$0xff] }
 0x17c   : > { %1813 = vst [vmem:[%s8925_s11 + $0xb38] sm:$0xff] %v1812_v39  ;;  %v1940_v39 = vld [vmem:[%s8920_s10 + $0x3438] sm:$0xff] }
 0x17d   : > { %1815 = vst [vmem:[%s8925_s11 + $0xb40] sm:$0xff] %v1814_v40  ;;  %v1942_v40 = vld [vmem:[%s8920_s10 + $0x3440] sm:$0xff] }
 0x17e   : > { %1817 = vst [vmem:[%s8925_s11 + $0xb48] sm:$0xff] %v1816_v41  ;;  %v1944_v41 = vld [vmem:[%s8920_s10 + $0x3448] sm:$0xff] }
 0x17f   : > { %1819 = vst [vmem:[%s8925_s11 + $0xb50] sm:$0xff] %v1818_v42  ;;  %v1946_v42 = vld [vmem:[%s8920_s10 + $0x3450] sm:$0xff] }
 0x180   : > { %1821 = vst [vmem:[%s8925_s11 + $0xb58] sm:$0xff] %v1820_v43  ;;  %v1948_v43 = vld [vmem:[%s8920_s10 + $0x3458] sm:$0xff] }
 0x181   : > { %1823 = vst [vmem:[%s8925_s11 + $0xb60] sm:$0xff] %v1822_v44  ;;  %v1950_v44 = vld [vmem:[%s8920_s10 + $0x3460] sm:$0xff] }
 0x182   : > { %1825 = vst [vmem:[%s8925_s11 + $0xb68] sm:$0xff] %v1824_v45  ;;  %v1952_v45 = vld [vmem:[%s8920_s10 + $0x3468] sm:$0xff] }
 0x183   : > { %1827 = vst [vmem:[%s8925_s11 + $0xb70] sm:$0xff] %v1826_v46  ;;  %v1954_v46 = vld [vmem:[%s8920_s10 + $0x3470] sm:$0xff] }
 0x184   : > { %1829 = vst [vmem:[%s8925_s11 + $0xb78] sm:$0xff] %v1828_v47  ;;  %v1956_v47 = vld [vmem:[%s8920_s10 + $0x3478] sm:$0xff] }
 0x185   : > { %1831 = vst [vmem:[%s8925_s11 + $0xb80] sm:$0xff] %v1830_v48 }
 0x186   : > { %1833 = vst [vmem:[%s8925_s11 + $0xb88] sm:$0xff] %v1832_v49 }
 0x187   : > { %1835 = vst [vmem:[%s8925_s11 + $0xb90] sm:$0xff] %v1834_v50 }
 0x188   : > { %1837 = vst [vmem:[%s8925_s11 + $0xb98] sm:$0xff] %v1836_v51 }
 0x189   : > { %1839 = vst [vmem:[%s8925_s11 + $0xba0] sm:$0xff] %v1838_v52 }
 0x18a   : > { %1841 = vst [vmem:[%s8925_s11 + $0xba8] sm:$0xff] %v1840_v53 }
 0x18b   : > { %1843 = vst [vmem:[%s8925_s11 + $0xbb0] sm:$0xff] %v1842_v54 }
 0x18c   : > { %1845 = vst [vmem:[%s8925_s11 + $0xbb8] sm:$0xff] %v1844_v55 }
 0x18d   : > { %1847 = vst [vmem:[%s8925_s11 + $0xbc0] sm:$0xff] %v1846_v56 }
 0x18e   : > { %1849 = vst [vmem:[%s8925_s11 + $0xbc8] sm:$0xff] %v1848_v57 }
 0x18f   : > { %1851 = vst [vmem:[%s8925_s11 + $0xbd0] sm:$0xff] %v1850_v58 }
 0x190   : > { %1853 = vst [vmem:[%s8925_s11 + $0xbd8] sm:$0xff] %v1852_v59 }
 0x191   : > { %1855 = vst [vmem:[%s8925_s11 + $0xbe0] sm:$0xff] %v1854_v60 }
 0x192   : > { %1857 = vst [vmem:[%s8925_s11 + $0xbe8] sm:$0xff] %v1856_v61 }
 0x193   : > { %1859 = vst [vmem:[%s8925_s11 + $0xbf0] sm:$0xff] %v1858_v62 }
 0x194   : > { %1861 = vst [vmem:[%s8925_s11 + $0xbf8] sm:$0xff] %v1860_v63 }
 0x195   : > { %1863 = vst [vmem:[%s8925_s11 + $0xc00] sm:$0xff] %v1862_v0 }
 0x196   : > { %1865 = vst [vmem:[%s8925_s11 + $0xc08] sm:$0xff] %v1864_v1 }
 0x197   : > { %1867 = vst [vmem:[%s8925_s11 + $0xc10] sm:$0xff] %v1866_v2 }
 0x198   : > { %1869 = vst [vmem:[%s8925_s11 + $0xc18] sm:$0xff] %v1868_v3 }
 0x199   : > { %1871 = vst [vmem:[%s8925_s11 + $0xc20] sm:$0xff] %v1870_v4 }
 0x19a   : > { %1873 = vst [vmem:[%s8925_s11 + $0xc28] sm:$0xff] %v1872_v5 }
 0x19b   : > { %1875 = vst [vmem:[%s8925_s11 + $0xc30] sm:$0xff] %v1874_v6 }
 0x19c   : > { %1877 = vst [vmem:[%s8925_s11 + $0xc38] sm:$0xff] %v1876_v7 }
 0x19d   : > { %1879 = vst [vmem:[%s8925_s11 + $0xc40] sm:$0xff] %v1878_v8 }
 0x19e   : > { %1881 = vst [vmem:[%s8925_s11 + $0xc48] sm:$0xff] %v1880_v9 }
 0x19f   : > { %1883 = vst [vmem:[%s8925_s11 + $0xc50] sm:$0xff] %v1882_v10 }
 0x1a0   : > { %1885 = vst [vmem:[%s8925_s11 + $0xc58] sm:$0xff] %v1884_v11 }
 0x1a1   : > { %1887 = vst [vmem:[%s8925_s11 + $0xc60] sm:$0xff] %v1886_v12 }
 0x1a2   : > { %1889 = vst [vmem:[%s8925_s11 + $0xc68] sm:$0xff] %v1888_v13 }
 0x1a3   : > { %1891 = vst [vmem:[%s8925_s11 + $0xc70] sm:$0xff] %v1890_v14 }
 0x1a4   : > { %1893 = vst [vmem:[%s8925_s11 + $0xc78] sm:$0xff] %v1892_v15 }
 0x1a5   : > { %1895 = vst [vmem:[%s8925_s11 + $0xc80] sm:$0xff] %v1894_v16 }
 0x1a6   : > { %1897 = vst [vmem:[%s8925_s11 + $0xc88] sm:$0xff] %v1896_v17 }
 0x1a7   : > { %1899 = vst [vmem:[%s8925_s11 + $0xc90] sm:$0xff] %v1898_v18 }
 0x1a8   : > { %1901 = vst [vmem:[%s8925_s11 + $0xc98] sm:$0xff] %v1900_v19 }
 0x1a9   : > { %1903 = vst [vmem:[%s8925_s11 + $0xca0] sm:$0xff] %v1902_v20 }
 0x1aa   : > { %1905 = vst [vmem:[%s8925_s11 + $0xca8] sm:$0xff] %v1904_v21 }
 0x1ab   : > { %1907 = vst [vmem:[%s8925_s11 + $0xcb0] sm:$0xff] %v1906_v22 }
 0x1ac   : > { %1909 = vst [vmem:[%s8925_s11 + $0xcb8] sm:$0xff] %v1908_v23 }
 0x1ad   : > { %1911 = vst [vmem:[%s8925_s11 + $0xcc0] sm:$0xff] %v1910_v24 }
 0x1ae   : > { %1913 = vst [vmem:[%s8925_s11 + $0xcc8] sm:$0xff] %v1912_v25 }
 0x1af   : > { %1915 = vst [vmem:[%s8925_s11 + $0xcd0] sm:$0xff] %v1914_v26 }
 0x1b0   : > { %1917 = vst [vmem:[%s8925_s11 + $0xcd8] sm:$0xff] %v1916_v27 }
 0x1b1   : > { %1919 = vst [vmem:[%s8925_s11 + $0xce0] sm:$0xff] %v1918_v28 }
 0x1b2   : > { %1921 = vst [vmem:[%s8925_s11 + $0xce8] sm:$0xff] %v1920_v29 }
 0x1b3   : > { %1923 = vst [vmem:[%s8925_s11 + $0xcf0] sm:$0xff] %v1922_v30 }
 0x1b4   : > { %1925 = vst [vmem:[%s8925_s11 + $0xcf8] sm:$0xff] %v1924_v31 }
 0x1b5   : > { %1927 = vst [vmem:[%s8925_s11 + $0xd00] sm:$0xff] %v1926_v32 }
 0x1b6   : > { %1929 = vst [vmem:[%s8925_s11 + $0xd08] sm:$0xff] %v1928_v33 }
 0x1b7   : > { %1931 = vst [vmem:[%s8925_s11 + $0xd10] sm:$0xff] %v1930_v34 }
 0x1b8   : > { %1933 = vst [vmem:[%s8925_s11 + $0xd18] sm:$0xff] %v1932_v35 }
 0x1b9   : > { %1935 = vst [vmem:[%s8925_s11 + $0xd20] sm:$0xff] %v1934_v36 }
 0x1ba   : > { %1937 = vst [vmem:[%s8925_s11 + $0xd28] sm:$0xff] %v1936_v37 }
 0x1bb   : > { %1939 = vst [vmem:[%s8925_s11 + $0xd30] sm:$0xff] %v1938_v38 }
 0x1bc   : > { %1941 = vst [vmem:[%s8925_s11 + $0xd38] sm:$0xff] %v1940_v39 }
 0x1bd   : > { %1943 = vst [vmem:[%s8925_s11 + $0xd40] sm:$0xff] %v1942_v40 }
 0x1be   : > { %1945 = vst [vmem:[%s8925_s11 + $0xd48] sm:$0xff] %v1944_v41 }
 0x1bf   : > { %1947 = vst [vmem:[%s8925_s11 + $0xd50] sm:$0xff] %v1946_v42 }
 0x1c0   : > { %1949 = vst [vmem:[%s8925_s11 + $0xd58] sm:$0xff] %v1948_v43 }
 0x1c1   : > { %1951 = vst [vmem:[%s8925_s11 + $0xd60] sm:$0xff] %v1950_v44 }
 0x1c2   : > { %1953 = vst [vmem:[%s8925_s11 + $0xd68] sm:$0xff] %v1952_v45 }
 0x1c3   : > { %1955 = vst [vmem:[%s8925_s11 + $0xd70] sm:$0xff] %v1954_v46 }
 0x1c4   : > { %1957 = vst [vmem:[%s8925_s11 + $0xd78] sm:$0xff] %v1956_v47 }
 0x1c5 PF: > { %p7168_p10 = scmp.ge.s32.totalorder %s8832_s21, 1  ;;  %p3725_p11 = scmp.lt.s32.totalorder %s8832_s21, 5 }
 0x1c7   : > { %p3726_p12 = pnand %p7168_p10, %p3725_p11 }
 0x1c8   : > { %s7170_s8 = sshll.u32 (!%p3726_p12), %s8888_s22, 4  ;;  %s8834_s9 = smov (!%p3726_p12), 64  }
 0x1c9   : > { %3729 = sbr.rel (%p3726_p12) target bundleno = 1200 (0x4b0), region = 88  ;;  %p3766_p13 = scmp.lt.s32.totalorder (!%p3726_p12), %s7170_s8, 63 }
 0x1ca   : > { %s10507_s10 = sand.u32 (!%p3726_p12), 1, %s8824_s19   ;;  %s8704_s25 = sshll.u32 (!%p3726_p12), %s8888_s22, 8 }
 0x1cb   : > { %s8722_s11 = smul.u32 (!%p3726_p12), 3456, %s10507_s10  ;;  %s8790_s14 = scalar_lea.hbm (!%p3726_p12), %s11151_s5, 1024 }
 0x1cd   : > { %s10514_s12 = scalar_lea.vmem (!%p3726_p12), [#allocation2], %s8722_s11 }
 0x1ce   : > { %v8602_v48 = vld [vmem:[%s11148_s2 + $0x38] sm:$0xff]  ;;  %v8601_v50 = vld [vmem:[%s11148_s2 + $0x30] sm:$0xff]  ;;  %v8600_v52 = vld [vmem:[%s11148_s2 + $0x28] sm:$0xff]  ;;  %s11159_s8 = smov (!%p3766_p13, %s7170_s8), 63  ;;  %vm6177_vm0 = vcmask 523264   ;;  %vm7025_vm1 = vcmask 261120  }
 0x1cf   : > { %v8610_v49 = vld [vmem:[%s11148_s2 + $0x78] sm:$0xff]  ;;  %8705 = vmatpush.bf16.msra.mxu2 %v8602_v48  ;;  %v8609_v51 = vld [vmem:[%s11148_s2 + $0x70] sm:$0xff]  ;;  %6202 = vmatpush.bf16.msra.mxu0 %v8602_v48  ;;  %v8608_v53 = vld [vmem:[%s11148_s2 + $0x68] sm:$0xff]  ;;  %s8723_s30 = smul.u32 56, %s11159_s8  ;;  %s7169_s8 = sshll.u32 %s10507_s10, 8 }
 0x1d0   : > { %8713 = vmatpush.bf16.msra.mxu3 %v8610_v49  ;;  %6251 = vmatpush.bf16.msra.mxu1 %v8610_v49  ;;  %v8599_v54 = vld [vmem:[%s11148_s2 + $0x20] sm:$0xff]  ;;  %v8598_v56 = vld [vmem:[%s11148_s2 + $0x18] sm:$0xff]  ;;  %v8597_v58 = vld [vmem:[%s11148_s2 + $0x10] sm:$0xff]  ;;  %s10797_s16 = scalar_lea.vmem [#allocation3], %s7169_s8 }
 0x1d1   : > { %v8607_v55 = vld [vmem:[%s11148_s2 + $0x60] sm:$0xff]  ;;  %v8606_v57 = vld [vmem:[%s11148_s2 + $0x58] sm:$0xff]  ;;  %v8605_v59 = vld [vmem:[%s11148_s2 + $0x50] sm:$0xff]  ;;  %s9836_s13 = scalar_lea.vmem %s11146_s0, %s8723_s30  ;;  %s7070_s30 = scalar_lea.hbm %s11151_s5, %s8704_s25 }
 0x1d2   : > { %v8596_v60 = vld [vmem:[%s11148_s2 + $0x8] sm:$0xff]  ;;  %v8595_v62 = vld [vmem:[%s11148_s2] sm:$0xff]  ;;  %v8546_v1 = vld [vmem:[%s9836_s13 + $0x1f4] sm:$0xf0]  ;;  %s7071_s6 = sshll.u32 %s10797_s16, 4  ;;  %s7073_s7 = sshll.u32 %s7070_s30, 4  ;;  %s7072_s6 = int_to_ptr.vmem [resolvable:$true] %s7071_s6  ;;  %s7074_s7 = int_to_ptr.hbm [resolvable:$true] %s7073_s7 }
 0x1d3   : > { %8706 = vmatpush.bf16.msra.mxu2 %v8601_v50  ;;  %6203 = vmatpush.bf16.msra.mxu0 %v8601_v50  ;;  %v8604_v61 = vld [vmem:[%s11148_s2 + $0x48] sm:$0xff]  ;;  %v8603_v63 = vld [vmem:[%s11148_s2 + $0x40] sm:$0xff]  ;;  %v7816_v3 = vld [vmem:[%s9836_s13 + $0x1f8] sm:$0xf0]  ;;  %s8784_s22 = sshra.s32 %s7074_s7, 4  ;;  %s8785_s22 = int_to_ptr.hbm [resolvable:$true] %s8784_s22 }
 0x1d4   : > { %8714 = vmatpush.bf16.msra.mxu3 %v8609_v51  ;;  %6252 = vmatpush.bf16.msra.mxu1 %v8609_v51  ;;  %v7814_v0 = vld [vmem:[%s9836_s13 + $0x1c0] sm:$0xf]  ;;  %v8539_v2 = vld [vmem:[%s9836_s13 + $0x1c4] sm:$0xf]  ;;  %v8490_v5 = vld [vmem:[%s9836_s13 + $0x34] sm:$0xf0]  ;;  %p8791_p3 = scmp.lt.s32.totalorder %s8785_s22, %s11151_s5 }
 0x1d5   : > { %v7590_v4 = vld [vmem:[%s9836_s13] sm:$0xf]  ;;  %v8483_v6 = vld [vmem:[%s9836_s13 + $0x4] sm:$0xf]  ;;  %v7592_v7 = vld [vmem:[%s9836_s13 + $0x38] sm:$0xf0]  ;;  %v7815_v10 = vor.u32 %v8546_v1, %v7814_v0  ;;  %v7819_v11 = vor.u32 %v8539_v2, %v7816_v3 }
 0x1d6   : > { %v8618_v8 = vld [vmem:[%s11148_s2 + $0xb8] sm:$0xff]  ;;  %v7591_v12 = vor.u32 %v8490_v5, %v7590_v4  ;;  %v7595_v13 = vor.u32 %v8483_v6, %v7592_v7  ;;  %v8617_v16 = vld [vmem:[%s11148_s2 + $0xb0] sm:$0xff]  ;;  %v8616_v20 = vld [vmem:[%s11148_s2 + $0xa8] sm:$0xff]  ;;  %s8786_s11 = scalar_lea.hbm %s8785_s22, 256 }
 0x1d7   : > { %8707 = vmatpush.bf16.msra.mxu2 %v8600_v52  ;;  %6204 = vmatpush.bf16.msra.mxu0 %v8600_v52  ;;  %v8626_v9 = vld [vmem:[%s11148_s2 + $0xf8] sm:$0xff]  ;;  %v8625_v17 = vld [vmem:[%s11148_s2 + $0xf0] sm:$0xff]  ;;  %v8624_v21 = vld [vmem:[%s11148_s2 + $0xe8] sm:$0xff]  ;;  %p8787_p0 = scmp.ne.s32.totalorder %s8785_s22, %s8786_s11  ;;  %p8792_p4 = scmp.lt.s32.totalorder %s8790_s14, %s8786_s11 }
 0x1d8   : > { %8715 = vmatpush.bf16.msra.mxu3 %v8608_v53  ;;  %6253 = vmatpush.bf16.msra.mxu1 %v8608_v53  ;;  %v8634_v14 = vld [vmem:[%s11148_s2 + $0x138] sm:$0xff]  ;;  %v8633_v18 = vld [vmem:[%s11148_s2 + $0x130] sm:$0xff]  ;;  %v8632_v22 = vld [vmem:[%s11148_s2 + $0x128] sm:$0xff] }
 0x1d9   : > { %v8642_v15 = vld [vmem:[%s11148_s2 + $0x178] sm:$0xff]  ;;  %v8641_v19 = vld [vmem:[%s11148_s2 + $0x170] sm:$0xff]  ;;  %v8640_v23 = vld [vmem:[%s11148_s2 + $0x168] sm:$0xff]  ;;  %p8788_p1 = pnand %p8787_p0, %p8906_p6  ;;  %p8793_p5 = por %p8792_p4, %p8791_p3 }
 0x1da   : > { %v7870_v24 = vld [vmem:[%s9836_s13 + $0x230] sm:$0xf]  ;;  %v8615_v25 = vld [vmem:[%s11148_s2 + $0xa0] sm:$0xff]  ;;  %v8560_v27 = vld [vmem:[%s9836_s13 + $0x264] sm:$0xf0] }
 0x1db   : > { %8708 = vmatpush.bf16.msra.mxu2 %v8599_v54  ;;  %6205 = vmatpush.bf16.msra.mxu0 %v8599_v54  ;;  %v8623_v26 = vld [vmem:[%s11148_s2 + $0xe0] sm:$0xff]  ;;  %v8553_v28 = vld [vmem:[%s9836_s13 + $0x234] sm:$0xf]  ;;  %v7872_v29 = vld [vmem:[%s9836_s13 + $0x268] sm:$0xf0]  ;;  %v7871_v38 = vor.u32 %v8560_v27, %v7870_v24  ;;  %p8789_p2 = pneg %p8788_p1 }
 0x1dc   : > { %8716 = vmatpush.bf16.msra.mxu3 %v8607_v55  ;;  %6254 = vmatpush.bf16.msra.mxu1 %v8607_v55  ;;  %v7646_v30 = vld [vmem:[%s9836_s13 + $0x70] sm:$0xf]  ;;  %v8504_v31 = vld [vmem:[%s9836_s13 + $0xa4] sm:$0xf0]  ;;  %v8497_v32 = vld [vmem:[%s9836_s13 + $0x74] sm:$0xf]  ;;  %v7875_v39 = vor.u32 %v8553_v28, %v7872_v29 }
 0x1dd   : > { %v7648_v33 = vld [vmem:[%s9836_s13 + $0xa8] sm:$0xf0]  ;;  %v8631_v34 = vld [vmem:[%s11148_s2 + $0x120] sm:$0xff]  ;;  %v8614_v36 = vld [vmem:[%s11148_s2 + $0x98] sm:$0xff]  ;;  %v7647_v40 = vor.u32 %v8504_v31, %v7646_v30  ;;  %p8794_p7 = pnand %p8793_p5, %p8789_p2 }
 0x1de   : > { %v8639_v35 = vld [vmem:[%s11148_s2 + $0x160] sm:$0xff]  ;;  %v8622_v37 = vld [vmem:[%s11148_s2 + $0xd8] sm:$0xff]  ;;  %v7651_v41 = vor.u32 %v8497_v32, %v7648_v33  ;;  %v8613_v44 = vld [vmem:[%s11148_s2 + $0x90] sm:$0xff] }
 0x1df   : > { %8709 = vmatpush.bf16.msra.mxu2 %v8598_v56  ;;  %6206 = vmatpush.bf16.msra.mxu0 %v8598_v56  ;;  %v8630_v42 = vld [vmem:[%s11148_s2 + $0x118] sm:$0xff]  ;;  %v8621_v45 = vld [vmem:[%s11148_s2 + $0xd0] sm:$0xff]  ;;  %v8612_v48 = vld [vmem:[%s11148_s2 + $0x88] sm:$0xff] }
 0x1e0   : > { %8717 = vmatpush.bf16.msra.mxu3 %v8606_v57  ;;  %6255 = vmatpush.bf16.msra.mxu1 %v8606_v57  ;;  %v8638_v43 = vld [vmem:[%s11148_s2 + $0x158] sm:$0xff]  ;;  %v8629_v46 = vld [vmem:[%s11148_s2 + $0x110] sm:$0xff]  ;;  %v8620_v49 = vld [vmem:[%s11148_s2 + $0xc8] sm:$0xff] }
 0x1e1   : > { %v8637_v47 = vld [vmem:[%s11148_s2 + $0x150] sm:$0xff]  ;;  %v8628_v50 = vld [vmem:[%s11148_s2 + $0x108] sm:$0xff]  ;;  %v8611_v52 = vld [vmem:[%s11148_s2 + $0x80] sm:$0xff] }
 0x1e2   : > { %v8636_v51 = vld [vmem:[%s11148_s2 + $0x148] sm:$0xff]  ;;  %v8619_v53 = vld [vmem:[%s11148_s2 + $0xc0] sm:$0xff]  ;;  %v8574_v55 = vld [vmem:[%s9836_s13 + $0x2d4] sm:$0xf0] }
 0x1e3   : > { %8710 = vmatpush.bf16.msra.mxu2 %v8597_v58  ;;  %6207 = vmatpush.bf16.msra.mxu0 %v8597_v58  ;;  %v7926_v54 = vld [vmem:[%s9836_s13 + $0x2a0] sm:$0xf]  ;;  %v8567_v56 = vld [vmem:[%s9836_s13 + $0x2a4] sm:$0xf]  ;;  %v7928_v57 = vld [vmem:[%s9836_s13 + $0x2d8] sm:$0xf0] }
 0x1e4   : > { %8718 = vmatpush.bf16.msra.mxu3 %v8605_v59  ;;  %6256 = vmatpush.bf16.msra.mxu1 %v8605_v59  ;;  %v7702_v58 = vld [vmem:[%s9836_s13 + $0xe0] sm:$0xf]  ;;  %v8518_v59 = vld [vmem:[%s9836_s13 + $0x114] sm:$0xf0]  ;;  %v7931_v0 = vor.u32 %v8567_v56, %v7928_v57  ;;  %v7598_v24 = vld [vmem:[%s9836_s13 + $0x8] sm:$0xf] }
 0x1e5   : > { %v7703_v1 = vor.u32 %v8518_v59, %v7702_v58  ;;  %v8635_v3 = vld [vmem:[%s11148_s2 + $0x140] sm:$0xff]  ;;  %v8650_v4 = vld [vmem:[%s11148_s2 + $0x1b8] sm:$0xff]  ;;  %v7606_v28 = vld [vmem:[%s9836_s13 + $0x10] sm:$0xf] }
 0x1e6   : > { %v8658_v5 = vld [vmem:[%s11148_s2 + $0x1f8] sm:$0xff]  ;;  %v7600_v27 = vld [vmem:[%s9836_s13 + $0x40] sm:$0xf0]  ;;  %v8492_v29 = vld [vmem:[%s9836_s13 + $0x44] sm:$0xf0] }
 0x1e7   : > { %8711 = vmatpush.bf16.msra.mxu2 %v8596_v60  ;;  %6208 = vmatpush.bf16.msra.mxu0 %v8596_v60  ;;  %v8511_v60 = vld [vmem:[%s9836_s13 + $0xe4] sm:$0xf]  ;;  %v8666_v6 = vld [vmem:[%s11148_s2 + $0x238] sm:$0xff]  ;;  %v8485_v30 = vld [vmem:[%s9836_s13 + $0x14] sm:$0xf] }
 0x1e8   : > { %8719 = vmatpush.bf16.msra.mxu3 %v8604_v61  ;;  %6257 = vmatpush.bf16.msra.mxu1 %v8604_v61  ;;  %v7704_v61 = vld [vmem:[%s9836_s13 + $0x118] sm:$0xf0]  ;;  %v7608_v31 = vld [vmem:[%s9836_s13 + $0x48] sm:$0xf0]  ;;  %v7710_v56 = vld [vmem:[%s9836_s13 + $0xe8] sm:$0xf] }
 0x1e9   : > { %v7707_v2 = vor.u32 %v8511_v60, %v7704_v61  ;;  %v8674_v7 = vld [vmem:[%s11148_s2 + $0x278] sm:$0xff]  ;;  %v8519_v57 = vld [vmem:[%s9836_s13 + $0x11c] sm:$0xf0]  ;;  %v8512_v58 = vld [vmem:[%s9836_s13 + $0xec] sm:$0xf] }
 0x1ea   : > { %v7712_v59 = vld [vmem:[%s9836_s13 + $0x120] sm:$0xf0]  ;;  %v7718_v60 = vld [vmem:[%s9836_s13 + $0xf0] sm:$0xf]  ;;  %v8520_v61 = vld [vmem:[%s9836_s13 + $0x124] sm:$0xf0] }
 0x1eb   : > { %8712 = vmatpush.bf16.msra.mxu2 %v8595_v62  ;;  %6209 = vmatpush.bf16.msra.mxu0 %v8595_v62  ;;  %v8627_v62 = vld [vmem:[%s11148_s2 + $0x100] sm:$0xff] }
 0x1ec   : > { %8720 = vmatpush.bf16.msra.mxu3 %v8603_v63  ;;  %6258 = vmatpush.bf16.msra.mxu1 %v8603_v63  ;;  %v7927_v63 = vor.u32 %v8574_v55, %v7926_v54  ;;  %v8663_v54 = vld [vmem:[%s11148_s2 + $0x220] sm:$0xff] }
 0x1ed   : > { %v8671_v55 = vld [vmem:[%s11148_s2 + $0x260] sm:$0xff] }
 0x1ee   : > { %6230 = vmatmul.bf16.vlgmr.msra.gmra.mxu2 %v7815_v10  ;;  %6210 = vmatmul.bf16.vlgmr.msra.gmra.mxu0 %v7591_v12  ;;  %v8581_v10 = vld [vmem:[%s9836_s13 + $0x314] sm:$0xf]  ;;  %v7758_v12 = vld [vmem:[%s9836_s13 + $0x150] sm:$0xf] }
 0x1ef   : > { %6300 = vmatpush.bf16.msrb.mxu2 %v8618_v8  ;;  %6279 = vmatmul.bf16.vlgmr.msra.gmra.mxu3 %v7819_v11  ;;  %v7982_v8 = vld [vmem:[%s9836_s13 + $0x310] sm:$0xf]  ;;  %v7984_v11 = vld [vmem:[%s9836_s13 + $0x348] sm:$0xf0] }
 0x1f0   : > { %6349 = vmatpush.bf16.msrb.mxu3 %v8626_v9  ;;  %6259 = vmatmul.bf16.vlgmr.msra.gmra.mxu1 %v7595_v13  ;;  %v8588_v9 = vld [vmem:[%s9836_s13 + $0x344] sm:$0xf0] }
 0x1f1   : > { %6398 = vmatpush.bf16.msrb.mxu0 %v8634_v14  ;;  %6447 = vmatpush.bf16.msrb.mxu1 %v8642_v15  ;;  %v8532_v13 = vld [vmem:[%s9836_s13 + $0x184] sm:$0xf0]  ;;  %v8525_v14 = vld [vmem:[%s9836_s13 + $0x154] sm:$0xf]  ;;  %v7760_v15 = vld [vmem:[%s9836_s13 + $0x188] sm:$0xf0] }
 0x1f3   : > { %6301 = vmatpush.bf16.msrb.mxu2 %v8617_v16  ;;  %v7983_v16 = vor.u32 %v8588_v9, %v7982_v8  ;;  %v8533_v8 = vld [vmem:[%s9836_s13 + $0x18c] sm:$0xf0]  ;;  %v8526_v9 = vld [vmem:[%s9836_s13 + $0x15c] sm:$0xf] }
 0x1f4   : > { %6350 = vmatpush.bf16.msrb.mxu3 %v8625_v17  ;;  %v7987_v17 = vor.u32 %v8581_v10, %v7984_v11  ;;  %v7768_v10 = vld [vmem:[%s9836_s13 + $0x190] sm:$0xf0]  ;;  %v7774_v11 = vld [vmem:[%s9836_s13 + $0x160] sm:$0xf] }
 0x1f5   : > { %6399 = vmatpush.bf16.msrb.mxu0 %v8633_v18  ;;  %6448 = vmatpush.bf16.msrb.mxu1 %v8641_v19  ;;  %v7759_v18 = vor.u32 %v8532_v13, %v7758_v12  ;;  %v7763_v19 = vor.u32 %v8525_v14, %v7760_v15  ;;  %v8534_v12 = vld [vmem:[%s9836_s13 + $0x194] sm:$0xf0]  ;;  %v8527_v13 = vld [vmem:[%s9836_s13 + $0x164] sm:$0xf]  ;;  %v7776_v14 = vld [vmem:[%s9836_s13 + $0x198] sm:$0xf0] }
 0x1f7   : > { %6302 = vmatpush.bf16.msrb.mxu2 %v8616_v20  ;;  %v8649_v20 = vld [vmem:[%s11148_s2 + $0x1b0] sm:$0xff] }
 0x1f8   : > { %6351 = vmatpush.bf16.msrb.mxu3 %v8624_v21  ;;  %v8657_v21 = vld [vmem:[%s11148_s2 + $0x1f0] sm:$0xff] }
 0x1f9   : > { %6400 = vmatpush.bf16.msrb.mxu0 %v8632_v22  ;;  %6449 = vmatpush.bf16.msrb.mxu1 %v8640_v23  ;;  %v8665_v22 = vld [vmem:[%s11148_s2 + $0x230] sm:$0xff] }
 0x1fa   : > { %v8673_v23 = vld [vmem:[%s11148_s2 + $0x270] sm:$0xff] }
 0x1fb   : > { %6303 = vmatpush.bf16.msrb.mxu2 %v8615_v25  ;;  %v8491_v25 = vld [vmem:[%s9836_s13 + $0x3c] sm:$0xf0] }
 0x1fc   : > { %6352 = vmatpush.bf16.msrb.mxu3 %v8623_v26  ;;  %v8484_v26 = vld [vmem:[%s9836_s13 + $0xc] sm:$0xf]  ;;  %v7599_v32 = vor.u32 %v8491_v25, %v7598_v24  ;;  %v8547_v24 = vld [vmem:[%s9836_s13 + $0x1fc] sm:$0xf0] }
 0x1fd   : > { %6401 = vmatpush.bf16.msrb.mxu0 %v8631_v34  ;;  %6450 = vmatpush.bf16.msrb.mxu1 %v8639_v35  ;;  %v7603_v33 = vor.u32 %v8484_v26, %v7600_v27  ;;  %v7607_v34 = vor.u32 %v8492_v29, %v7606_v28  ;;  %v7611_v35 = vor.u32 %v8485_v30, %v7608_v31  ;;  %v8540_v25 = vld [vmem:[%s9836_s13 + $0x1cc] sm:$0xf]  ;;  %v7824_v26 = vld [vmem:[%s9836_s13 + $0x200] sm:$0xf0]  ;;  %v7830_v27 = vld [vmem:[%s9836_s13 + $0x1d0] sm:$0xf] }
 0x1fe   : > { %6235 = vmatmul.bf16.gmra.mxu2 %v7871_v38  ;;  %6215 = vmatmul.bf16.gmra.mxu0 %v7647_v40  ;;  %v8664_v38 = vld [vmem:[%s11148_s2 + $0x228] sm:$0xff]  ;;  %v7654_v40 = vld [vmem:[%s9836_s13 + $0x78] sm:$0xf]  ;;  %v8541_v29 = vld [vmem:[%s9836_s13 + $0x1d4] sm:$0xf] }
 0x1ff   : > { %6304 = vmatpush.bf16.msrb.mxu2 %v8614_v36  ;;  %6284 = vmatmul.bf16.gmra.mxu3 %v7875_v39  ;;  %v8648_v36 = vld [vmem:[%s11148_s2 + $0x1a8] sm:$0xff] }
 0x200   : > { %6353 = vmatpush.bf16.msrb.mxu3 %v8622_v37  ;;  %6264 = vmatmul.bf16.gmra.mxu1 %v7651_v41  ;;  %v8656_v37 = vld [vmem:[%s11148_s2 + $0x1e8] sm:$0xff]  ;;  %v8505_v41 = vld [vmem:[%s9836_s13 + $0xac] sm:$0xf0] }
 0x201   : > { %6402 = vmatpush.bf16.msrb.mxu0 %v8630_v42  ;;  %6451 = vmatpush.bf16.msrb.mxu1 %v8638_v43  ;;  %v8672_v39 = vld [vmem:[%s11148_s2 + $0x268] sm:$0xff]  ;;  %v8498_v42 = vld [vmem:[%s9836_s13 + $0x7c] sm:$0xf]  ;;  %v7656_v43 = vld [vmem:[%s9836_s13 + $0xb0] sm:$0xf0] }
 0x202   : > { %v8548_v28 = vld [vmem:[%s9836_s13 + $0x204] sm:$0xf0]  ;;  %v7832_v30 = vld [vmem:[%s9836_s13 + $0x208] sm:$0xf0] }
 0x203   : > { %6305 = vmatpush.bf16.msrb.mxu2 %v8613_v44  ;;  %v7662_v44 = vld [vmem:[%s9836_s13 + $0x80] sm:$0xf] }
 0x204   : > { %6354 = vmatpush.bf16.msrb.mxu3 %v8621_v45  ;;  %v8506_v45 = vld [vmem:[%s9836_s13 + $0xb4] sm:$0xf0] }
 0x205   : > { %6403 = vmatpush.bf16.msrb.mxu0 %v8629_v46  ;;  %6452 = vmatpush.bf16.msrb.mxu1 %v8637_v47  ;;  %v8499_v46 = vld [vmem:[%s9836_s13 + $0x84] sm:$0xf]  ;;  %v7664_v47 = vld [vmem:[%s9836_s13 + $0xb8] sm:$0xf0] }
 0x207   : > { %6306 = vmatpush.bf16.msrb.mxu2 %v8612_v48  ;;  %v7655_v48 = vor.u32 %v8505_v41, %v7654_v40  ;;  %v8652_v40 = vld [vmem:[%s11148_s2 + $0x1c8] sm:$0xff] }
 0x208   : > { %6355 = vmatpush.bf16.msrb.mxu3 %v8620_v49  ;;  %v7659_v49 = vor.u32 %v8498_v42, %v7656_v43 }
 0x209   : > { %6404 = vmatpush.bf16.msrb.mxu0 %v8628_v50  ;;  %6453 = vmatpush.bf16.msrb.mxu1 %v8636_v51  ;;  %v7663_v50 = vor.u32 %v8506_v45, %v7662_v44  ;;  %v7667_v51 = vor.u32 %v8499_v46, %v7664_v47  ;;  %v8660_v47 = vld [vmem:[%s11148_s2 + $0x208] sm:$0xff] }
 0x20b   : > { %6307 = vmatpush.bf16.msrb.mxu2 %v8611_v52  ;;  %v8647_v52 = vld [vmem:[%s11148_s2 + $0x1a0] sm:$0xff] }
 0x20c   : > { %6356 = vmatpush.bf16.msrb.mxu3 %v8619_v53  ;;  %v8655_v53 = vld [vmem:[%s11148_s2 + $0x1e0] sm:$0xff] }
 0x20d   : > { %6405 = vmatpush.bf16.msrb.mxu0 %v8627_v62  ;;  %6454 = vmatpush.bf16.msrb.mxu1 %v8635_v3  ;;  %v8513_v62 = vld [vmem:[%s9836_s13 + $0xf4] sm:$0xf] }
 0x20e   : > { %6240 = vmatmul.bf16.gmra.mxu2 %v7927_v63  ;;  %6220 = vmatmul.bf16.gmra.mxu0 %v7703_v1  ;;  %v7720_v63 = vld [vmem:[%s9836_s13 + $0x128] sm:$0xf0]  ;;  %v7715_v1 = vor.u32 %v8512_v58, %v7712_v59 }
 0x20f   : > { %6289 = vmatmul.bf16.gmra.mxu3 %v7931_v0  ;;  %6496 = vmatpush.bf16.msra.mxu2 %v8650_v4  ;;  %v7711_v0 = vor.u32 %v8519_v57, %v7710_v56  ;;  %v7723_v3 = vor.u32 %v8513_v62, %v7720_v63  ;;  %v8646_v4 = vld [vmem:[%s11148_s2 + $0x198] sm:$0xff] }
 0x210   : > { %6269 = vmatmul.bf16.gmra.mxu1 %v7707_v2  ;;  %6545 = vmatpush.bf16.msra.mxu3 %v8658_v5  ;;  %v7719_v2 = vor.u32 %v8520_v61, %v7718_v60  ;;  %v8654_v5 = vld [vmem:[%s11148_s2 + $0x1d8] sm:$0xff]  ;;  %v8668_v61 = vld [vmem:[%s11148_s2 + $0x248] sm:$0xff] }
 0x211   : > { %6594 = vmatpush.bf16.msra.mxu0 %v8666_v6  ;;  %6643 = vmatpush.bf16.msra.mxu1 %v8674_v7  ;;  %v8662_v6 = vld [vmem:[%s11148_s2 + $0x218] sm:$0xff] }
 0x212   : > { %v7766_v7 = vld [vmem:[%s9836_s13 + $0x158] sm:$0xf] }
 0x213   : > { %6497 = vmatpush.bf16.msra.mxu2 %v8649_v20  ;;  %v7767_v15 = vor.u32 %v8533_v8, %v7766_v7  ;;  %v8645_v20 = vld [vmem:[%s11148_s2 + $0x190] sm:$0xff] }
 0x214   : > { %6546 = vmatpush.bf16.msra.mxu3 %v8657_v21  ;;  %v8653_v21 = vld [vmem:[%s11148_s2 + $0x1d0] sm:$0xff] }
 0x215   : > { %6595 = vmatpush.bf16.msra.mxu0 %v8665_v22  ;;  %6644 = vmatpush.bf16.msra.mxu1 %v8673_v23  ;;  %v8661_v22 = vld [vmem:[%s11148_s2 + $0x210] sm:$0xff]  ;;  %v7822_v23 = vld [vmem:[%s9836_s13 + $0x1c8] sm:$0xf] }
 0x216   : > { %v7823_v31 = vor.u32 %v8547_v24, %v7822_v23 }
 0x217   : > { %6498 = vmatpush.bf16.msra.mxu2 %v8648_v36 }
 0x218   : > { %6547 = vmatpush.bf16.msra.mxu3 %v8656_v37 }
 0x219   : > { %6596 = vmatpush.bf16.msra.mxu0 %v8664_v38  ;;  %6645 = vmatpush.bf16.msra.mxu1 %v8672_v39  ;;  %v8644_v39 = vld [vmem:[%s11148_s2 + $0x188] sm:$0xff] }
 0x21b   : > { %6499 = vmatpush.bf16.msra.mxu2 %v8647_v52  ;;  %v7886_v52 = vld [vmem:[%s9836_s13 + $0x240] sm:$0xf] }
 0x21c   : > { %6548 = vmatpush.bf16.msra.mxu3 %v8655_v53  ;;  %v8562_v53 = vld [vmem:[%s9836_s13 + $0x274] sm:$0xf0] }
 0x21d   : > { %6597 = vmatpush.bf16.msra.mxu0 %v8663_v54  ;;  %6646 = vmatpush.bf16.msra.mxu1 %v8671_v55  ;;  %v8555_v54 = vld [vmem:[%s9836_s13 + $0x244] sm:$0xf]  ;;  %v7888_v55 = vld [vmem:[%s9836_s13 + $0x278] sm:$0xf0]  ;;  %v7887_v62 = vor.u32 %v8562_v53, %v7886_v52 }
 0x21e   : > { %6245 = vmatmul.bf16.gmra.mxu2 %v7983_v16  ;;  %6225 = vmatmul.bf16.gmra.mxu0 %v7759_v18  ;;  %v7771_v16 = vor.u32 %v8526_v9, %v7768_v10  ;;  %v7775_v18 = vor.u32 %v8534_v12, %v7774_v11  ;;  %v7891_v63 = vor.u32 %v8555_v54, %v7888_v55  ;;  %v8659_v11 = vld [vmem:[%s11148_s2 + $0x200] sm:$0xff]  ;;  %v7934_v12 = vld [vmem:[%s9836_s13 + $0x2a8] sm:$0xf] }
 0x21f   : > { %6294 = vmatmul.bf16.gmra.mxu3 %v7987_v17  ;;  %6500 = vmatpush.bf16.msra.mxu2 %v8646_v4  ;;  %v8670_v17 = vld [vmem:[%s11148_s2 + $0x258] sm:$0xff]  ;;  %v8651_v4 = vld [vmem:[%s11148_s2 + $0x1c0] sm:$0xff] }
 0x220   : > { %6274 = vmatmul.bf16.gmra.mxu1 %v7763_v19  ;;  %6549 = vmatpush.bf16.msra.mxu3 %v8654_v5  ;;  %v7779_v19 = vor.u32 %v8527_v13, %v7776_v14  ;;  %v8575_v13 = vld [vmem:[%s9836_s13 + $0x2dc] sm:$0xf0]  ;;  %v8568_v14 = vld [vmem:[%s9836_s13 + $0x2ac] sm:$0xf] }
 0x221   : > { %6598 = vmatpush.bf16.msra.mxu0 %v8662_v6  ;;  %6647 = vmatpush.bf16.msra.mxu1 %v8670_v17  ;;  %v8576_v17 = vld [vmem:[%s9836_s13 + $0x2e4] sm:$0xf0]  ;;  %v7935_v23 = vor.u32 %v8575_v13, %v7934_v12  ;;  %v8697_v12 = vld [vmem:[%s11148_s2 + $0x330] sm:$0xff]  ;;  %v8486_v13 = vld [vmem:[%s9836_s13 + $0x1c] sm:$0xf] }
 0x223   : > { %6501 = vmatpush.bf16.msra.mxu2 %v8645_v20 }
 0x224   : > { %6550 = vmatpush.bf16.msra.mxu3 %v8653_v21 }
 0x225   : > { %6599 = vmatpush.bf16.msra.mxu0 %v8661_v22 }
 0x227   : > { %6502 = vmatpush.bf16.msra.mxu2 %v8644_v39 }
 0x228   : > { %6551 = vmatpush.bf16.msra.mxu3 %v8652_v40  ;;  %v7990_v40 = vld [vmem:[%s9836_s13 + $0x318] sm:$0xf] }
 0x229   : > { %6600 = vmatpush.bf16.msra.mxu0 %v8660_v47  ;;  %v7998_v47 = vld [vmem:[%s9836_s13 + $0x320] sm:$0xf] }
 0x22c   : > { %6552 = vmatpush.bf16.msra.mxu3 %v8651_v4 }
 0x22d   : > { %6601 = vmatpush.bf16.msra.mxu0 %v8659_v11  ;;  %v8493_v11 = vld [vmem:[%s9836_s13 + $0x4c] sm:$0xf0] }
 0x22e   : > { %6308 = vmatmul.bf16.vlgmr.msrb.gmra.mxu2 %v7599_v32  ;;  %6406 = vmatmul.bf16.vlgmr.msrb.gmra.mxu0 %v7607_v34  ;;  %v7827_v32 = vor.u32 %v8540_v25, %v7824_v26  ;;  %v7831_v34 = vor.u32 %v8548_v28, %v7830_v27  ;;  %v8667_v25 = vld [vmem:[%s11148_s2 + $0x240] sm:$0xff] }
 0x22f   : > { %6357 = vmatmul.bf16.vlgmr.msrb.gmra.mxu3 %v7603_v33  ;;  %v8669_v33 = vld [vmem:[%s11148_s2 + $0x250] sm:$0xff] }
 0x230   : > { %6455 = vmatmul.bf16.vlgmr.msrb.gmra.mxu1 %v7611_v35  ;;  %v7835_v35 = vor.u32 %v8541_v29, %v7832_v30 }
 0x231   : > { %6648 = vmatpush.bf16.msra.mxu1 %v8669_v33 }
 0x235   : > { %6649 = vmatpush.bf16.msra.mxu1 %v8668_v61 }
 0x239   : > { %6650 = vmatpush.bf16.msra.mxu1 %v8667_v25 }
 0x23e   : > { %6313 = vmatmul.bf16.gmra.mxu2 %v7655_v48  ;;  %6411 = vmatmul.bf16.gmra.mxu0 %v7663_v50  ;;  %v7878_v48 = vld [vmem:[%s9836_s13 + $0x238] sm:$0xf]  ;;  %v8554_v50 = vld [vmem:[%s9836_s13 + $0x23c] sm:$0xf] }
 0x23f   : > { %6362 = vmatmul.bf16.gmra.mxu3 %v7659_v49  ;;  %v8561_v49 = vld [vmem:[%s9836_s13 + $0x26c] sm:$0xf0] }
 0x240   : > { %6460 = vmatmul.bf16.gmra.mxu1 %v7667_v51  ;;  %v7880_v51 = vld [vmem:[%s9836_s13 + $0x270] sm:$0xf0]  ;;  %v7879_v59 = vor.u32 %v8561_v49, %v7878_v48  ;;  %v8590_v48 = vld [vmem:[%s9836_s13 + $0x354] sm:$0xf0]  ;;  %v8583_v49 = vld [vmem:[%s9836_s13 + $0x324] sm:$0xf] }
 0x241   : > { %v7883_v60 = vor.u32 %v8554_v50, %v7880_v51  ;;  %v8000_v50 = vld [vmem:[%s9836_s13 + $0x358] sm:$0xf0] }
 0x24e   : > { %6318 = vmatmul.bf16.gmra.mxu2 %v7711_v0  ;;  %6416 = vmatmul.bf16.gmra.mxu0 %v7719_v2 }
 0x24f   : > { %6367 = vmatmul.bf16.gmra.mxu3 %v7715_v1 }
 0x250   : > { %6465 = vmatmul.bf16.gmra.mxu1 %v7723_v3  ;;  %v8643_v3 = vld [vmem:[%s11148_s2 + $0x180] sm:$0xff] }
 0x251   : > { %6503 = vmatpush.bf16.msra.mxu2 %v8643_v3 }
 0x25e   : > { %6323 = vmatmul.bf16.gmra.mxu2 %v7767_v15  ;;  %6421 = vmatmul.bf16.gmra.mxu0 %v7775_v18  ;;  %v7936_v15 = vld [vmem:[%s9836_s13 + $0x2e0] sm:$0xf0]  ;;  %v8569_v18 = vld [vmem:[%s9836_s13 + $0x2b4] sm:$0xf] }
 0x25f   : > { %6372 = vmatmul.bf16.gmra.mxu3 %v7771_v16  ;;  %v7942_v16 = vld [vmem:[%s9836_s13 + $0x2b0] sm:$0xf]  ;;  %v7939_v24 = vor.u32 %v8568_v14, %v7936_v15  ;;  %v7616_v14 = vld [vmem:[%s9836_s13 + $0x50] sm:$0xf0]  ;;  %v7622_v15 = vld [vmem:[%s9836_s13 + $0x20] sm:$0xf] }
 0x260   : > { %6470 = vmatmul.bf16.gmra.mxu1 %v7779_v19  ;;  %v7944_v19 = vld [vmem:[%s9836_s13 + $0x2e8] sm:$0xf0]  ;;  %v7943_v26 = vor.u32 %v8576_v17, %v7942_v16  ;;  %v8494_v16 = vld [vmem:[%s9836_s13 + $0x54] sm:$0xf0]  ;;  %v8487_v17 = vld [vmem:[%s9836_s13 + $0x24] sm:$0xf] }
 0x261   : > { %v7947_v27 = vor.u32 %v8569_v18, %v7944_v19  ;;  %v7624_v18 = vld [vmem:[%s9836_s13 + $0x58] sm:$0xf0]  ;;  %v7623_v25 = vor.u32 %v8494_v16, %v7622_v15 }
 0x26b   : > { %v6211_v36 = vpop.f32.mrf.mxu0 }
 0x26d   : > { %v6260_v37 = vpop.f32.mrf.mxu1 }
 0x26e   : > { %v10084_v38 = vadd.f32 %v6260_v37, %v6211_v36  ;;  %6328 = vmatmul.bf16.gmra.mxu2 %v7823_v31  ;;  %6426 = vmatmul.bf16.gmra.mxu0 %v7831_v34  ;;  %v8682_v31 = vld [vmem:[%s11148_s2 + $0x2b8] sm:$0xff] }
 0x26f   : > { %6377 = vmatmul.bf16.gmra.mxu3 %v7827_v32  ;;  %v8690_v32 = vld [vmem:[%s11148_s2 + $0x2f8] sm:$0xff]  ;;  %6692 = vmatpush.bf16.msrb.mxu2 %v8682_v31  ;;  %v8688_v31 = vld [vmem:[%s11148_s2 + $0x2e8] sm:$0xff] }
 0x270   : > { %6475 = vmatmul.bf16.gmra.mxu1 %v7835_v35  ;;  %6741 = vmatpush.bf16.msrb.mxu3 %v8690_v32 }
 0x271   : > { %v6231_v41 = vpop.f32.mrf.mxu2 }
 0x272   : > { %v6280_v42 = vpop.f32.mrf.mxu3 }
 0x273   : > { %v10092_v43 = vadd.f32 %v6280_v42, %v6231_v41  ;;  %v6213_v44 = vpop.f32.mrf.mxu0  ;;  %v8589_v41 = vld [vmem:[%s9836_s13 + $0x34c] sm:$0xf0]  ;;  %v8698_v42 = vld [vmem:[%s11148_s2 + $0x338] sm:$0xff] }
 0x274   : > { %6790 = vmatpush.bf16.msrb.mxu0 %v8698_v42  ;;  %v7991_v54 = vor.u32 %v8589_v41, %v7990_v40  ;;  %v7670_v42 = vld [vmem:[%s9836_s13 + $0x88] sm:$0xf] }
 0x275   : > { %v6262_v45 = vpop.f32.mrf.mxu1 }
 0x276   : > { %v10094_v46 = vadd.f32 %v6262_v45, %v6213_v44  ;;  %v8582_v44 = vld [vmem:[%s9836_s13 + $0x31c] sm:$0xf]  ;;  %v7992_v45 = vld [vmem:[%s9836_s13 + $0x350] sm:$0xf0] }
 0x277   : > { %v7995_v55 = vor.u32 %v8582_v44, %v7992_v45  ;;  %v8507_v44 = vld [vmem:[%s9836_s13 + $0xbc] sm:$0xf0]  ;;  %v8696_v45 = vld [vmem:[%s11148_s2 + $0x328] sm:$0xff] }
 0x278   : > { %6791 = vmatpush.bf16.msrb.mxu0 %v8697_v12 }
 0x279   : > { %v6233_v56 = vpop.f32.mrf.mxu2 }
 0x27a   : > { %v6282_v57 = vpop.f32.mrf.mxu3 }
 0x27b   : > { %v10107_v58 = vadd.f32 %v6282_v57, %v6233_v56  ;;  %v6216_v0 = vpop.f32.mrf.mxu0  ;;  %v7999_v56 = vor.u32 %v8590_v48, %v7998_v47  ;;  %v8003_v57 = vor.u32 %v8583_v49, %v8000_v50  ;;  %v8500_v47 = vld [vmem:[%s9836_s13 + $0x8c] sm:$0xf]  ;;  %v7672_v48 = vld [vmem:[%s9836_s13 + $0xc0] sm:$0xf0]  ;;  %v7678_v49 = vld [vmem:[%s9836_s13 + $0x90] sm:$0xf] }
 0x27c   : > { %v8508_v50 = vld [vmem:[%s9836_s13 + $0xc4] sm:$0xf0]  ;;  %6792 = vmatpush.bf16.msrb.mxu0 %v8696_v45  ;;  %v8678_v45 = vld [vmem:[%s11148_s2 + $0x298] sm:$0xff] }
 0x27d   : > { %v6265_v1 = vpop.f32.mrf.mxu1 }
 0x27e   : > { %v10112_v2 = vadd.f32 %v6265_v1, %v6216_v0  ;;  %6333 = vmatmul.bf16.gmra.mxu2 %v7879_v59  ;;  %6431 = vmatmul.bf16.gmra.mxu0 %v7887_v62  ;;  %v8702_v62 = vld [vmem:[%s11148_s2 + $0x358] sm:$0xff]  ;;  %v8689_v0 = vld [vmem:[%s11148_s2 + $0x2f0] sm:$0xff] }
 0x27f   : > { %6382 = vmatmul.bf16.gmra.mxu3 %v7883_v60  ;;  %6843 = vmatpush.bf16.msrb.mxu1 %v8702_v62 }
 0x280   : > { %6480 = vmatmul.bf16.gmra.mxu1 %v7891_v63  ;;  %v8681_v63 = vld [vmem:[%s11148_s2 + $0x2b0] sm:$0xff]  ;;  %6742 = vmatpush.bf16.msrb.mxu3 %v8689_v0 }
 0x281   : > { %v6236_v5 = vpop.f32.mrf.mxu2  ;;  %6693 = vmatpush.bf16.msrb.mxu2 %v8681_v63 }
 0x282   : > { %v6285_v6 = vpop.f32.mrf.mxu3 }
 0x283   : > { %v10120_v7 = vadd.f32 %v6285_v6, %v6236_v5  ;;  %v6218_v8 = vpop.f32.mrf.mxu0 }
 0x284   : > { %6743 = vmatpush.bf16.msrb.mxu3 %v8688_v31 }
 0x285   : > { %v6267_v9 = vpop.f32.mrf.mxu1 }
 0x286   : > { %v10122_v10 = vadd.f32 %v6267_v9, %v6218_v8  ;;  %v7614_v9 = vld [vmem:[%s9836_s13 + $0x18] sm:$0xf] }
 0x289   : > { %v6238_v20 = vpop.f32.mrf.mxu2 }
 0x28a   : > { %v6287_v21 = vpop.f32.mrf.mxu3 }
 0x28b   : > { %v10135_v22 = vadd.f32 %v6287_v21, %v6238_v20  ;;  %v6221_v28 = vpop.f32.mrf.mxu0 }
 0x28d   : > { %v6270_v29 = vpop.f32.mrf.mxu1 }
 0x28e   : > { %v10140_v30 = vadd.f32 %v6270_v29, %v6221_v28  ;;  %6338 = vmatmul.bf16.gmra.mxu2 %v7935_v23  ;;  %6436 = vmatmul.bf16.gmra.mxu0 %v7943_v26  ;;  %v7615_v23 = vor.u32 %v8493_v11, %v7614_v9  ;;  %v7627_v26 = vor.u32 %v8487_v17, %v7624_v18  ;;  %v8680_v29 = vld [vmem:[%s11148_s2 + $0x2a8] sm:$0xff]  ;;  %v7726_v18 = vld [vmem:[%s9836_s13 + $0xf8] sm:$0xf] }
 0x28f   : > { %6387 = vmatmul.bf16.gmra.mxu3 %v7939_v24  ;;  %v7619_v24 = vor.u32 %v8486_v13, %v7616_v14  ;;  %6694 = vmatpush.bf16.msrb.mxu2 %v8680_v29 }
 0x290   : > { %6485 = vmatmul.bf16.gmra.mxu1 %v7947_v27 }
 0x291   : > { %v6241_v33 = vpop.f32.mrf.mxu2 }
 0x292   : > { %v6290_v34 = vpop.f32.mrf.mxu3 }
 0x293   : > { %v10148_v35 = vadd.f32 %v6290_v34, %v6241_v33  ;;  %v6223_v36 = vpop.f32.mrf.mxu0 }
 0x295   : > { %v6272_v37 = vpop.f32.mrf.mxu1 }
 0x296   : > { %v10150_v39 = vadd.f32 %v6272_v37, %v6223_v36 }
 0x299   : > { %v6243_v51 = vpop.f32.mrf.mxu2 }
 0x29a   : > { %v6292_v52 = vpop.f32.mrf.mxu3 }
 0x29b   : > { %v10163_v53 = vadd.f32 %v6292_v52, %v6243_v51  ;;  %v6226_v59 = vpop.f32.mrf.mxu0  ;;  %v8501_v51 = vld [vmem:[%s9836_s13 + $0x94] sm:$0xf]  ;;  %v7680_v52 = vld [vmem:[%s9836_s13 + $0xc8] sm:$0xf0] }
 0x29c   : > { %v7683_v62 = vor.u32 %v8501_v51, %v7680_v52 }
 0x29d   : > { %v6275_v60 = vpop.f32.mrf.mxu1 }
 0x29e   : > { %v10165_v61 = vadd.f32 %v6275_v60, %v6226_v59  ;;  %6343 = vmatmul.bf16.gmra.mxu2 %v7991_v54  ;;  %6441 = vmatmul.bf16.gmra.mxu0 %v7999_v56  ;;  %v7675_v59 = vor.u32 %v8500_v47, %v7672_v48  ;;  %v7679_v60 = vor.u32 %v8508_v50, %v7678_v49 }
 0x29f   : > { %6392 = vmatmul.bf16.gmra.mxu3 %v7995_v55 }
 0x2a0   : > { %6490 = vmatmul.bf16.gmra.mxu1 %v8003_v57  ;;  %v7671_v57 = vor.u32 %v8507_v44, %v7670_v42 }
 0x2a1   : > { %v6246_v1 = vpop.f32.mrf.mxu2 }
 0x2a2   : > { %v6295_v3 = vpop.f32.mrf.mxu3 }
 0x2a3   : > { %v10176_v4 = vadd.f32 %v6295_v3, %v6246_v1  ;;  %v6228_v5 = vpop.f32.mrf.mxu0 }
 0x2a5   : > { %v6277_v6 = vpop.f32.mrf.mxu1 }
 0x2a6   : > { %v10178_v8 = vadd.f32 %v6277_v6, %v6228_v5  ;;  %v8701_v5 = vld [vmem:[%s11148_s2 + $0x350] sm:$0xff]  ;;  %v8679_v6 = vld [vmem:[%s11148_s2 + $0x2a0] sm:$0xff] }
 0x2a7   : > { %6844 = vmatpush.bf16.msrb.mxu1 %v8701_v5  ;;  %6695 = vmatpush.bf16.msrb.mxu2 %v8679_v6 }
 0x2a9   : > { %v6248_v19 = vpop.f32.mrf.mxu2 }
 0x2aa   : > { %v6297_v20 = vpop.f32.mrf.mxu3 }
 0x2ab   : > { %v10191_v21 = vadd.f32 %v6297_v20, %v6248_v19  ;;  %v6407_v27 = vpop.f32.mrf.mxu0  ;;  %v8521_v19 = vld [vmem:[%s9836_s13 + $0x12c] sm:$0xf0]  ;;  %v8695_v20 = vld [vmem:[%s11148_s2 + $0x320] sm:$0xff]  ;;  %6696 = vmatpush.bf16.msrb.mxu2 %v8678_v45 }
 0x2ac   : > { %6793 = vmatpush.bf16.msrb.mxu0 %v8695_v20  ;;  %v8677_v20 = vld [vmem:[%s11148_s2 + $0x290] sm:$0xff] }
 0x2ad   : > { %v6456_v28 = vpop.f32.mrf.mxu1 }
 0x2ae   : > { %6504 = vmatmul.bf16.vlgmr.msra.gmra.mxu2 %v7615_v23  ;;  %6602 = vmatmul.bf16.vlgmr.msra.gmra.mxu0 %v7623_v25  ;;  %v8514_v23 = vld [vmem:[%s9836_s13 + $0xfc] sm:$0xf]  ;;  %v7734_v25 = vld [vmem:[%s9836_s13 + $0x100] sm:$0xf] }
 0x2af   : > { %6553 = vmatmul.bf16.vlgmr.msra.gmra.mxu3 %v7619_v24  ;;  %v7728_v24 = vld [vmem:[%s9836_s13 + $0x130] sm:$0xf0]  ;;  %6697 = vmatpush.bf16.msrb.mxu2 %v8677_v20 }
 0x2b0   : > { %6651 = vmatmul.bf16.vlgmr.msra.gmra.mxu1 %v7627_v26  ;;  %v8522_v26 = vld [vmem:[%s9836_s13 + $0x134] sm:$0xf0] }
 0x2b1   : > { %v6309_v32 = vpop.f32.mrf.mxu2 }
 0x2b2   : > { %v6358_v33 = vpop.f32.mrf.mxu3  ;;  %v6310_v34 = vadd.f32 %v6309_v32, %v10084_v38 }
 0x2b3   : > { %v6409_v37 = vpop.f32.mrf.mxu0 }
 0x2b4   : > { %v6359_v36 = vadd.f32 %v6358_v33, %v6310_v34  ;;  %v7727_v33 = vor.u32 %v8521_v19, %v7726_v18  ;;  %v7731_v34 = vor.u32 %v8514_v23, %v7728_v24  ;;  %v8700_v19 = vld [vmem:[%s11148_s2 + $0x348] sm:$0xff] }
 0x2b5   : > { %v6458_v40 = vpop.f32.mrf.mxu1  ;;  %6845 = vmatpush.bf16.msrb.mxu1 %v8700_v19 }
 0x2b6   : > { %v6408_v41 = vadd.f32 %v6407_v27, %v6359_v36  ;;  %v8515_v27 = vld [vmem:[%s9836_s13 + $0x104] sm:$0xf]  ;;  %v7735_v36 = vor.u32 %v8522_v26, %v7734_v25 }
 0x2b8   : > { %v10211_v54 = vadd.f32 %v6456_v28, %v6408_v41  ;;  %v7736_v28 = vld [vmem:[%s9836_s13 + $0x138] sm:$0xf0] }
 0x2b9   : > { %v6311_v38 = vpop.f32.mrf.mxu2 }
 0x2ba   : > { %v6360_v55 = vpop.f32.mrf.mxu3  ;;  %v6312_v56 = vadd.f32 %v6311_v38, %v10094_v46  ;;  %v8687_v46 = vld [vmem:[%s11148_s2 + $0x2e0] sm:$0xff] }
 0x2bb   : > { %v6412_v0 = vpop.f32.mrf.mxu0  ;;  %6744 = vmatpush.bf16.msrb.mxu3 %v8687_v46 }
 0x2bc   : > { %v6361_v63 = vadd.f32 %v6360_v55, %v6312_v56  ;;  %v7782_v56 = vld [vmem:[%s9836_s13 + $0x168] sm:$0xf] }
 0x2bd   : > { %v6461_v1 = vpop.f32.mrf.mxu1 }
 0x2be   : > { %v6410_v3 = vadd.f32 %v6409_v37, %v6361_v63  ;;  %6509 = vmatmul.bf16.gmra.mxu2 %v7671_v57  ;;  %6607 = vmatmul.bf16.gmra.mxu0 %v7679_v60  ;;  %v7739_v37 = vor.u32 %v8515_v27, %v7736_v28  ;;  %v8535_v57 = vld [vmem:[%s9836_s13 + $0x19c] sm:$0xf0]  ;;  %v8528_v60 = vld [vmem:[%s9836_s13 + $0x16c] sm:$0xf]  ;;  %v7790_v63 = vld [vmem:[%s9836_s13 + $0x170] sm:$0xf] }
 0x2bf   : > { %6558 = vmatmul.bf16.gmra.mxu3 %v7675_v59  ;;  %v8694_v59 = vld [vmem:[%s11148_s2 + $0x318] sm:$0xff] }
 0x2c0   : > { %6656 = vmatmul.bf16.gmra.mxu1 %v7683_v62  ;;  %v10223_v9 = vadd.f32 %v6458_v40, %v6410_v3  ;;  %v7784_v62 = vld [vmem:[%s9836_s13 + $0x1a0] sm:$0xf0]  ;;  %v7792_v3 = vld [vmem:[%s9836_s13 + $0x1a8] sm:$0xf0]  ;;  %6794 = vmatpush.bf16.msrb.mxu0 %v8694_v59 }
 0x2c1   : > { %v6314_v11 = vpop.f32.mrf.mxu2  ;;  %v8676_v59 = vld [vmem:[%s11148_s2 + $0x288] sm:$0xff] }
 0x2c2   : > { %v6363_v12 = vpop.f32.mrf.mxu3  ;;  %v6315_v13 = vadd.f32 %v6314_v11, %v10112_v2  ;;  %v7783_v11 = vor.u32 %v8535_v57, %v7782_v56  ;;  %6698 = vmatpush.bf16.msrb.mxu2 %v8676_v59 }
 0x2c3   : > { %v6414_v15 = vpop.f32.mrf.mxu0 }
 0x2c4   : > { %v6364_v14 = vadd.f32 %v6363_v12, %v6315_v13  ;;  %v7787_v12 = vor.u32 %v8528_v60, %v7784_v62 }
 0x2c5   : > { %v6463_v16 = vpop.f32.mrf.mxu1 }
 0x2c6   : > { %v6413_v17 = vadd.f32 %v6412_v0, %v6364_v14  ;;  %v8536_v0 = vld [vmem:[%s9836_s13 + $0x1a4] sm:$0xf0] }
 0x2c7   : > { %v7791_v13 = vor.u32 %v8536_v0, %v7790_v63 }
 0x2c8   : > { %v10237_v29 = vadd.f32 %v6461_v1, %v6413_v17  ;;  %v8529_v1 = vld [vmem:[%s9836_s13 + $0x174] sm:$0xf] }
 0x2c9   : > { %v6316_v2 = vpop.f32.mrf.mxu2  ;;  %v7795_v14 = vor.u32 %v8529_v1, %v7792_v3 }
 0x2ca   : > { %v6365_v31 = vpop.f32.mrf.mxu3  ;;  %v6317_v32 = vadd.f32 %v6316_v2, %v10122_v10  ;;  %v8686_v10 = vld [vmem:[%s11148_s2 + $0x2d8] sm:$0xff] }
 0x2cb   : > { %v6417_v41 = vpop.f32.mrf.mxu0  ;;  %6745 = vmatpush.bf16.msrb.mxu3 %v8686_v10 }
 0x2cc   : > { %v6366_v40 = vadd.f32 %v6365_v31, %v6317_v32  ;;  %v7838_v32 = vld [vmem:[%s9836_s13 + $0x1d8] sm:$0xf] }
 0x2cd   : > { %v6466_v42 = vpop.f32.mrf.mxu1 }
 0x2ce   : > { %v6415_v44 = vadd.f32 %v6414_v15, %v6366_v40  ;;  %6514 = vmatmul.bf16.gmra.mxu2 %v7727_v33  ;;  %6612 = vmatmul.bf16.gmra.mxu0 %v7735_v36  ;;  %v8549_v33 = vld [vmem:[%s9836_s13 + $0x20c] sm:$0xf0]  ;;  %v8542_v36 = vld [vmem:[%s9836_s13 + $0x1dc] sm:$0xf]  ;;  %v7846_v40 = vld [vmem:[%s9836_s13 + $0x1e0] sm:$0xf] }
 0x2cf   : > { %6563 = vmatmul.bf16.gmra.mxu3 %v7731_v34  ;;  %v8693_v34 = vld [vmem:[%s11148_s2 + $0x310] sm:$0xff] }
 0x2d0   : > { %6661 = vmatmul.bf16.gmra.mxu1 %v7739_v37  ;;  %v10246_v47 = vadd.f32 %v6463_v16, %v6415_v44  ;;  %v7840_v37 = vld [vmem:[%s9836_s13 + $0x210] sm:$0xf0]  ;;  %v7848_v44 = vld [vmem:[%s9836_s13 + $0x218] sm:$0xf0]  ;;  %6795 = vmatpush.bf16.msrb.mxu0 %v8693_v34  ;;  %v8675_v34 = vld [vmem:[%s11148_s2 + $0x280] sm:$0xff] }
 0x2d1   : > { %v6319_v48 = vpop.f32.mrf.mxu2  ;;  %6699 = vmatpush.bf16.msrb.mxu2 %v8675_v34 }
 0x2d2   : > { %v6368_v49 = vpop.f32.mrf.mxu3  ;;  %v6320_v50 = vadd.f32 %v6319_v48, %v10140_v30 }
 0x2d3   : > { %v6419_v52 = vpop.f32.mrf.mxu0 }
 0x2d4   : > { %v6369_v51 = vadd.f32 %v6368_v49, %v6320_v50  ;;  %v7839_v49 = vor.u32 %v8549_v33, %v7838_v32  ;;  %v7843_v50 = vor.u32 %v8542_v36, %v7840_v37  ;;  %v8699_v33 = vld [vmem:[%s11148_s2 + $0x340] sm:$0xff] }
 0x2d5   : > { %v6468_v38 = vpop.f32.mrf.mxu1  ;;  %6846 = vmatpush.bf16.msrb.mxu1 %v8699_v33 }
 0x2d6   : > { %v6418_v55 = vadd.f32 %v6417_v41, %v6369_v51  ;;  %v8550_v41 = vld [vmem:[%s9836_s13 + $0x214] sm:$0xf0] }
 0x2d7   : > { %v7847_v51 = vor.u32 %v8550_v41, %v7846_v40 }
 0x2d8   : > { %v10260_v5 = vadd.f32 %v6466_v42, %v6418_v55  ;;  %v8543_v42 = vld [vmem:[%s9836_s13 + $0x1e4] sm:$0xf] }
 0x2d9   : > { %v6321_v30 = vpop.f32.mrf.mxu2 }
 0x2da   : > { %v6370_v6 = vpop.f32.mrf.mxu3  ;;  %v6322_v46 = vadd.f32 %v6321_v30, %v10150_v39  ;;  %v8685_v39 = vld [vmem:[%s11148_s2 + $0x2d0] sm:$0xff] }
 0x2db   : > { %v6422_v16 = vpop.f32.mrf.mxu0  ;;  %6746 = vmatpush.bf16.msrb.mxu3 %v8685_v39 }
 0x2dc   : > { %v6371_v15 = vadd.f32 %v6370_v6, %v6322_v46  ;;  %v7894_v46 = vld [vmem:[%s9836_s13 + $0x248] sm:$0xf] }
 0x2dd   : > { %v6471_v17 = vpop.f32.mrf.mxu1 }
 0x2de   : > { %v6420_v18 = vadd.f32 %v6419_v52, %v6371_v15  ;;  %6519 = vmatmul.bf16.gmra.mxu2 %v7783_v11  ;;  %6617 = vmatmul.bf16.gmra.mxu0 %v7791_v13  ;;  %v7851_v52 = vor.u32 %v8543_v42, %v7848_v44  ;;  %v8563_v11 = vld [vmem:[%s9836_s13 + $0x27c] sm:$0xf0]  ;;  %v8556_v13 = vld [vmem:[%s9836_s13 + $0x24c] sm:$0xf]  ;;  %v7902_v15 = vld [vmem:[%s9836_s13 + $0x250] sm:$0xf] }
 0x2df   : > { %6568 = vmatmul.bf16.gmra.mxu3 %v7787_v12  ;;  %v8692_v12 = vld [vmem:[%s11148_s2 + $0x308] sm:$0xff] }
 0x2e0   : > { %6666 = vmatmul.bf16.gmra.mxu1 %v7795_v14  ;;  %v10272_v23 = vadd.f32 %v6468_v38, %v6420_v18  ;;  %v7896_v14 = vld [vmem:[%s9836_s13 + $0x280] sm:$0xf0]  ;;  %v7904_v18 = vld [vmem:[%s9836_s13 + $0x288] sm:$0xf0]  ;;  %6796 = vmatpush.bf16.msrb.mxu0 %v8692_v12 }
 0x2e1   : > { %v6324_v24 = vpop.f32.mrf.mxu2 }
 0x2e2   : > { %v6373_v25 = vpop.f32.mrf.mxu3  ;;  %v6325_v26 = vadd.f32 %v6324_v24, %v10165_v61  ;;  %v7895_v24 = vor.u32 %v8563_v11, %v7894_v46 }
 0x2e3   : > { %v6424_v28 = vpop.f32.mrf.mxu0 }
 0x2e4   : > { %v6374_v27 = vadd.f32 %v6373_v25, %v6325_v26  ;;  %v7899_v25 = vor.u32 %v8556_v13, %v7896_v14 }
 0x2e5   : > { %v6473_v2 = vpop.f32.mrf.mxu1 }
 0x2e6   : > { %v6423_v31 = vadd.f32 %v6422_v16, %v6374_v27  ;;  %v8564_v16 = vld [vmem:[%s9836_s13 + $0x284] sm:$0xf0] }
 0x2e7   : > { %v7903_v26 = vor.u32 %v8564_v16, %v7902_v15 }
 0x2e8   : > { %v10286_v45 = vadd.f32 %v6471_v17, %v6423_v31  ;;  %v8557_v17 = vld [vmem:[%s9836_s13 + $0x254] sm:$0xf] }
 0x2e9   : > { %v6326_v61 = vpop.f32.mrf.mxu2  ;;  %v7907_v27 = vor.u32 %v8557_v17, %v7904_v18 }
 0x2ea   : > { %v6375_v10 = vpop.f32.mrf.mxu3  ;;  %v6327_v48 = vadd.f32 %v6326_v61, %v10178_v8  ;;  %v8684_v8 = vld [vmem:[%s11148_s2 + $0x2c8] sm:$0xff] }
 0x2eb   : > { %v6427_v55 = vpop.f32.mrf.mxu0  ;;  %6747 = vmatpush.bf16.msrb.mxu3 %v8684_v8 }
 0x2ec   : > { %v6376_v38 = vadd.f32 %v6375_v10, %v6327_v48  ;;  %v7950_v48 = vld [vmem:[%s9836_s13 + $0x2b8] sm:$0xf] }
 0x2ed   : > { %v6476_v56 = vpop.f32.mrf.mxu1 }
 0x2ee   : > { %v6425_v57 = vadd.f32 %v6424_v28, %v6376_v38  ;;  %6524 = vmatmul.bf16.gmra.mxu2 %v7839_v49  ;;  %6622 = vmatmul.bf16.gmra.mxu0 %v7847_v51  ;;  %v8577_v49 = vld [vmem:[%s9836_s13 + $0x2ec] sm:$0xf0]  ;;  %v8570_v51 = vld [vmem:[%s9836_s13 + $0x2bc] sm:$0xf]  ;;  %v7958_v38 = vld [vmem:[%s9836_s13 + $0x2c0] sm:$0xf] }
 0x2ef   : > { %6573 = vmatmul.bf16.gmra.mxu3 %v7843_v50  ;;  %v8691_v50 = vld [vmem:[%s11148_s2 + $0x300] sm:$0xff] }
 0x2f0   : > { %6671 = vmatmul.bf16.gmra.mxu1 %v7851_v52  ;;  %v10295_v60 = vadd.f32 %v6473_v2, %v6425_v57  ;;  %v7952_v52 = vld [vmem:[%s9836_s13 + $0x2f0] sm:$0xf0]  ;;  %v7960_v57 = vld [vmem:[%s9836_s13 + $0x2f8] sm:$0xf0]  ;;  %6797 = vmatpush.bf16.msrb.mxu0 %v8691_v50 }
 0x2f1   : > { %v6329_v62 = vpop.f32.mrf.mxu2 }
 0x2f2   : > { %v6378_v63 = vpop.f32.mrf.mxu3  ;;  %v6330_v0 = vadd.f32 %v6329_v62, %v10092_v43 }
 0x2f3   : > { %v6429_v3 = vpop.f32.mrf.mxu0 }
 0x2f4   : > { %v6379_v1 = vadd.f32 %v6378_v63, %v6330_v0  ;;  %v7951_v63 = vor.u32 %v8577_v49, %v7950_v48  ;;  %v7955_v0 = vor.u32 %v8570_v51, %v7952_v52 }
 0x2f5   : > { %v6478_v30 = vpop.f32.mrf.mxu1 }
 0x2f6   : > { %v6428_v6 = vadd.f32 %v6427_v55, %v6379_v1  ;;  %v8578_v55 = vld [vmem:[%s9836_s13 + $0x2f4] sm:$0xf0] }
 0x2f7   : > { %v7959_v1 = vor.u32 %v8578_v55, %v7958_v38  ;;  %v7630_v38 = vld [vmem:[%s9836_s13 + $0x28] sm:$0xf]  ;;  %v8495_v55 = vld [vmem:[%s9836_s13 + $0x5c] sm:$0xf0] }
 0x2f8   : > { %v10309_v19 = vadd.f32 %v6476_v56, %v6428_v6  ;;  %v8571_v56 = vld [vmem:[%s9836_s13 + $0x2c4] sm:$0xf] }
 0x2f9   : > { %v6331_v43 = vpop.f32.mrf.mxu2 }
 0x2fa   : > { %v6380_v20 = vpop.f32.mrf.mxu3  ;;  %v6332_v39 = vadd.f32 %v6331_v43, %v10107_v58  ;;  %v8683_v58 = vld [vmem:[%s11148_s2 + $0x2c0] sm:$0xff]  ;;  %v8006_v43 = vld [vmem:[%s9836_s13 + $0x328] sm:$0xf] }
 0x2fb   : > { %v6432_v2 = vpop.f32.mrf.mxu0  ;;  %6748 = vmatpush.bf16.msrb.mxu3 %v8683_v58 }
 0x2fc   : > { %v6381_v28 = vadd.f32 %v6380_v20, %v6332_v39  ;;  %v8591_v20 = vld [vmem:[%s9836_s13 + $0x35c] sm:$0xf0]  ;;  %v8584_v39 = vld [vmem:[%s9836_s13 + $0x32c] sm:$0xf] }
 0x2fd   : > { %v6481_v31 = vpop.f32.mrf.mxu1  ;;  %v8007_v34 = vor.u32 %v8591_v20, %v8006_v43 }
 0x2fe   : > { %v6430_v32 = vadd.f32 %v6429_v3, %v6381_v28  ;;  %6529 = vmatmul.bf16.gmra.mxu2 %v7895_v24  ;;  %6627 = vmatmul.bf16.gmra.mxu0 %v7903_v26  ;;  %v7963_v3 = vor.u32 %v8571_v56, %v7960_v57  ;;  %v8008_v24 = vld [vmem:[%s9836_s13 + $0x360] sm:$0xf0]  ;;  %v8592_v26 = vld [vmem:[%s9836_s13 + $0x364] sm:$0xf0]  ;;  %v8016_v28 = vld [vmem:[%s9836_s13 + $0x368] sm:$0xf0] }
 0x2ff   : > { %6578 = vmatmul.bf16.gmra.mxu3 %v7899_v25  ;;  %v8014_v25 = vld [vmem:[%s9836_s13 + $0x330] sm:$0xf]  ;;  %v8488_v56 = vld [vmem:[%s9836_s13 + $0x2c] sm:$0xf]  ;;  %v7632_v57 = vld [vmem:[%s9836_s13 + $0x60] sm:$0xf0] }
 0x300   : > { %6676 = vmatmul.bf16.gmra.mxu1 %v7907_v27  ;;  %v10321_v36 = vadd.f32 %v6478_v30, %v6430_v32  ;;  %v8585_v27 = vld [vmem:[%s9836_s13 + $0x334] sm:$0xf]  ;;  %v8015_v58 = vor.u32 %v8592_v26, %v8014_v25  ;;  %v7686_v25 = vld [vmem:[%s9836_s13 + $0x98] sm:$0xf]  ;;  %v8509_v26 = vld [vmem:[%s9836_s13 + $0xcc] sm:$0xf0] }
 0x301   : > { %v6334_v37 = vpop.f32.mrf.mxu2 }
 0x302   : > { %v6383_v40 = vpop.f32.mrf.mxu3  ;;  %v6335_v41 = vadd.f32 %v6334_v37, %v10120_v7  ;;  %v8019_v37 = vor.u32 %v8585_v27, %v8016_v28  ;;  %v8502_v27 = vld [vmem:[%s9836_s13 + $0x9c] sm:$0xf]  ;;  %v7688_v28 = vld [vmem:[%s9836_s13 + $0xd0] sm:$0xf0] }
 0x303   : > { %v6434_v44 = vpop.f32.mrf.mxu0 }
 0x304   : > { %v6384_v42 = vadd.f32 %v6383_v40, %v6335_v41 }
 0x305   : > { %v6483_v61 = vpop.f32.mrf.mxu1 }
 0x306   : > { %v6433_v10 = vadd.f32 %v6432_v2, %v6384_v42 }
 0x308   : > { %v10335_v59 = vadd.f32 %v6481_v31, %v6433_v10 }
 0x309   : > { %v6336_v7 = vpop.f32.mrf.mxu2 }
 0x30a   : > { %v6385_v8 = vpop.f32.mrf.mxu3  ;;  %v6337_v62 = vadd.f32 %v6336_v7, %v10135_v22  ;;  %v7638_v7 = vld [vmem:[%s9836_s13 + $0x30] sm:$0xf] }
 0x30b   : > { %v6437_v6 = vpop.f32.mrf.mxu0 }
 0x30c   : > { %v6386_v30 = vadd.f32 %v6385_v8, %v6337_v62  ;;  %v8496_v8 = vld [vmem:[%s9836_s13 + $0x64] sm:$0xf0]  ;;  %v8489_v62 = vld [vmem:[%s9836_s13 + $0x34] sm:$0xf] }
 0x30d   : > { %v6486_v46 = vpop.f32.mrf.mxu1 }
 0x30e   : > { %v6435_v11 = vadd.f32 %v6434_v44, %v6386_v30  ;;  %6534 = vmatmul.bf16.gmra.mxu2 %v7951_v63  ;;  %6632 = vmatmul.bf16.gmra.mxu0 %v7959_v1  ;;  %v7640_v63 = vld [vmem:[%s9836_s13 + $0x68] sm:$0xf0] }
 0x30f   : > { %6583 = vmatmul.bf16.gmra.mxu3 %v7955_v0 }
 0x310   : > { %6681 = vmatmul.bf16.gmra.mxu1 %v7963_v3  ;;  %v10338_v22 = vadd.f32 %v6483_v61, %v6435_v11  ;;  %v7643_v11 = vor.u32 %v8489_v62, %v7640_v63  ;;  %v8516_v62 = vld [vmem:[%s9836_s13 + $0x10c] sm:$0xf]  ;;  %v7744_v63 = vld [vmem:[%s9836_s13 + $0x140] sm:$0xf0] }
 0x311   : > { %v6339_v12 = vpop.f32.mrf.mxu2 }
 0x312   : > { %v6388_v13 = vpop.f32.mrf.mxu3  ;;  %v6340_v14 = vadd.f32 %v6339_v12, %v10148_v35  ;;  %v8011_v35 = vor.u32 %v8584_v39, %v8008_v24 }
 0x313   : > { %v6439_v16 = vpop.f32.mrf.mxu0 }
 0x314   : > { %v6389_v15 = vadd.f32 %v6388_v13, %v6340_v14 }
 0x315   : > { %v6488_v17 = vpop.f32.mrf.mxu1 }
 0x316   : > { %v6438_v18 = vadd.f32 %v6437_v6, %v6389_v15  ;;  %v7631_v6 = vor.u32 %v8495_v55, %v7630_v38 }
 0x318   : > { %v10349_v2 = vadd.f32 %v6486_v46, %v6438_v18  ;;  %v7639_v46 = vor.u32 %v8496_v8, %v7638_v7  ;;  %v7742_v7 = vld [vmem:[%s9836_s13 + $0x108] sm:$0xf]  ;;  %v8523_v8 = vld [vmem:[%s9836_s13 + $0x13c] sm:$0xf0] }
 0x319   : > { %v6341_v31 = vpop.f32.mrf.mxu2 }
 0x31a   : > { %v6390_v32 = vpop.f32.mrf.mxu3  ;;  %v6342_v33 = vadd.f32 %v6341_v31, %v10163_v53  ;;  %v7694_v31 = vld [vmem:[%s9836_s13 + $0xa0] sm:$0xf] }
 0x31b   : > { %v6442_v41 = vpop.f32.mrf.mxu0 }
 0x31c   : > { %v6391_v40 = vadd.f32 %v6390_v32, %v6342_v33  ;;  %v8510_v32 = vld [vmem:[%s9836_s13 + $0xd4] sm:$0xf0]  ;;  %v8503_v33 = vld [vmem:[%s9836_s13 + $0xa4] sm:$0xf] }
 0x31d   : > { %v6491_v42 = vpop.f32.mrf.mxu1 }
 0x31e   : > { %v6440_v44 = vadd.f32 %v6439_v16, %v6391_v40  ;;  %6539 = vmatmul.bf16.gmra.mxu2 %v8007_v34  ;;  %6637 = vmatmul.bf16.gmra.mxu0 %v8015_v58  ;;  %v7696_v34 = vld [vmem:[%s9836_s13 + $0xd8] sm:$0xf0] }
 0x31f   : > { %6588 = vmatmul.bf16.gmra.mxu3 %v8011_v35 }
 0x320   : > { %6686 = vmatmul.bf16.gmra.mxu1 %v8019_v37  ;;  %v10352_v53 = vadd.f32 %v6488_v17, %v6440_v44  ;;  %v7699_v44 = vor.u32 %v8503_v33, %v7696_v34  ;;  %v8530_v33 = vld [vmem:[%s9836_s13 + $0x17c] sm:$0xf]  ;;  %v7800_v34 = vld [vmem:[%s9836_s13 + $0x1b0] sm:$0xf0] }
 0x321   : > { %v6344_v61 = vpop.f32.mrf.mxu2 }
 0x322   : > { %v6393_v10 = vpop.f32.mrf.mxu3  ;;  %v6345_v48 = vadd.f32 %v6344_v61, %v10176_v4  ;;  %v7635_v4 = vor.u32 %v8488_v56, %v7632_v57 }
 0x323   : > { %v6444_v50 = vpop.f32.mrf.mxu0 }
 0x324   : > { %v6394_v49 = vadd.f32 %v6393_v10, %v6345_v48 }
 0x325   : > { %v6493_v51 = vpop.f32.mrf.mxu1 }
 0x326   : > { %v6443_v52 = vadd.f32 %v6442_v41, %v6394_v49  ;;  %v7687_v41 = vor.u32 %v8509_v26, %v7686_v25 }
 0x328   : > { %v10363_v0 = vadd.f32 %v6491_v42, %v6443_v52  ;;  %v7695_v42 = vor.u32 %v8510_v32, %v7694_v31  ;;  %v7798_v31 = vld [vmem:[%s9836_s13 + $0x178] sm:$0xf]  ;;  %v8537_v32 = vld [vmem:[%s9836_s13 + $0x1ac] sm:$0xf0] }
 0x329   : > { %v6346_v1 = vpop.f32.mrf.mxu2 }
 0x32a   : > { %v6395_v3 = vpop.f32.mrf.mxu3  ;;  %v6347_v30 = vadd.f32 %v6346_v1, %v10191_v21  ;;  %v7750_v1 = vld [vmem:[%s9836_s13 + $0x110] sm:$0xf] }
 0x32b   : > { %v6603_v13 = vpop.f32.mrf.mxu0 }
 0x32c   : > { %v6396_v12 = vadd.f32 %v6395_v3, %v6347_v30  ;;  %v8524_v3 = vld [vmem:[%s9836_s13 + $0x144] sm:$0xf0]  ;;  %v8517_v30 = vld [vmem:[%s9836_s13 + $0x114] sm:$0xf] }
 0x32d   : > { %v6652_v14 = vpop.f32.mrf.mxu1 }
 0x32e   : > { %v6445_v15 = vadd.f32 %v6444_v50, %v6396_v12  ;;  %6700 = vmatmul.bf16.vlgmr.msrb.gmra.mxu2 %v7631_v6  ;;  %6798 = vmatmul.bf16.vlgmr.msrb.gmra.mxu0 %v7639_v46  ;;  %v7752_v6 = vld [vmem:[%s9836_s13 + $0x148] sm:$0xf0] }
 0x32f   : > { %6749 = vmatmul.bf16.vlgmr.msrb.gmra.mxu3 %v7635_v4 }
 0x330   : > { %8468 = vmatmul.msk.bf16.vlgmr.msrb.gmra.mxu1 %vm6177_vm0, %v7643_v11  ;;  %v10367_v21 = vadd.f32 %v6493_v51, %v6445_v15  ;;  %v7755_v15 = vor.u32 %v8517_v30, %v7752_v6  ;;  %v8544_v30 = vld [vmem:[%s9836_s13 + $0x1ec] sm:$0xf]  ;;  %v7856_v6 = vld [vmem:[%s9836_s13 + $0x220] sm:$0xf0] }
 0x331   : > { %v6505_v16 = vpop.f32.mrf.mxu2 }
 0x332   : > { %v6554_v17 = vpop.f32.mrf.mxu3  ;;  %v6506_v18 = vadd.f32 %v6505_v16, %v10211_v54  ;;  %v7691_v54 = vor.u32 %v8502_v27, %v7688_v28 }
 0x333   : > { %v6605_v20 = vpop.f32.mrf.mxu0 }
 0x334   : > { %v6555_v43 = vadd.f32 %v6554_v17, %v6506_v18 }
 0x335   : > { %v6654_v39 = vpop.f32.mrf.mxu1 }
 0x336   : > { %v6604_v24 = vadd.f32 %v6603_v13, %v6555_v43  ;;  %v7743_v13 = vor.u32 %v8523_v8, %v7742_v7 }
 0x338   : > { %v10378_v35 = vadd.f32 %v6652_v14, %v6604_v24  ;;  %v7751_v14 = vor.u32 %v8524_v3, %v7750_v1  ;;  %v7854_v1 = vld [vmem:[%s9836_s13 + $0x1e8] sm:$0xf]  ;;  %v8551_v3 = vld [vmem:[%s9836_s13 + $0x21c] sm:$0xf0] }
 0x339   : > { %v6507_v58 = vpop.f32.mrf.mxu2 }
 0x33a   : > { %v6556_v37 = vpop.f32.mrf.mxu3  ;;  %v6508_v40 = vadd.f32 %v6507_v58, %v10223_v9  ;;  %v7806_v58 = vld [vmem:[%s9836_s13 + $0x180] sm:$0xf] }
 0x33b   : > { %v6608_v10 = vpop.f32.mrf.mxu0 }
 0x33c   : > { %v6557_v61 = vadd.f32 %v6556_v37, %v6508_v40  ;;  %v8538_v37 = vld [vmem:[%s9836_s13 + $0x1b4] sm:$0xf0]  ;;  %v8531_v40 = vld [vmem:[%s9836_s13 + $0x184] sm:$0xf] }
 0x33d   : > { %v6657_v48 = vpop.f32.mrf.mxu1 }
 0x33e   : > { %v6606_v49 = vadd.f32 %v6605_v20, %v6557_v61  ;;  %6705 = vmatmul.bf16.gmra.mxu2 %v7687_v41  ;;  %6803 = vmatmul.bf16.gmra.mxu0 %v7695_v42  ;;  %v7808_v41 = vld [vmem:[%s9836_s13 + $0x1b8] sm:$0xf0] }
 0x33f   : > { %6754 = vmatmul.bf16.gmra.mxu3 %v7691_v54 }
 0x340   : > { %8469 = vmatmul.msk.bf16.gmra.mxu1 %vm6177_vm0, %v7699_v44  ;;  %v10382_v9 = vadd.f32 %v6654_v39, %v6606_v49  ;;  %v7811_v49 = vor.u32 %v8531_v40, %v7808_v41  ;;  %v8558_v40 = vld [vmem:[%s9836_s13 + $0x25c] sm:$0xf]  ;;  %v7912_v41 = vld [vmem:[%s9836_s13 + $0x290] sm:$0xf0] }
 0x341   : > { %v6510_v50 = vpop.f32.mrf.mxu2 }
 0x342   : > { %v6559_v51 = vpop.f32.mrf.mxu3  ;;  %v6511_v52 = vadd.f32 %v6510_v50, %v10237_v29  ;;  %v7747_v29 = vor.u32 %v8516_v62, %v7744_v63 }
 0x343   : > { %v6610_v55 = vpop.f32.mrf.mxu0 }
 0x344   : > { %v6560_v38 = vadd.f32 %v6559_v51, %v6511_v52 }
 0x345   : > { %v6659_v56 = vpop.f32.mrf.mxu1 }
 0x346   : > { %v6609_v57 = vadd.f32 %v6608_v10, %v6560_v38  ;;  %v7799_v10 = vor.u32 %v8537_v32, %v7798_v31 }
 0x348   : > { %v10393_v4 = vadd.f32 %v6657_v48, %v6609_v57  ;;  %v7807_v48 = vor.u32 %v8538_v37, %v7806_v58  ;;  %v7910_v58 = vld [vmem:[%s9836_s13 + $0x258] sm:$0xf]  ;;  %v8565_v37 = vld [vmem:[%s9836_s13 + $0x28c] sm:$0xf0] }
 0x349   : > { %v6512_v46 = vpop.f32.mrf.mxu2 }
 0x34a   : > { %v6561_v11 = vpop.f32.mrf.mxu3  ;;  %v6513_v12 = vadd.f32 %v6512_v46, %v10246_v47  ;;  %v7862_v46 = vld [vmem:[%s9836_s13 + $0x1f0] sm:$0xf] }
 0x34b   : > { %v6613_v17 = vpop.f32.mrf.mxu0 }
 0x34c   : > { %v6562_v16 = vadd.f32 %v6561_v11, %v6513_v12  ;;  %v8552_v11 = vld [vmem:[%s9836_s13 + $0x224] sm:$0xf0]  ;;  %v8545_v12 = vld [vmem:[%s9836_s13 + $0x1f4] sm:$0xf] }
 0x34d   : > { %v6662_v18 = vpop.f32.mrf.mxu1 }
 0x34e   : > { %v6611_v43 = vadd.f32 %v6610_v55, %v6562_v16  ;;  %6710 = vmatmul.bf16.gmra.mxu2 %v7743_v13  ;;  %6808 = vmatmul.bf16.gmra.mxu0 %v7751_v14  ;;  %v7864_v13 = vld [vmem:[%s9836_s13 + $0x228] sm:$0xf0] }
 0x34f   : > { %6759 = vmatmul.bf16.gmra.mxu3 %v7747_v29 }
 0x350   : > { %8470 = vmatmul.msk.bf16.gmra.mxu1 %vm6177_vm0, %v7755_v15  ;;  %v10397_v47 = vadd.f32 %v6659_v56, %v6611_v43  ;;  %v7867_v43 = vor.u32 %v8545_v12, %v7864_v13  ;;  %v8572_v12 = vld [vmem:[%s9836_s13 + $0x2cc] sm:$0xf]  ;;  %v7968_v13 = vld [vmem:[%s9836_s13 + $0x300] sm:$0xf0] }
 0x351   : > { %v6515_v20 = vpop.f32.mrf.mxu2 }
 0x352   : > { %v6564_v39 = vpop.f32.mrf.mxu3  ;;  %v6516_v24 = vadd.f32 %v6515_v20, %v10260_v5  ;;  %v7803_v5 = vor.u32 %v8530_v33, %v7800_v34 }
 0x353   : > { %v6615_v26 = vpop.f32.mrf.mxu0 }
 0x354   : > { %v6565_v25 = vadd.f32 %v6564_v39, %v6516_v24 }
 0x355   : > { %v6664_v27 = vpop.f32.mrf.mxu1 }
 0x356   : > { %v6614_v28 = vadd.f32 %v6613_v17, %v6565_v25  ;;  %v7855_v17 = vor.u32 %v8551_v3, %v7854_v1 }
 0x358   : > { %v10408_v54 = vadd.f32 %v6662_v18, %v6614_v28  ;;  %v7863_v18 = vor.u32 %v8552_v11, %v7862_v46  ;;  %v7966_v46 = vld [vmem:[%s9836_s13 + $0x2c8] sm:$0xf]  ;;  %v8579_v11 = vld [vmem:[%s9836_s13 + $0x2fc] sm:$0xf0] }
 0x359   : > { %v6517_v42 = vpop.f32.mrf.mxu2 }
 0x35a   : > { %v6566_v44 = vpop.f32.mrf.mxu3  ;;  %v6518_v61 = vadd.f32 %v6517_v42, %v10272_v23  ;;  %v7918_v42 = vld [vmem:[%s9836_s13 + $0x260] sm:$0xf] }
 0x35b   : > { %v6618_v51 = vpop.f32.mrf.mxu0 }
 0x35c   : > { %v6567_v50 = vadd.f32 %v6566_v44, %v6518_v61  ;;  %v8566_v44 = vld [vmem:[%s9836_s13 + $0x294] sm:$0xf0]  ;;  %v8559_v61 = vld [vmem:[%s9836_s13 + $0x264] sm:$0xf] }
 0x35d   : > { %v6667_v52 = vpop.f32.mrf.mxu1 }
 0x35e   : > { %v6616_v38 = vadd.f32 %v6615_v26, %v6567_v50  ;;  %6715 = vmatmul.bf16.gmra.mxu2 %v7799_v10  ;;  %6813 = vmatmul.bf16.gmra.mxu0 %v7807_v48  ;;  %v7920_v10 = vld [vmem:[%s9836_s13 + $0x298] sm:$0xf0] }
 0x35f   : > { %6764 = vmatmul.bf16.gmra.mxu3 %v7803_v5 }
 0x360   : > { %8471 = vmatmul.msk.bf16.gmra.mxu1 %vm6177_vm0, %v7811_v49  ;;  %v10412_v23 = vadd.f32 %v6664_v27, %v6616_v38  ;;  %v7923_v38 = vor.u32 %v8559_v61, %v7920_v10  ;;  %v8586_v61 = vld [vmem:[%s9836_s13 + $0x33c] sm:$0xf]  ;;  %v8024_v10 = vld [vmem:[%s9836_s13 + $0x370] sm:$0xf0] }
 0x361   : > { %v6520_v55 = vpop.f32.mrf.mxu2 }
 0x362   : > { %v6569_v56 = vpop.f32.mrf.mxu3  ;;  %v6521_v57 = vadd.f32 %v6520_v55, %v10286_v45  ;;  %v7859_v45 = vor.u32 %v8544_v30, %v7856_v6 }
 0x363   : > { %v6620_v8 = vpop.f32.mrf.mxu0 }
 0x364   : > { %v6570_v7 = vadd.f32 %v6569_v56, %v6521_v57 }
 0x365   : > { %v6669_v62 = vpop.f32.mrf.mxu1 }
 0x366   : > { %v6619_v63 = vadd.f32 %v6618_v51, %v6570_v7  ;;  %v7911_v51 = vor.u32 %v8565_v37, %v7910_v58 }
 0x368   : > { %v10423_v29 = vadd.f32 %v6667_v52, %v6619_v63  ;;  %v7919_v52 = vor.u32 %v8566_v44, %v7918_v42  ;;  %v8022_v42 = vld [vmem:[%s9836_s13 + $0x338] sm:$0xf]  ;;  %v8593_v44 = vld [vmem:[%s9836_s13 + $0x36c] sm:$0xf0] }
 0x369   : > { %v6522_v14 = vpop.f32.mrf.mxu2 }
 0x36a   : > { %v6571_v15 = vpop.f32.mrf.mxu3  ;;  %v6523_v16 = vadd.f32 %v6522_v14, %v10295_v60  ;;  %v7974_v14 = vld [vmem:[%s9836_s13 + $0x2d0] sm:$0xf] }
 0x36b   : > { %v6623_v39 = vpop.f32.mrf.mxu0 }
 0x36c   : > { %v6572_v20 = vadd.f32 %v6571_v15, %v6523_v16  ;;  %v8580_v15 = vld [vmem:[%s9836_s13 + $0x304] sm:$0xf0]  ;;  %v8573_v16 = vld [vmem:[%s9836_s13 + $0x2d4] sm:$0xf] }
 0x36d   : > { %v6672_v24 = vpop.f32.mrf.mxu1 }
 0x36e   : > { %v6621_v25 = vadd.f32 %v6620_v8, %v6572_v20  ;;  %6720 = vmatmul.bf16.gmra.mxu2 %v7855_v17  ;;  %6818 = vmatmul.bf16.gmra.mxu0 %v7863_v18  ;;  %v7976_v17 = vld [vmem:[%s9836_s13 + $0x308] sm:$0xf0] }
 0x36f   : > { %6769 = vmatmul.bf16.gmra.mxu3 %v7859_v45 }
 0x370   : > { %8472 = vmatmul.msk.bf16.gmra.mxu1 %vm6177_vm0, %v7867_v43  ;;  %v10427_v60 = vadd.f32 %v6669_v62, %v6621_v25  ;;  %v7979_v25 = vor.u32 %v8573_v16, %v7976_v17 }
 0x371   : > { %v6525_v26 = vpop.f32.mrf.mxu2 }
 0x372   : > { %v6574_v27 = vpop.f32.mrf.mxu3  ;;  %v6526_v28 = vadd.f32 %v6525_v26, %v10309_v19  ;;  %v7915_v19 = vor.u32 %v8558_v40, %v7912_v41 }
 0x373   : > { %v6625_v32 = vpop.f32.mrf.mxu0 }
 0x374   : > { %v6575_v31 = vadd.f32 %v6574_v27, %v6526_v28 }
 0x375   : > { %v6674_v33 = vpop.f32.mrf.mxu1 }
 0x376   : > { %v6624_v34 = vadd.f32 %v6623_v39, %v6575_v31  ;;  %v7967_v39 = vor.u32 %v8579_v11, %v7966_v46 }
 0x378   : > { %v10438_v5 = vadd.f32 %v6672_v24, %v6624_v34  ;;  %v7975_v24 = vor.u32 %v8580_v15, %v7974_v14 }
 0x379   : > { %v6527_v48 = vpop.f32.mrf.mxu2 }
 0x37a   : > { %v6576_v49 = vpop.f32.mrf.mxu3  ;;  %v6528_v50 = vadd.f32 %v6527_v48, %v10321_v36  ;;  %v8030_v48 = vld [vmem:[%s9836_s13 + $0x340] sm:$0xf] }
 0x37b   : > { %v6628_v56 = vpop.f32.mrf.mxu0 }
 0x37c   : > { %v6577_v55 = vadd.f32 %v6576_v49, %v6528_v50  ;;  %v8594_v49 = vld [vmem:[%s9836_s13 + $0x374] sm:$0xf0]  ;;  %v8587_v50 = vld [vmem:[%s9836_s13 + $0x344] sm:$0xf] }
 0x37d   : > { %v6677_v57 = vpop.f32.mrf.mxu1 }
 0x37e   : > { %v6626_v7 = vadd.f32 %v6625_v32, %v6577_v55  ;;  %6725 = vmatmul.bf16.gmra.mxu2 %v7911_v51  ;;  %6823 = vmatmul.bf16.gmra.mxu0 %v7919_v52  ;;  %v8032_v51 = vld [vmem:[%s9836_s13 + $0x378] sm:$0xf0] }
 0x37f   : > { %6774 = vmatmul.bf16.gmra.mxu3 %v7915_v19 }
 0x380   : > { %8473 = vmatmul.msk.bf16.gmra.mxu1 %vm6177_vm0, %v7923_v38  ;;  %v10442_v36 = vadd.f32 %v6674_v33, %v6626_v7  ;;  %v8035_v7 = vor.u32 %v8587_v50, %v8032_v51 }
 0x381   : > { %v6530_v8 = vpop.f32.mrf.mxu2 }
 0x382   : > { %v6579_v62 = vpop.f32.mrf.mxu3  ;;  %v6531_v63 = vadd.f32 %v6530_v8, %v10335_v59  ;;  %v7971_v59 = vor.u32 %v8572_v12, %v7968_v13 }
 0x383   : > { %v6630_v3 = vpop.f32.mrf.mxu0 }
 0x384   : > { %v6580_v1 = vadd.f32 %v6579_v62, %v6531_v63 }
 0x385   : > { %v6679_v30 = vpop.f32.mrf.mxu1 }
 0x386   : > { %v6629_v6 = vadd.f32 %v6628_v56, %v6580_v1  ;;  %v8023_v56 = vor.u32 %v8593_v44, %v8022_v42 }
 0x388   : > { %v10453_v45 = vadd.f32 %v6677_v57, %v6629_v6  ;;  %v8031_v57 = vor.u32 %v8594_v49, %v8030_v48 }
 0x389   : > { %v6532_v18 = vpop.f32.mrf.mxu2 }
 0x38a   : > { %v6581_v43 = vpop.f32.mrf.mxu3  ;;  %v6533_v20 = vadd.f32 %v6532_v18, %v10338_v22 }
 0x38b   : > { %v6633_v27 = vpop.f32.mrf.mxu0 }
 0x38c   : > { %v6582_v26 = vadd.f32 %v6581_v43, %v6533_v20 }
 0x38d   : > { %v6682_v28 = vpop.f32.mrf.mxu1 }
 0x38e   : > { %v6631_v31 = vadd.f32 %v6630_v3, %v6582_v26  ;;  %6730 = vmatmul.bf16.gmra.mxu2 %v7967_v39  ;;  %6828 = vmatmul.bf16.gmra.mxu0 %v7975_v24 }
 0x38f   : > { %6779 = vmatmul.bf16.gmra.mxu3 %v7971_v59 }
 0x390   : > { %8474 = vmatmul.msk.bf16.gmra.mxu1 %vm6177_vm0, %v7979_v25  ;;  %v10457_v22 = vadd.f32 %v6679_v30, %v6631_v31 }
 0x391   : > { %v6535_v32 = vpop.f32.mrf.mxu2 }
 0x392   : > { %v6584_v33 = vpop.f32.mrf.mxu3  ;;  %v6536_v34 = vadd.f32 %v6535_v32, %v10349_v2  ;;  %v8027_v2 = vor.u32 %v8586_v61, %v8024_v10  ;;  %v10484_v32 = vld [vmem:[%s11149_s3] ss:$0 sm:$0xff] }
 0x393   : > { %v6635_v37 = vpop.f32.mrf.mxu0 }
 0x394   : > { %v6585_v58 = vadd.f32 %v6584_v33, %v6536_v34  ;;  %v10489_v33 = vld [vmem:[%s11150_s4] ss:$0 sm:$0xff] }
 0x395   : > { %v6684_v40 = vpop.f32.mrf.mxu1 }
 0x396   : > { %v6634_v41 = vadd.f32 %v6633_v27, %v6585_v58 }
 0x398   : > { %v10468_v19 = vadd.f32 %v6682_v28, %v6634_v41 }
 0x399   : > { %v6537_v52 = vpop.f32.mrf.mxu2 }
 0x39a   : > { %v6586_v38 = vpop.f32.mrf.mxu3  ;;  %v6538_v55 = vadd.f32 %v6537_v52, %v10352_v53 }
 0x39b   : > { %v6638_v62 = vpop.f32.mrf.mxu0 }
 0x39c   : > { %v6587_v8 = vadd.f32 %v6586_v38, %v6538_v55 }
 0x39d   : > { %v6687_v63 = vpop.f32.mrf.mxu1 }
 0x39e   : > { %v6636_v1 = vadd.f32 %v6635_v37, %v6587_v8  ;;  %6735 = vmatmul.bf16.gmra.mxu2 %v8023_v56  ;;  %6833 = vmatmul.bf16.gmra.mxu0 %v8031_v57 }
 0x39f   : > { %6784 = vmatmul.bf16.gmra.mxu3 %v8027_v2 }
 0x3a0   : > { %8475 = vmatmul.msk.bf16.gmra.mxu1 %vm6177_vm0, %v8035_v7  ;;  %v10472_v3 = vadd.f32 %v6684_v40, %v6636_v1 }
 0x3a1   : > { %v6540_v30 = vpop.f32.mrf.mxu2 }
 0x3a2   : > { %v6589_v6 = vpop.f32.mrf.mxu3  ;;  %v6541_v46 = vadd.f32 %v6540_v30, %v10363_v0 }
 0x3a3   : > { %v6640_v11 = vpop.f32.mrf.mxu0 }
 0x3a4   : > { %v6590_v53 = vadd.f32 %v6589_v6, %v6541_v46 }
 0x3a5   : > { %v6689_v12 = vpop.f32.mrf.mxu1 }
 0x3a6   : > { %v6639_v13 = vadd.f32 %v6638_v62, %v6590_v53 }
 0x3a8   : > { %v10475_v14 = vadd.f32 %v6687_v63, %v6639_v13 }
 0x3a9   : > { %v6542_v15 = vpop.f32.mrf.mxu2 }
 0x3aa   : > { %v6591_v16 = vpop.f32.mrf.mxu3  ;;  %v6543_v17 = vadd.f32 %v6542_v15, %v10367_v21 }
 0x3ab   : > { %v6799_v43 = vpop.f32.mrf.mxu0 }
 0x3ac   : > { %v6592_v18 = vadd.f32 %v6591_v16, %v6543_v17 }
 0x3ad   : > { %v6848_v20 = vpop.f32.mrf.mxu1 }
 0x3ae   : > { %v6641_v39 = vadd.f32 %v6640_v11, %v6592_v18 }
 0x3b0   : > { %v10478_v59 = vadd.f32 %v6689_v12, %v6641_v39 }
 0x3b1   : > { %v6701_v24 = vpop.f32.mrf.mxu2 }
 0x3b2   : > { %v6750_v25 = vpop.f32.mrf.mxu3  ;;  %v6702_v0 = vadd.f32 %v6701_v24, %v10378_v35 }
 0x3b3   : > { %v6801_v27 = vpop.f32.mrf.mxu0 }
 0x3b4   : > { %v6751_v26 = vadd.f32 %v6750_v25, %v6702_v0 }
 0x3b5   : > { %v6850_v28 = vpop.f32.mrf.mxu1 }
 0x3b6   : > { %v6800_v31 = vadd.f32 %v6799_v43, %v6751_v26 }
 0x3b8   : > { %v6849_v21 = vadd.f32 %v6848_v20, %v6800_v31 }
 0x3b9   : > { %v6703_v34 = vpop.f32.mrf.mxu2 }
 0x3ba   : > { %v6752_v58 = vpop.f32.mrf.mxu3  ;;  %v6704_v37 = vadd.f32 %v6703_v34, %v10382_v9  ;;  %v6892_v35 = vmul.f32 %v10484_v32, %v6849_v21 }
 0x3bb   : > { %v6804_v41 = vpop.f32.mrf.mxu0 }
 0x3bc   : > { %v6753_v40 = vadd.f32 %v6752_v58, %v6704_v37  ;;  %v6912_v44 = vadd.f32 %v10489_v33, %v6892_v35  ;;  %v3775_v35 = vld [vmem:[%s10514_s12] sm:$0xff] }
 0x3bd   : > { %v6853_v42 = vpop.f32.mrf.mxu1 }
 0x3be   : > { %v6802_v61 = vadd.f32 %v6801_v27, %v6753_v40  ;;  %v6928_v10 = vmax.f32 %v6912_v44, 0.0  ;;  %v7172_v40 = vld [vmem:[%s10514_s12 + $0x80] sm:$0xff] }
 0x3c0   : > { %v6851_v48 = vadd.f32 %v6850_v28, %v6802_v61  ;;  %6960 = vrot.lane.b32.xlu0 %v6928_v10, %s8834_s9 }
 0x3c1   : > { %v6706_v49 = vpop.f32.mrf.mxu2 }
 0x3c2   : > { %v6755_v50 = vpop.f32.mrf.mxu3  ;;  %v6707_v51 = vadd.f32 %v6706_v49, %v10393_v4  ;;  %v6893_v52 = vmul.f32 %v10484_v32, %v6851_v48 }
 0x3c3   : > { %v6806_v38 = vpop.f32.mrf.mxu0 }
 0x3c4   : > { %v6756_v9 = vadd.f32 %v6755_v50, %v6707_v51  ;;  %v6913_v56 = vadd.f32 %v10489_v33, %v6893_v52  ;;  %v7204_v50 = vld [vmem:[%s10514_s12 + $0x180] sm:$0xff] }
 0x3c5   : > { %v6855_v55 = vpop.f32.mrf.mxu1 }
 0x3c6   : > { %v6805_v2 = vadd.f32 %v6804_v41, %v6756_v9  ;;  %v6929_v57 = vmax.f32 %v6913_v56, 0.0  ;;  %v3808_v41 = vmax.f32 %v3775_v35, %v7172_v40  ;;  %v7220_v56 = vld [vmem:[%s10514_s12 + $0x200] sm:$0xff] }
 0x3c8   : > { %v6854_v7 = vadd.f32 %v6853_v42, %v6805_v2  ;;  %6962 = vrot.lane.b32.xlu0 %v6929_v57, %s8834_s9  ;;  %v7188_v42 = vld [vmem:[%s10514_s12 + $0x100] sm:$0xff] }
 0x3c9   : > { %v6708_v8 = vpop.f32.mrf.mxu2  ;;  %v3841_v10 = vmax.f32 %v3808_v41, %v7188_v42  ;;  %v7300_v41 = vld [vmem:[%s10514_s12 + $0x480] sm:$0xff] }
 0x3ca   : > { %v6757_v62 = vpop.f32.mrf.mxu3  ;;  %v6709_v63 = vadd.f32 %v6708_v8, %v10397_v47  ;;  %v6894_v1 = vmul.f32 %v10484_v32, %v6854_v7  ;;  %v7236_v8 = vld [vmem:[%s10514_s12 + $0x280] sm:$0xff] }
 0x3cb   : > { %v6809_v4 = vpop.f32.mrf.mxu0  ;;  %v3874_v51 = vmax.f32 %v3841_v10, %v7204_v50  ;;  %v7256_v50 = vld [vmem:[%s10514_s12 + $0x320] sm:$0xff] }
 0x3cc   : > { %v6758_v30 = vadd.f32 %v6757_v62, %v6709_v63  ;;  %v6914_v46 = vadd.f32 %v10489_v33, %v6894_v1  ;;  %v7176_v62 = vld [vmem:[%s10514_s12 + $0xa0] sm:$0xff] }
 0x3cd   : > { %v6858_v6 = vpop.f32.mrf.mxu1  ;;  %v3907_v2 = vmax.f32 %v3874_v51, %v7220_v56 }
 0x3ce   : > { %v6807_v53 = vadd.f32 %v6806_v38, %v6758_v30  ;;  %v6930_v11 = vmax.f32 %v6914_v46, 0.0  ;;  %v3776_v30 = vld [vmem:[%s10514_s12 + $0x8] sm:$0xff]  ;;  %v7252_v46 = vld [vmem:[%s10514_s12 + $0x300] sm:$0xff] }
 0x3cf   : > { %v3940_v63 = vmax.f32 %v3907_v2, %v7236_v8  ;;  %v3777_v8 = vld [vmem:[%s10514_s12 + $0x10] sm:$0xff] }
 0x3d0   : > { %v6856_v12 = vadd.f32 %v6855_v55, %v6807_v53  ;;  %6964 = vrot.lane.b32.xlu1 %v6930_v11, %s8834_s9  ;;  %v7192_v53 = vld [vmem:[%s10514_s12 + $0x120] sm:$0xff] }
 0x3d1   : > { %v6711_v13 = vpop.f32.mrf.mxu2 }
 0x3d2   : > { %v6760_v15 = vpop.f32.mrf.mxu3  ;;  %v6712_v16 = vadd.f32 %v6711_v13, %v10408_v54  ;;  %v6895_v17 = vmul.f32 %v10484_v32, %v6856_v12  ;;  %v7189_v12 = vld [vmem:[%s10514_s12 + $0x108] sm:$0xff] }
 0x3d3   : > { %v6811_v18 = vpop.f32.mrf.mxu0 }
 0x3d4   : > { %v6761_v47 = vadd.f32 %v6760_v15, %v6712_v16  ;;  %v6915_v20 = vadd.f32 %v10489_v33, %v6895_v17  ;;  %v3973_v16 = vmax.f32 %v3940_v63, %v7252_v46  ;;  %v7272_v63 = vld [vmem:[%s10514_s12 + $0x3a0] sm:$0xff] }
 0x3d5   : > { %v6860_v43 = vpop.f32.mrf.mxu1 }
 0x3d6   : > { %v6810_v39 = vadd.f32 %v6809_v4, %v6761_v47  ;;  %v6931_v24 = vmax.f32 %v6915_v20, 0.0  ;;  %v7173_v4 = vld [vmem:[%s10514_s12 + $0x88] sm:$0xff]  ;;  %v7208_v20 = vld [vmem:[%s10514_s12 + $0x1a0] sm:$0xff] }
 0x3d7   : > { %v3809_v11 = vmax.f32 %v3776_v30, %v7173_v4  ;;  %v7269_v30 = vld [vmem:[%s10514_s12 + $0x388] sm:$0xff] }
 0x3d8   : > { %v6859_v25 = vadd.f32 %v6858_v6, %v6810_v39  ;;  %6966 = vrot.lane.b32.xlu1 %v6931_v24, %s8834_s9  ;;  %v7205_v24 = vld [vmem:[%s10514_s12 + $0x188] sm:$0xff] }
 0x3d9   : > { %v6713_v0 = vpop.f32.mrf.mxu2  ;;  %v3842_v39 = vmax.f32 %v3809_v11, %v7189_v12  ;;  %v7174_v11 = vld [vmem:[%s10514_s12 + $0x90] sm:$0xff] }
 0x3da   : > { %v6762_v26 = vpop.f32.mrf.mxu3  ;;  %v6714_v54 = vadd.f32 %v6713_v0, %v10412_v23  ;;  %v6896_v27 = vmul.f32 %v10484_v32, %v6859_v25  ;;  %v7190_v12 = vld [vmem:[%s10514_s12 + $0x110] sm:$0xff] }
 0x3db   : > { %v6814_v31 = vpop.f32.mrf.mxu0 }
 0x3dc   : > { %v6763_v28 = vadd.f32 %v6762_v26, %v6714_v54  ;;  %v6916_v34 = vadd.f32 %v10489_v33, %v6896_v27 }
 0x3dd   : > { %v6863_v21 = vpop.f32.mrf.mxu1 }
 0x3de   : > { %v6812_v58 = vadd.f32 %v6811_v18, %v6763_v28  ;;  %v6932_v37 = vmax.f32 %v6916_v34, 0.0  ;;  %v7221_v34 = vld [vmem:[%s10514_s12 + $0x208] sm:$0xff] }
 0x3e0   : > { %v6861_v23 = vadd.f32 %v6860_v43, %v6812_v58  ;;  %6968 = vrot.lane.b32.xlu2 %v6932_v37, %s8834_s9  ;;  %v7268_v43 = vld [vmem:[%s10514_s12 + $0x380] sm:$0xff] }
 0x3e1   : > { %v6716_v44 = vpop.f32.mrf.mxu2  ;;  %v4006_v25 = vmax.f32 %v3973_v16, %v7268_v43  ;;  %v7285_v43 = vld [vmem:[%s10514_s12 + $0x408] sm:$0xff] }
 0x3e2   : > { %v6765_v61 = vpop.f32.mrf.mxu3  ;;  %v6717_v48 = vadd.f32 %v6716_v44, %v10423_v29  ;;  %v6897_v49 = vmul.f32 %v10484_v32, %v6861_v23  ;;  %v3779_v29 = vld [vmem:[%s10514_s12 + $0x20] sm:$0xff]  ;;  %v7237_v44 = vld [vmem:[%s10514_s12 + $0x288] sm:$0xff] }
 0x3e3   : > { %v6816_v9 = vpop.f32.mrf.mxu0  ;;  %v3812_v1 = vmax.f32 %v3779_v29, %v7176_v62  ;;  %v7240_v23 = vld [vmem:[%s10514_s12 + $0x2a0] sm:$0xff] }
 0x3e4   : > { %v6766_v52 = vadd.f32 %v6765_v61, %v6717_v48  ;;  %v6917_v55 = vadd.f32 %v10489_v33, %v6897_v49  ;;  %v7316_v49 = vld [vmem:[%s10514_s12 + $0x500] sm:$0xff] }
 0x3e5   : > { %v6865_v38 = vpop.f32.mrf.mxu1  ;;  %v3845_v17 = vmax.f32 %v3812_v1, %v7192_v53  ;;  %v7332_v62 = vld [vmem:[%s10514_s12 + $0x580] sm:$0xff]  ;;  %v7193_v53 = vld [vmem:[%s10514_s12 + $0x128] sm:$0xff] }
 0x3e6   : > { %v6815_v57 = vadd.f32 %v6814_v31, %v6766_v52  ;;  %v6933_v7 = vmax.f32 %v6917_v55, 0.0  ;;  %v7284_v31 = vld [vmem:[%s10514_s12 + $0x400] sm:$0xff]  ;;  %v7253_v52 = vld [vmem:[%s10514_s12 + $0x308] sm:$0xff] }
 0x3e7   : > { %v3878_v0 = vmax.f32 %v3845_v17, %v7208_v20  ;;  %v4039_v58 = vmax.f32 %v4006_v25, %v7284_v31  ;;  %v7348_v17 = vld [vmem:[%s10514_s12 + $0x600] sm:$0xff]  ;;  %v3810_v25 = vmax.f32 %v3777_v8, %v7174_v11  ;;  %v3778_v8 = vld [vmem:[%s10514_s12 + $0x18] sm:$0xff] }
 0x3e8   : > { %v6864_v6 = vadd.f32 %v6863_v21, %v6815_v57  ;;  %6970 = vrot.lane.b32.xlu2 %v6933_v7, %s8834_s9  ;;  %v3875_v21 = vmax.f32 %v3842_v39, %v7205_v24  ;;  %v3780_v57 = vld [vmem:[%s10514_s12 + $0x28] sm:$0xff] }
 0x3e9   : > { %v6718_v13 = vpop.f32.mrf.mxu2  ;;  %v4072_v61 = vmax.f32 %v4039_v58, %v7300_v41  ;;  %v7177_v7 = vld [vmem:[%s10514_s12 + $0xa8] sm:$0xff]  ;;  %v3843_v41 = vmax.f32 %v3810_v25, %v7190_v12  ;;  %v7368_v25 = vld [vmem:[%s10514_s12 + $0x6a0] sm:$0xff] }
 0x3ea   : > { %v6767_v15 = vpop.f32.mrf.mxu3  ;;  %v6719_v47 = vadd.f32 %v6718_v13, %v10427_v60  ;;  %v6898_v18 = vmul.f32 %v10484_v32, %v6864_v6  ;;  %v7224_v60 = vld [vmem:[%s10514_s12 + $0x220] sm:$0xff]  ;;  %v3908_v42 = vmax.f32 %v3875_v21, %v7221_v34  ;;  %v3813_v4 = vmax.f32 %v3780_v57, %v7177_v7  ;;  %v7209_v24 = vld [vmem:[%s10514_s12 + $0x1a8] sm:$0xff]  ;;  %v7206_v34 = vld [vmem:[%s10514_s12 + $0x190] sm:$0xff] }
 0x3eb   : > { %v6819_v54 = vpop.f32.mrf.mxu0  ;;  %v3911_v37 = vmax.f32 %v3878_v0, %v7224_v60  ;;  %v4105_v56 = vmax.f32 %v4072_v61, %v7316_v49  ;;  %v7301_v60 = vld [vmem:[%s10514_s12 + $0x488] sm:$0xff] }
 0x3ec   : > { %v6768_v26 = vadd.f32 %v6767_v15, %v6719_v47  ;;  %v6918_v28 = vadd.f32 %v10489_v33, %v6898_v18  ;;  %v3941_v51 = vmax.f32 %v3908_v42, %v7237_v44  ;;  %v7288_v47 = vld [vmem:[%s10514_s12 + $0x420] sm:$0xff]  ;;  %v3846_v20 = vmax.f32 %v3813_v4, %v7193_v53  ;;  %v7317_v44 = vld [vmem:[%s10514_s12 + $0x508] sm:$0xff] }
 0x3ed   : > { %v10539_v27 = vpop.f32.mrf.mxu1  ;;  %v3944_v10 = vmax.f32 %v3911_v37, %v7240_v23  ;;  %v4138_v6 = vmax.f32 %v4105_v56, %v7332_v62  ;;  %v7364_v37 = vld [vmem:[%s10514_s12 + $0x680] sm:$0xff]  ;;  %v7333_v57 = vld [vmem:[%s10514_s12 + $0x588] sm:$0xff] }
 0x3ee   : > { %v6817_v35 = vadd.f32 %v6816_v9, %v6768_v26  ;;  %v6934_v40 = vmax.f32 %v6918_v28, 0.0  ;;  %v3974_v1 = vmax.f32 %v3941_v51, %v7253_v52  ;;  %v7304_v28 = vld [vmem:[%s10514_s12 + $0x4a0] sm:$0xff]  ;;  %v3879_v21 = vmax.f32 %v3846_v20, %v7209_v24  ;;  %v7241_v51 = vld [vmem:[%s10514_s12 + $0x2a8] sm:$0xff]  ;;  %v7191_v20 = vld [vmem:[%s10514_s12 + $0x118] sm:$0xff] }
 0x3ef   : > { %v3977_v2 = vmax.f32 %v3944_v10, %v7256_v50  ;;  %v4171_v58 = vmax.f32 %v4138_v6, %v7348_v17  ;;  %v7222_v10 = vld [vmem:[%s10514_s12 + $0x210] sm:$0xff]  ;;  %v3876_v52 = vmax.f32 %v3843_v41, %v7206_v34  ;;  %v7336_v56 = vld [vmem:[%s10514_s12 + $0x5a0] sm:$0xff]  ;;  %v7349_v12 = vld [vmem:[%s10514_s12 + $0x608] sm:$0xff] }
 0x3f0   : > { %v6866_v48 = vadd.f32 %v6865_v38, %v6817_v35  ;;  %6972 = vrot.lane.b32.xlu0 %v6934_v40, %s8834_s9  ;;  %v4007_v18 = vmax.f32 %v3974_v1, %v7269_v30  ;;  %v7225_v40 = vld [vmem:[%s10514_s12 + $0x228] sm:$0xff]  ;;  %v7175_v30 = vld [vmem:[%s10514_s12 + $0x98] sm:$0xff]  ;;  %v7352_v53 = vld [vmem:[%s10514_s12 + $0x620] sm:$0xff] }
 0x3f1   : > { %v6721_v9 = vpop.f32.mrf.mxu2  ;;  %v4010_v46 = vmax.f32 %v3977_v2, %v7272_v63  ;;  %v3912_v61 = vmax.f32 %v3879_v21, %v7225_v40  ;;  %v7257_v63 = vld [vmem:[%s10514_s12 + $0x328] sm:$0xff]  ;;  %v3909_v1 = vmax.f32 %v3876_v52, %v7222_v10 }
 0x3f2   : > { %v6770_v55 = vpop.f32.mrf.mxu3  ;;  %v6722_v38 = vadd.f32 %v6721_v9, %v10438_v5  ;;  %v6899_v29 = vmul.f32 %v10484_v32, %v6866_v48  ;;  %v4040_v31 = vmax.f32 %v4007_v18, %v7285_v43  ;;  %v7238_v9 = vld [vmem:[%s10514_s12 + $0x290] sm:$0xff]  ;;  %v3811_v43 = vmax.f32 %v3778_v8, %v7175_v30  ;;  %v7289_v21 = vld [vmem:[%s10514_s12 + $0x428] sm:$0xff]  ;;  %v7400_v30 = vld [vmem:[%s10514_s12 + $0x7a0] sm:$0xff] }
 0x3f3   : > { %v10563_v5 = vpop.f32.mrf.mxu0  ;;  %v4043_v39 = vmax.f32 %v4010_v46, %v7288_v47  ;;  %v3945_v7 = vmax.f32 %v3912_v61, %v7241_v51  ;;  %v7273_v47 = vld [vmem:[%s10514_s12 + $0x3a8] sm:$0xff]  ;;  %v3942_v18 = vmax.f32 %v3909_v1, %v7238_v9  ;;  %v7318_v1 = vld [vmem:[%s10514_s12 + $0x510] sm:$0xff] }
 0x3f4   : > { %v6771_v13 = vadd.f32 %v6770_v55, %v6722_v38  ;;  %v6919_v16 = vadd.f32 %v10489_v33, %v6899_v29  ;;  %v4073_v42 = vmax.f32 %v4040_v31, %v7301_v60  ;;  %v4204_v38 = vmax.f32 %v4171_v58, %v7364_v37  ;;  %v7380_v29 = vld [vmem:[%s10514_s12 + $0x700] sm:$0xff]  ;;  %v7270_v31 = vld [vmem:[%s10514_s12 + $0x390] sm:$0xff]  ;;  %v7207_v37 = vld [vmem:[%s10514_s12 + $0x198] sm:$0xff] }
 0x3f5   : > { %v10565_v15 = vpop.f32.mrf.mxu1  ;;  %v4076_v35 = vmax.f32 %v4043_v39, %v7304_v28  ;;  %v3844_v58 = vmax.f32 %v3811_v43, %v7191_v20  ;;  %v7305_v10 = vld [vmem:[%s10514_s12 + $0x4a8] sm:$0xff]  ;;  %v7334_v43 = vld [vmem:[%s10514_s12 + $0x590] sm:$0xff] }
 0x3f6   : > { %v6820_v0 = vadd.f32 %v6819_v54, %v6771_v13  ;;  %v6935_v26 = vmax.f32 %v6919_v16, 0.0  ;;  %v7320_v54 = vld [vmem:[%s10514_s12 + $0x520] sm:$0xff]  ;;  %v4106_v2 = vmax.f32 %v4073_v42, %v7317_v44  ;;  %v3978_v13 = vmax.f32 %v3945_v7, %v7257_v63  ;;  %v7254_v16 = vld [vmem:[%s10514_s12 + $0x310] sm:$0xff]  ;;  %v7381_v52 = vld [vmem:[%s10514_s12 + $0x708] sm:$0xff] }
 0x3f7   : > { %v4109_v50 = vmax.f32 %v4076_v35, %v7320_v54  ;;  %v4237_v60 = vmax.f32 %v4204_v38, %v7380_v29  ;;  %v3975_v34 = vmax.f32 %v3942_v18, %v7254_v16  ;;  %v7384_v44 = vld [vmem:[%s10514_s12 + $0x720] sm:$0xff]  ;;  %v7239_v7 = vld [vmem:[%s10514_s12 + $0x298] sm:$0xff] }
 0x3f8   : > { %v6869_v23 = vadd.f32 %v10539_v27, %v6820_v0  ;;  %6974 = vrot.lane.b32.xlu1 %v6935_v26, %s8834_s9  ;;  %v4139_v11 = vmax.f32 %v4106_v2, %v7333_v57  ;;  %v7365_v26 = vld [vmem:[%s10514_s12 + $0x688] sm:$0xff]  ;;  %v4011_v28 = vmax.f32 %v3978_v13, %v7273_v47 }
 0x3f9   : > { %v6723_v48 = vpop.f32.mrf.mxu2  ;;  %v4142_v62 = vmax.f32 %v4109_v50, %v7336_v56  ;;  %v7223_v50 = vld [vmem:[%s10514_s12 + $0x218] sm:$0xff]  ;;  %v7321_v56 = vld [vmem:[%s10514_s12 + $0x528] sm:$0xff] }
 0x3fa   : > { %v6772_v49 = vpop.f32.mrf.mxu3  ;;  %v6724_v27 = vadd.f32 %v6723_v48, %v10442_v36  ;;  %v6900_v55 = vmul.f32 %v10484_v32, %v6869_v23  ;;  %v4172_v0 = vmax.f32 %v4139_v11, %v7349_v12  ;;  %v4044_v41 = vmax.f32 %v4011_v28, %v7289_v21  ;;  %v7286_v23 = vld [vmem:[%s10514_s12 + $0x410] sm:$0xff]  ;;  %v7255_v12 = vld [vmem:[%s10514_s12 + $0x318] sm:$0xff]  ;;  %v7397_v47 = vld [vmem:[%s10514_s12 + $0x788] sm:$0xff] }
 0x3fb   : > { %v6824_v36 = vpop.f32.mrf.mxu0  ;;  %v4175_v17 = vmax.f32 %v4142_v62, %v7352_v53  ;;  %v4008_v48 = vmax.f32 %v3975_v34, %v7270_v31 }
 0x3fc   : > { %v6773_v4 = vadd.f32 %v6772_v49, %v6724_v27  ;;  %v6920_v46 = vadd.f32 %v10489_v33, %v6900_v55  ;;  %v4205_v61 = vmax.f32 %v4172_v0, %v7365_v26  ;;  %v3877_v49 = vmax.f32 %v3844_v58, %v7207_v37  ;;  %v7302_v27 = vld [vmem:[%s10514_s12 + $0x490] sm:$0xff]  ;;  %v7271_v0 = vld [vmem:[%s10514_s12 + $0x398] sm:$0xff]  ;;  %v7416_v58 = vld [vmem:[%s10514_s12 + $0x820] sm:$0xff] }
 0x3fd   : > { %v10592_v6 = vpop.f32.mrf.mxu1  ;;  %v4208_v40 = vmax.f32 %v4175_v17, %v7368_v25  ;;  %v4077_v9 = vmax.f32 %v4044_v41, %v7305_v10  ;;  %v4041_v2 = vmax.f32 %v4008_v48, %v7286_v23  ;;  %v7287_v41 = vld [vmem:[%s10514_s12 + $0x418] sm:$0xff]  ;;  %v7385_v10 = vld [vmem:[%s10514_s12 + $0x728] sm:$0xff] }
 0x3fe   : > { %v6822_v39 = vadd.f32 %v10563_v5, %v6773_v4  ;;  %v6936_v24 = vmax.f32 %v6920_v46, 0.0  ;;  %v7396_v5 = vld [vmem:[%s10514_s12 + $0x780] sm:$0xff]  ;;  %v3910_v57 = vmax.f32 %v3877_v49, %v7223_v50  ;;  %v4238_v4 = vmax.f32 %v4205_v61, %v7381_v52  ;;  %v7337_v46 = vld [vmem:[%s10514_s12 + $0x5a8] sm:$0xff]  ;;  %v7303_v50 = vld [vmem:[%s10514_s12 + $0x498] sm:$0xff] }
 0x3ff   : > { %v4270_v55 = vmax.f32 %v4237_v60, %v7396_v5  ;;  %v4241_v62 = vmax.f32 %v4208_v40, %v7384_v44  ;;  %v4110_v63 = vmax.f32 %v4077_v9, %v7321_v56  ;;  %v4074_v53 = vmax.f32 %v4041_v2, %v7302_v27  ;;  %v7350_v60 = vld [vmem:[%s10514_s12 + $0x610] sm:$0xff]  ;;  %v7444_v52 = vld [vmem:[%s10514_s12 + $0x900] sm:$0xff]  ;;  %v7401_v2 = vld [vmem:[%s10514_s12 + $0x7a8] sm:$0xff] }
 0x400   : > { %v6871_v35 = vadd.f32 %v10565_v15, %v6822_v39  ;;  %6976 = vrot.lane.b32.xlu2 %v6936_v24, %s8834_s9  ;;  %v3943_v11 = vmax.f32 %v3910_v57, %v7239_v7  ;;  %v7353_v39 = vld [vmem:[%s10514_s12 + $0x628] sm:$0xff]  ;;  %v4271_v37 = vmax.f32 %v4238_v4, %v7397_v47  ;;  %v7366_v44 = vld [vmem:[%s10514_s12 + $0x690] sm:$0xff] }
 0x401   : > { %v6726_v54 = vpop.f32.mrf.mxu2  ;;  %v4143_v18 = vmax.f32 %v4110_v63, %v7337_v46  ;;  %v4107_v24 = vmax.f32 %v4074_v53, %v7318_v1  ;;  %v4274_v28 = vmax.f32 %v4241_v62, %v7400_v30  ;;  %v7382_v27 = vld [vmem:[%s10514_s12 + $0x710] sm:$0xff]  ;;  %v7429_v63 = vld [vmem:[%s10514_s12 + $0x888] sm:$0xff]  ;;  %v7335_v53 = vld [vmem:[%s10514_s12 + $0x598] sm:$0xff] }
 0x402   : > { %v6775_v42 = vpop.f32.mrf.mxu3  ;;  %v6727_v15 = vadd.f32 %v6726_v54, %v10453_v45  ;;  %v6901_v51 = vmul.f32 %v10484_v32, %v6871_v35  ;;  %v7412_v45 = vld [vmem:[%s10514_s12 + $0x800] sm:$0xff]  ;;  %v3976_v25 = vmax.f32 %v3943_v11, %v7255_v12  ;;  %v7369_v35 = vld [vmem:[%s10514_s12 + $0x6a8] sm:$0xff]  ;;  %v7398_v4 = vld [vmem:[%s10514_s12 + $0x790] sm:$0xff] }
 0x403   : > { %v6826_v38 = vpop.f32.mrf.mxu0  ;;  %v4303_v20 = vmax.f32 %v4270_v55, %v7412_v45  ;;  %v4176_v31 = vmax.f32 %v4143_v18, %v7353_v39  ;;  %v4140_v5 = vmax.f32 %v4107_v24, %v7334_v43  ;;  %v7413_v54 = vld [vmem:[%s10514_s12 + $0x808] sm:$0xff]  ;;  %v7432_v55 = vld [vmem:[%s10514_s12 + $0x8a0] sm:$0xff] }
 0x404   : > { %v6776_v8 = vadd.f32 %v6775_v42, %v6727_v15  ;;  %v6921_v29 = vadd.f32 %v10489_v33, %v6901_v51  ;;  %v4009_v40 = vmax.f32 %v3976_v25, %v7271_v0  ;;  %v4304_v56 = vmax.f32 %v4271_v37, %v7413_v54  ;;  %v7448_v43 = vld [vmem:[%s10514_s12 + $0x920] sm:$0xff]  ;;  %v7417_v39 = vld [vmem:[%s10514_s12 + $0x828] sm:$0xff]  ;;  %v7351_v25 = vld [vmem:[%s10514_s12 + $0x618] sm:$0xff] }
 0x405   : > { %v6875_v16 = vpop.f32.mrf.mxu1  ;;  %v4209_v42 = vmax.f32 %v4176_v31, %v7369_v35  ;;  %v4173_v48 = vmax.f32 %v4140_v5, %v7350_v60  ;;  %v7414_v60 = vld [vmem:[%s10514_s12 + $0x810] sm:$0xff]  ;;  %v7476_v37 = vld [vmem:[%s10514_s12 + $0xa00] sm:$0xff] }
 0x406   : > { %v6825_v13 = vadd.f32 %v6824_v36, %v6776_v8  ;;  %v6937_v17 = vmax.f32 %v6921_v29, 0.0  ;;  %v7428_v36 = vld [vmem:[%s10514_s12 + $0x880] sm:$0xff]  ;;  %v4042_v49 = vmax.f32 %v4009_v40, %v7287_v41  ;;  %v7319_v8 = vld [vmem:[%s10514_s12 + $0x518] sm:$0xff] }
 0x407   : > { %v4336_v61 = vmax.f32 %v4303_v20, %v7428_v36  ;;  %v4242_v9 = vmax.f32 %v4209_v42, %v7385_v10  ;;  %v4206_v57 = vmax.f32 %v4173_v48, %v7366_v44  ;;  %v4337_v20 = vmax.f32 %v4304_v56, %v7429_v63  ;;  %v3783_v40 = vld [vmem:[%s10514_s12 + $0x40] sm:$0xff] }
 0x408   : > { %v6874_v26 = vadd.f32 %v10592_v6, %v6825_v13  ;;  %6978 = vrot.lane.b32.xlu0 %v6937_v17, %s8834_s9  ;;  %v4075_v7 = vmax.f32 %v4042_v49, %v7303_v50  ;;  %v7460_v13 = vld [vmem:[%s10514_s12 + $0x980] sm:$0xff]  ;;  %v7430_v50 = vld [vmem:[%s10514_s12 + $0x890] sm:$0xff] }
 0x409   : > { %v6728_v21 = vpop.f32.mrf.mxu2  ;;  %v4369_v1 = vmax.f32 %v4336_v61, %v7444_v52  ;;  %v4239_v30 = vmax.f32 %v4206_v57, %v7382_v27  ;;  %v4275_v17 = vmax.f32 %v4242_v9, %v7401_v2  ;;  %v7464_v41 = vld [vmem:[%s10514_s12 + $0x9a0] sm:$0xff]  ;;  %v7461_v61 = vld [vmem:[%s10514_s12 + $0x988] sm:$0xff] }
 0x40a   : > { %v6777_v34 = vpop.f32.mrf.mxu3  ;;  %v6729_v6 = vadd.f32 %v6728_v21, %v10457_v22  ;;  %v6902_v23 = vmul.f32 %v10484_v32, %v6874_v26  ;;  %v4307_v22 = vmax.f32 %v4274_v28, %v7416_v58  ;;  %v4108_v46 = vmax.f32 %v4075_v7, %v7319_v8  ;;  %v7445_v26 = vld [vmem:[%s10514_s12 + $0x908] sm:$0xff]  ;;  %v7367_v28 = vld [vmem:[%s10514_s12 + $0x698] sm:$0xff]  ;;  %v7180_v48 = vld [vmem:[%s10514_s12 + $0xc0] sm:$0xff] }
 0x40b   : > { %v6829_v45 = vpop.f32.mrf.mxu0  ;;  %v4272_v36 = vmax.f32 %v4239_v30, %v7398_v4  ;;  %v4402_v31 = vmax.f32 %v4369_v1, %v7460_v13  ;;  %v4308_v5 = vmax.f32 %v4275_v17, %v7417_v39  ;;  %v3816_v52 = vmax.f32 %v3783_v40, %v7180_v48  ;;  %v7492_v27 = vld [vmem:[%s10514_s12 + $0xa80] sm:$0xff]  ;;  %v7477_v30 = vld [vmem:[%s10514_s12 + $0xa08] sm:$0xff]  ;;  %v7415_v17 = vld [vmem:[%s10514_s12 + $0x818] sm:$0xff] }
 0x40c   : > { %v6778_v15 = vadd.f32 %v6777_v34, %v6729_v6  ;;  %v6922_v51 = vadd.f32 %v10489_v33, %v6902_v23  ;;  %v4141_v24 = vmax.f32 %v4108_v46, %v7335_v53  ;;  %v4370_v6 = vmax.f32 %v4337_v20, %v7445_v26  ;;  %v7433_v23 = vld [vmem:[%s10514_s12 + $0x8a8] sm:$0xff]  ;;  %v7196_v2 = vld [vmem:[%s10514_s12 + $0x140] sm:$0xff] }
 0x40d   : > { %v6878_v12 = vpop.f32.mrf.mxu1  ;;  %v4305_v10 = vmax.f32 %v4272_v36, %v7414_v60  ;;  %v4435_v49 = vmax.f32 %v4402_v31, %v7476_v37  ;;  %v4341_v56 = vmax.f32 %v4308_v5, %v7433_v23  ;;  %v7480_v8 = vld [vmem:[%s10514_s12 + $0xa20] sm:$0xff]  ;;  %v7493_v31 = vld [vmem:[%s10514_s12 + $0xa88] sm:$0xff]  ;;  %v7431_v5 = vld [vmem:[%s10514_s12 + $0x898] sm:$0xff] }
 0x40e   : > { %v6827_v29 = vadd.f32 %v6826_v38, %v6778_v15  ;;  %v6938_v62 = vmax.f32 %v6922_v51, 0.0  ;;  %v4340_v38 = vmax.f32 %v4307_v22, %v7432_v55  ;;  %v4174_v21 = vmax.f32 %v4141_v24, %v7351_v25  ;;  %v7399_v51 = vld [vmem:[%s10514_s12 + $0x798] sm:$0xff]  ;;  %v7212_v53 = vld [vmem:[%s10514_s12 + $0x1c0] sm:$0xff] }
 0x40f   : > { %v4338_v4 = vmax.f32 %v4305_v10, %v7430_v50  ;;  %v4468_v13 = vmax.f32 %v4435_v49, %v7492_v27  ;;  %v7244_v24 = vld [vmem:[%s10514_s12 + $0x2c0] sm:$0xff]  ;;  %v7481_v49 = vld [vmem:[%s10514_s12 + $0xa28] sm:$0xff] }
 0x410   : > { %v6876_v11 = vadd.f32 %v6875_v16, %v6827_v29  ;;  %6980 = vrot.lane.b32.xlu1 %v6938_v62, %s8834_s9  ;;  %v4373_v35 = vmax.f32 %v4340_v38, %v7448_v43  ;;  %v4207_v54 = vmax.f32 %v4174_v21, %v7367_v28  ;;  %v4403_v29 = vmax.f32 %v4370_v6, %v7461_v61  ;;  %v7446_v38 = vld [vmem:[%s10514_s12 + $0x910] sm:$0xff]  ;;  %v7508_v43 = vld [vmem:[%s10514_s12 + $0xb00] sm:$0xff] }
 0x411   : > { %v6731_v47 = vpop.f32.mrf.mxu2  ;;  %v3849_v62 = vmax.f32 %v3816_v52, %v7196_v2  ;;  %v7496_v25 = vld [vmem:[%s10514_s12 + $0xaa0] sm:$0xff]  ;;  %v4371_v60 = vmax.f32 %v4338_v4, %v7446_v38  ;;  %v7497_v38 = vld [vmem:[%s10514_s12 + $0xaa8] sm:$0xff] }
 0x412   : > { %v6780_v18 = vpop.f32.mrf.mxu3  ;;  %v6732_v16 = vadd.f32 %v6731_v47, %v10468_v19  ;;  %v6903_v0 = vmul.f32 %v10484_v32, %v6876_v11  ;;  %v7383_v19 = vld [vmem:[%s10514_s12 + $0x718] sm:$0xff]  ;;  %v4406_v55 = vmax.f32 %v4373_v35, %v7464_v41  ;;  %v7228_v11 = vld [vmem:[%s10514_s12 + $0x240] sm:$0xff]  ;;  %v7462_v35 = vld [vmem:[%s10514_s12 + $0x990] sm:$0xff] }
 0x413   : > { %v4240_v15 = vmax.f32 %v4207_v54, %v7383_v19  ;;  %v6831_v9 = vpop.f32.mrf.mxu0  ;;  %v3882_v47 = vmax.f32 %v3849_v62, %v7212_v53  ;;  %v7524_v37 = vld [vmem:[%s10514_s12 + $0xb80] sm:$0xff]  ;;  %v3781_v54 = vld [vmem:[%s10514_s12 + $0x30] sm:$0xff] }
 0x414   : > { %v6781_v34 = vadd.f32 %v6780_v18, %v6732_v16  ;;  %v6923_v58 = vadd.f32 %v10489_v33, %v6903_v0  ;;  %v4439_v20 = vmax.f32 %v4406_v55, %v7480_v8  ;;  %v4436_v16 = vmax.f32 %v4403_v29, %v7477_v30  ;;  %v7465_v0 = vld [vmem:[%s10514_s12 + $0x9a8] sm:$0xff]  ;;  %v7276_v23 = vld [vmem:[%s10514_s12 + $0x3c0] sm:$0xff]  ;;  %v7478_v8 = vld [vmem:[%s10514_s12 + $0xa10] sm:$0xff] }
 0x415   : > { %v4273_v46 = vmax.f32 %v4240_v15, %v7399_v51  ;;  %v3915_v26 = vmax.f32 %v3882_v47, %v7228_v11  ;;  %v7512_v10 = vld [vmem:[%s10514_s12 + $0xb20] sm:$0xff]  ;;  %v7447_v29 = vld [vmem:[%s10514_s12 + $0x918] sm:$0xff]  ;;  %v7226_v53 = vld [vmem:[%s10514_s12 + $0x230] sm:$0xff] }
 0x416   : > { %v6830_v42 = vadd.f32 %v6829_v45, %v6781_v34  ;;  %v6939_v44 = vmax.f32 %v6923_v58, 0.0  ;;  %v7449_v45 = vld [vmem:[%s10514_s12 + $0x928] sm:$0xff]  ;;  %v7260_v34 = vld [vmem:[%s10514_s12 + $0x340] sm:$0xff]  ;;  %v4501_v58 = vmax.f32 %v4468_v13, %v7508_v43  ;;  %v4472_v41 = vmax.f32 %v4439_v20, %v7496_v25 }
 0x417   : > { %v4374_v39 = vmax.f32 %v4341_v56, %v7449_v45  ;;  %v4306_v21 = vmax.f32 %v4273_v46, %v7415_v17  ;;  %v3948_v19 = vmax.f32 %v3915_v26, %v7244_v24  ;;  %v4469_v48 = vmax.f32 %v4436_v16, %v7493_v31  ;;  %v7292_v55 = vld [vmem:[%s10514_s12 + $0x440] sm:$0xff]  ;;  %v7194_v56 = vld [vmem:[%s10514_s12 + $0x130] sm:$0xff]  ;;  %v7525_v20 = vld [vmem:[%s10514_s12 + $0xb88] sm:$0xff] }
 0x418   : > { %v6879_v22 = vadd.f32 %v6878_v12, %v6830_v42  ;;  %6982 = vrot.lane.b32.xlu2 %v6939_v44, %s8834_s9  ;;  %v6880_v12 = vpop.f32.mrf.mxu1  ;;  %v7178_v42 = vld [vmem:[%s10514_s12 + $0xb0] sm:$0xff]  ;;  %v7308_v4 = vld [vmem:[%s10514_s12 + $0x4c0] sm:$0xff] }
 0x419   : > { %v6733_v57 = vpop.f32.mrf.mxu2  ;;  %v4407_v6 = vmax.f32 %v4374_v39, %v7465_v0  ;;  %v3981_v50 = vmax.f32 %v3948_v19, %v7260_v34  ;;  %v3814_v15 = vmax.f32 %v3781_v54, %v7178_v42  ;;  %v4339_v27 = vmax.f32 %v4306_v21, %v7431_v5  ;;  %v7210_v46 = vld [vmem:[%s10514_s12 + $0x1b0] sm:$0xff]  ;;  %v10714_v43 = vld [vmem:[%s10514_s12 + $0xc80] sm:$0xff]  ;;  %v3782_v5 = vld [vmem:[%s10514_s12 + $0x38] sm:$0xff] }
 0x41a   : > { %v6782_v7 = vpop.f32.mrf.mxu3  ;;  %v6734_v63 = vadd.f32 %v6733_v57, %v10472_v3  ;;  %v6904_v1 = vmul.f32 %v10484_v32, %v6879_v22  ;;  %v7509_v22 = vld [vmem:[%s10514_s12 + $0xb08] sm:$0xff]  ;;  %v4534_v57 = vmax.f32 %v4501_v58, %v7524_v37  ;;  %v7324_v25 = vld [vmem:[%s10514_s12 + $0x540] sm:$0xff]  ;;  %v7242_v16 = vld [vmem:[%s10514_s12 + $0x2b0] sm:$0xff] }
 0x41b   : > { %v6834_v2 = vpop.f32.mrf.mxu0  ;;  %v4014_v45 = vmax.f32 %v3981_v50, %v7276_v23  ;;  %v3847_v62 = vmax.f32 %v3814_v15, %v7194_v56  ;;  %v4440_v30 = vmax.f32 %v4407_v6, %v7481_v49  ;;  %v4502_v13 = vmax.f32 %v4469_v48, %v7509_v22  ;;  %v7544_v26 = vld [vmem:[%s10514_s12 + $0xc20] sm:$0xff]  ;;  %v7513_v6 = vld [vmem:[%s10514_s12 + $0xb28] sm:$0xff]  ;;  %v7274_v50 = vld [vmem:[%s10514_s12 + $0x3b0] sm:$0xff] }
 0x41c   : > { %v6783_v18 = vadd.f32 %v6782_v7, %v6734_v63  ;;  %v6924_v3 = vadd.f32 %v10489_v33, %v6904_v1  ;;  %v7540_v7 = vld [vmem:[%s10514_s12 + $0xc00] sm:$0xff]  ;;  %v4505_v1 = vmax.f32 %v4472_v41, %v7512_v10  ;;  %v4372_v24 = vmax.f32 %v4339_v27, %v7447_v29  ;;  %v7541_v41 = vld [vmem:[%s10514_s12 + $0xc08] sm:$0xff]  ;;  %v7179_v15 = vld [vmem:[%s10514_s12 + $0xb8] sm:$0xff] }
 0x41d   : > { %v4047_v17 = vmax.f32 %v4014_v45, %v7292_v55  ;;  %v3880_v47 = vmax.f32 %v3847_v62, %v7210_v46  ;;  %v4567_v0 = vmax.f32 %v4534_v57, %v7540_v7  ;;  %v4473_v58 = vmax.f32 %v4440_v30, %v7497_v38  ;;  %v7340_v37 = vld [vmem:[%s10514_s12 + $0x5c0] sm:$0xff]  ;;  %v7510_v27 = vld [vmem:[%s10514_s12 + $0xb10] sm:$0xff]  ;;  %v7211_v62 = vld [vmem:[%s10514_s12 + $0x1b8] sm:$0xff] }
 0x41e   : > { %v6832_v36 = vadd.f32 %v6831_v9, %v6783_v18  ;;  %v6940_v28 = vmax.f32 %v6924_v3, 0.0  ;;  %v4404_v9 = vmax.f32 %v4371_v60, %v7462_v35  ;;  %v7258_v35 = vld [vmem:[%s10514_s12 + $0x330] sm:$0xff]  ;;  %v7356_v54 = vld [vmem:[%s10514_s12 + $0x640] sm:$0xff]  ;;  %v3815_v56 = vmax.f32 %v3782_v5, %v7179_v15  ;;  %v10756_v30 = vld [vmem:[%s10514_s12 + $0xba8] sm:$0xff] }
 0x41f   : > { %v4080_v31 = vmax.f32 %v4047_v17, %v7308_v4  ;;  %v3913_v60 = vmax.f32 %v3880_v47, %v7226_v53  ;;  %v7572_v10 = vld [vmem:[%s10514_s12 + $0xd00] sm:$0xff]  ;;  %v4600_v22 = vmax.f32 %v4567_v0, %v10714_v43  ;;  %v7290_v45 = vld [vmem:[%s10514_s12 + $0x430] sm:$0xff] }
 0x420   : > { %v6881_v40 = vadd.f32 %v6880_v12, %v6832_v36  ;;  %6984 = vrot.lane.b32.xlu0 %v6940_v28, %s8834_s9  ;;  %v6883_v11 = vpop.f32.mrf.mxu1  ;;  %v7528_v12 = vld [vmem:[%s10514_s12 + $0xba0] sm:$0xff]  ;;  %v4437_v39 = vmax.f32 %v4404_v9, %v7478_v8  ;;  %v7494_v36 = vld [vmem:[%s10514_s12 + $0xa90] sm:$0xff]  ;;  %v7463_v28 = vld [vmem:[%s10514_s12 + $0x998] sm:$0xff]  ;;  %v10744_v8 = vmax.f32 %v4473_v58, %v7513_v6 }
 0x421   : > { %v6736_v44 = vpop.f32.mrf.mxu2  ;;  %v4538_v34 = vmax.f32 %v4505_v1, %v7528_v12  ;;  %v4113_v23 = vmax.f32 %v4080_v31, %v7324_v25  ;;  %v3946_v42 = vmax.f32 %v3913_v60, %v7242_v16  ;;  %v4405_v49 = vmax.f32 %v4372_v24, %v7463_v28  ;;  %v10737_v9 = vld [vmem:[%s10514_s12 + $0xca0] sm:$0xff]  ;;  %v10753_v1 = vld [vmem:[%s10514_s12 + $0xc88] sm:$0xff]  ;;  %v7306_v47 = vld [vmem:[%s10514_s12 + $0x4b0] sm:$0xff] }
 0x422   : > { %v6785_v61 = vpop.f32.mrf.mxu3  ;;  %v6737_v51 = vadd.f32 %v6736_v44, %v10475_v14  ;;  %v6905_v52 = vmul.f32 %v10484_v32, %v6881_v40  ;;  %v4535_v40 = vmax.f32 %v4502_v13, %v7525_v20  ;;  %v4470_v48 = vmax.f32 %v4437_v39, %v7494_v36  ;;  %v7372_v29 = vld [vmem:[%s10514_s12 + $0x6c0] sm:$0xff]  ;;  %v7495_v20 = vld [vmem:[%s10514_s12 + $0xa98] sm:$0xff]  ;;  %v7322_v16 = vld [vmem:[%s10514_s12 + $0x530] sm:$0xff] }
 0x423   : > { %v3979_v55 = vmax.f32 %v3946_v42, %v7258_v35  ;;  %v10742_v7 = vmax.f32 %v4538_v34, %v7544_v26  ;;  %v7388_v17 = vld [vmem:[%s10514_s12 + $0x740] sm:$0xff]  ;;  %v4633_v43 = vmax.f32 %v4600_v22, %v7572_v10  ;;  %v4539_v28 = vmax.f32 %v10744_v8, %v10756_v30  ;;  %v7243_v31 = vld [vmem:[%s10514_s12 + $0x2b8] sm:$0xff]  ;;  %v7545_v58 = vld [vmem:[%s10514_s12 + $0xc28] sm:$0xff] }
 0x424   : > { %v6786_v14 = vadd.f32 %v6785_v61, %v6737_v51  ;;  %v6925_v63 = vadd.f32 %v10489_v33, %v6905_v52  ;;  %v7195_v51 = vld [vmem:[%s10514_s12 + $0x138] sm:$0xff]  ;;  %v10761_v13 = vmax.f32 %v4470_v48, %v7510_v27  ;;  %v7404_v24 = vld [vmem:[%s10514_s12 + $0x7c0] sm:$0xff]  ;;  %v7573_v42 = vld [vmem:[%s10514_s12 + $0xd08] sm:$0xff] }
 0x425   : > { %v4012_v46 = vmax.f32 %v3979_v55, %v7274_v50  ;;  %v3848_v53 = vmax.f32 %v3815_v56, %v7195_v51  ;;  %v4604_v36 = vmax.f32 %v10742_v7, %v10737_v9  ;;  %v3786_v60 = vld [vmem:[%s10514_s12 + $0x58] sm:$0xff]  ;;  %v7576_v34 = vld [vmem:[%s10514_s12 + $0xd20] sm:$0xff]  ;;  %v7338_v10 = vld [vmem:[%s10514_s12 + $0x5b0] sm:$0xff]  ;;  %v10811_v8 = vmax.f32 %v4539_v28, %v7545_v58 }
 0x426   : > { %v6835_v18 = vadd.f32 %v6834_v2, %v6786_v14  ;;  %v6941_v3 = vmax.f32 %v6925_v63, 0.0  ;;  %v6836_v14 = vpop.f32.mrf.mxu0  ;;  %v10750_v63 = vmax.f32 %v4535_v40, %v7541_v41  ;;  %v7420_v35 = vld [vmem:[%s10514_s12 + $0x840] sm:$0xff]  ;;  %v7259_v48 = vld [vmem:[%s10514_s12 + $0x338] sm:$0xff]  ;;  %v7542_v15 = vld [vmem:[%s10514_s12 + $0xc10] sm:$0xff] }
 0x427   : > { %v4045_v25 = vmax.f32 %v4012_v46, %v7290_v45  ;;  %v3881_v0 = vmax.f32 %v3848_v53, %v7211_v62  ;;  %v8768_v6 = vld [vmem:[%s11149_s3] ss:$0 sm:$0xff]  ;;  %v7511_v51 = vld [vmem:[%s10514_s12 + $0xb18] sm:$0xff]  ;;  %v4637_v55 = vmax.f32 %v4604_v36, %v7576_v34  ;;  %v7370_v46 = vld [vmem:[%s10514_s12 + $0x6b0] sm:$0xff] }
 0x428   : > { %v6884_v21 = vadd.f32 %v6883_v11, %v6835_v18  ;;  %6986 = vrot.lane.b32.xlu1 %v6941_v3, %s8834_s9  ;;  %v7227_v18 = vld [vmem:[%s10514_s12 + $0x238] sm:$0xff]  ;;  %v6885_v3 = vpop.f32.mrf.mxu1  ;;  %v7436_v56 = vld [vmem:[%s10514_s12 + $0x8c0] sm:$0xff]  ;;  %v3784_v36 = vld [vmem:[%s10514_s12 + $0x48] sm:$0xff] }
 0x429   : > { %v6738_v19 = vpop.f32.mrf.mxu2  ;;  %v4078_v5 = vmax.f32 %v4045_v25, %v7306_v47  ;;  %v7215_v27 = vld [vmem:[%s10514_s12 + $0x1d8] sm:$0xff]  ;;  %v7574_v58 = vld [vmem:[%s10514_s12 + $0xd10] sm:$0xff] }
 0x42a   : > { %v6739_v44 = vadd.f32 %v6738_v19, %v10478_v59  ;;  %v6906_v61 = vmul.f32 %v10484_v32, %v6884_v21  ;;  %v6787_v52 = vpop.f32.mrf.mxu3  ;;  %v7479_v59 = vld [vmem:[%s10514_s12 + $0xa18] sm:$0xff]  ;;  %v4146_v32 = vmax.f32 %v4113_v23, %v7340_v37  ;;  %v3914_v19 = vmax.f32 %v3881_v0, %v7227_v18 }
 0x42b   : > { %v10763_v38 = vmax.f32 %v4405_v49, %v7479_v59  ;;  %v7183_v21 = vld [vmem:[%s10514_s12 + $0xd8] sm:$0xff]  ;;  %v4111_v22 = vmax.f32 %v4078_v5, %v7322_v16  ;;  %v8769_v59 = vld [vmem:[%s11150_s4] ss:$0 sm:$0xff] }
 0x42c   : > { %v6788_v2 = vadd.f32 %v6787_v52, %v6739_v44  ;;  %v6926_v57 = vadd.f32 %v10489_v33, %v6906_v61  ;;  %v10759_v33 = vld [vmem:[%s10514_s12 + $0xb90] sm:$0xff]  ;;  %v4179_v4 = vmax.f32 %v4146_v32, %v7356_v54  ;;  %v3819_v40 = vmax.f32 %v3786_v60, %v7183_v21  ;;  %v7199_v49 = vld [vmem:[%s10514_s12 + $0x158] sm:$0xff]  ;;  %v7577_v21 = vld [vmem:[%s10514_s12 + $0xd28] sm:$0xff] }
 0x42d   : > { %v4601_v54 = vmax.f32 %v10750_v63, %v10753_v1  ;;  %v4536_v44 = vmax.f32 %v10761_v13, %v10759_v33  ;;  %v4471_v61 = vmax.f32 %v10763_v38, %v7495_v20  ;;  %v3947_v9 = vmax.f32 %v3914_v19, %v7243_v31  ;;  %v7231_v63 = vld [vmem:[%s10514_s12 + $0x258] sm:$0xff]  ;;  %v7558_v13 = vld [vmem:[%s10514_s12 + $0xc90] sm:$0xff]  ;;  %v7181_v19 = vld [vmem:[%s10514_s12 + $0xc8] sm:$0xff] }
 0x42e   : > { %v6837_v11 = vadd.f32 %v6836_v14, %v6788_v2  ;;  %v6942_v12 = vmax.f32 %v6926_v57, 0.0  ;;  %v4212_v39 = vmax.f32 %v4179_v4, %v7372_v29  ;;  %v7354_v2 = vld [vmem:[%s10514_s12 + $0x630] sm:$0xff]  ;;  %v7275_v57 = vld [vmem:[%s10514_s12 + $0x3b8] sm:$0xff]  ;;  %v3852_v7 = vmax.f32 %v3819_v40, %v7199_v49  ;;  %v10814_v29 = vld [vmem:[%s10514_s12 + $0xca8] sm:$0xff] }
 0x42f   : > { %v4144_v62 = vmax.f32 %v4111_v22, %v7338_v10  ;;  %v3980_v14 = vmax.f32 %v3947_v9, %v7259_v48  ;;  %v4569_v30 = vmax.f32 %v4536_v44, %v7542_v15  ;;  %v4504_v33 = vmax.f32 %v4471_v61, %v7511_v51  ;;  %v7452_v4 = vld [vmem:[%s10514_s12 + $0x940] sm:$0xff]  ;;  %v7291_v53 = vld [vmem:[%s10514_s12 + $0x438] sm:$0xff]  ;;  %v7386_v20 = vld [vmem:[%s10514_s12 + $0x730] sm:$0xff] }
 0x430   : > { %v6886_v26 = vadd.f32 %v6885_v3, %v6837_v11  ;;  %6988 = vrot.lane.b32.xlu2 %v6942_v12, %s8834_s9  ;;  %v4245_v37 = vmax.f32 %v4212_v39, %v7388_v17  ;;  %v3885_v11 = vmax.f32 %v3852_v7, %v7215_v27  ;;  %v4634_v12 = vmax.f32 %v4601_v54, %v7573_v42  ;;  %v7527_v38 = vld [vmem:[%s10514_s12 + $0xb98] sm:$0xff]  ;;  %v7484_v61 = vld [vmem:[%s10514_s12 + $0xa40] sm:$0xff]  ;;  %v7418_v10 = vld [vmem:[%s10514_s12 + $0x830] sm:$0xff] }
 0x431   : > { %v4177_v47 = vmax.f32 %v4144_v62, %v7354_v2  ;;  %v4013_v18 = vmax.f32 %v3980_v14, %v7275_v57  ;;  %v7247_v3 = vld [vmem:[%s10514_s12 + $0x2d8] sm:$0xff]  ;;  %v4605_v60 = vmax.f32 %v10811_v8, %v10814_v29  ;;  %v4602_v34 = vmax.f32 %v4569_v30, %v7558_v13  ;;  %v7197_v15 = vld [vmem:[%s10514_s12 + $0x148] sm:$0xff] }
 0x432   : > { %v6961_v41 = vpop.permute.xlu0 %6960  ;;  %v6907_v23 = vmul.f32 %v8768_v6, %v6886_v26  ;;  %v4278_v52 = vmax.f32 %v4245_v37, %v7404_v24  ;;  %v3918_v39 = vmax.f32 %v3885_v11, %v7231_v63  ;;  %v7307_v0 = vld [vmem:[%s10514_s12 + $0x4b8] sm:$0xff]  ;;  %v4537_v37 = vmax.f32 %v4504_v33, %v7527_v38  ;;  %v7213_v9 = vld [vmem:[%s10514_s12 + $0x1c8] sm:$0xff]  ;;  %v7500_v63 = vld [vmem:[%s10514_s12 + $0xac0] sm:$0xff] }
 0x433   : > { %v7008_v50 = vsel %vm6177_vm0, %v4633_v43, %v6961_v41  ;;  %7026 = vst.msk [vmem:[%s10797_s16 + $0x8] sm:$0xff] %vm7025_vm1, %v6961_v41  ;;  %v7468_v43 = vld [vmem:[%s10514_s12 + $0x9c0] sm:$0xff]  ;;  %v4210_v25 = vmax.f32 %v4177_v47, %v7370_v46  ;;  %v4046_v16 = vmax.f32 %v4013_v18, %v7291_v53  ;;  %v7263_v26 = vld [vmem:[%s10514_s12 + $0x358] sm:$0xff]  ;;  %v4638_v57 = vmax.f32 %v4605_v60, %v7577_v21  ;;  %v7229_v14 = vld [vmem:[%s10514_s12 + $0x248] sm:$0xff] }
 0x434   : > { %7024 = vst [vmem:[%s10797_s16] sm:$0xff] %v7008_v50  ;;  %v6927_v32 = vadd.f32 %v8769_v59, %v6907_v23  ;;  %v4311_v45 = vmax.f32 %v4278_v52, %v7420_v35  ;;  %v7402_v35 = vld [vmem:[%s10514_s12 + $0x7b0] sm:$0xff]  ;;  %v3951_v5 = vmax.f32 %v3918_v39, %v7247_v3  ;;  %v7543_v6 = vld [vmem:[%s10514_s12 + $0xc18] sm:$0xff]  ;;  %v3817_v50 = vmax.f32 %v3784_v36, %v7181_v19  ;;  %v7516_v18 = vld [vmem:[%s10514_s12 + $0xb40] sm:$0xff] }
 0x435   : > { %v4243_v54 = vmax.f32 %v4210_v25, %v7386_v20  ;;  %v7323_v42 = vld [vmem:[%s10514_s12 + $0x538] sm:$0xff]  ;;  %v4079_v48 = vmax.f32 %v4046_v16, %v7307_v0  ;;  %v4570_v27 = vmax.f32 %v4537_v37, %v7543_v6  ;;  %v4635_v7 = vmax.f32 %v4602_v34, %v7574_v58  ;;  %v7466_v3 = vld [vmem:[%s10514_s12 + $0x9b0] sm:$0xff] }
 0x436   : > { %v6943_v1 = vmax.f32 %v6927_v32, 0.0  ;;  %v4344_v17 = vmax.f32 %v4311_v45, %v7436_v56  ;;  %v7279_v44 = vld [vmem:[%s10514_s12 + $0x3d8] sm:$0xff]  ;;  %v3984_v49 = vmax.f32 %v3951_v5, %v7263_v26  ;;  %v7434_v32 = vld [vmem:[%s10514_s12 + $0x8b0] sm:$0xff]  ;;  %v3850_v2 = vmax.f32 %v3817_v50, %v7197_v15 }
 0x437   : > { %v4276_v51 = vmax.f32 %v4243_v54, %v7402_v35  ;;  %v7339_v52 = vld [vmem:[%s10514_s12 + $0x5b8] sm:$0xff]  ;;  %v3785_v58 = vld [vmem:[%s10514_s12 + $0x50] sm:$0xff] }
 0x438   : > { %6990 = vrot.lane.b32.xlu0 %v6943_v1, %s8834_s9  ;;  %v4377_v24 = vmax.f32 %v4344_v17, %v7452_v4  ;;  %v7295_v22 = vld [vmem:[%s10514_s12 + $0x458] sm:$0xff]  ;;  %v4017_v56 = vmax.f32 %v3984_v49, %v7279_v44  ;;  %v7450_v1 = vld [vmem:[%s10514_s12 + $0x930] sm:$0xff]  ;;  %v3883_v4 = vmax.f32 %v3850_v2, %v7213_v9  ;;  %v7309_v2 = vld [vmem:[%s10514_s12 + $0x4c8] sm:$0xff]  ;;  %s7058_s9 = scalar_lea.sflag [#allocation4], %s10507_s10 }
 0x439   : > { %v7559_v59 = vld [vmem:[%s10514_s12 + $0xc98] sm:$0xff]  ;;  %v4309_v29 = vmax.f32 %v4276_v51, %v7418_v10  ;;  %v7182_v37 = vld [vmem:[%s10514_s12 + $0xd0] sm:$0xff]  ;;  %v7293_v51 = vld [vmem:[%s10514_s12 + $0x448] sm:$0xff] }
 0x43a   : > { %v6969_v28 = vpop.permute.xlu2 %6968  ;;  %v6963_v31 = vpop.permute.xlu0 %6962  ;;  %v4410_v23 = vmax.f32 %v4377_v24, %v7468_v43  ;;  %v7355_v45 = vld [vmem:[%s10514_s12 + $0x638] sm:$0xff]  ;;  %v4050_v33 = vmax.f32 %v4017_v56, %v7295_v22  ;;  %v4603_v17 = vmax.f32 %v4570_v27, %v7559_v59  ;;  %v3916_v39 = vmax.f32 %v3883_v4, %v7229_v14  ;;  %v7198_v44 = vld [vmem:[%s10514_s12 + $0x150] sm:$0xff]  ;;  %v7532_v22 = vld [vmem:[%s10514_s12 + $0xbc0] sm:$0xff] }
 0x43b   : > { %v7012_v40 = vsel %vm6177_vm0, %v4637_v55, %v6969_v28  ;;  %7034 = vst.msk [vmem:[%s10797_s16 + $0x48] sm:$0xff] %vm7025_vm1, %v6969_v28  ;;  %v7009_v41 = vsel %vm6177_vm0, %v4634_v12, %v6963_v31  ;;  %v4112_v55 = vmax.f32 %v4079_v48, %v7323_v42  ;;  %v7311_v62 = vld [vmem:[%s10514_s12 + $0x4d8] sm:$0xff]  ;;  %v4342_v46 = vmax.f32 %v4309_v29, %v7434_v32  ;;  %v7245_v12 = vld [vmem:[%s10514_s12 + $0x2c8] sm:$0xff]  ;;  %v7498_v50 = vld [vmem:[%s10514_s12 + $0xab0] sm:$0xff] }
 0x43c   : > { %7033 = vst [vmem:[%s10797_s16 + $0x40] sm:$0xff] %v7012_v40  ;;  %v4443_v8 = vmax.f32 %v4410_v23, %v7484_v61  ;;  %v7371_v53 = vld [vmem:[%s10514_s12 + $0x6b8] sm:$0xff]  ;;  %v4083_v20 = vmax.f32 %v4050_v33, %v7311_v62  ;;  %v7261_v28 = vld [vmem:[%s10514_s12 + $0x348] sm:$0xff]  ;;  %v3949_v34 = vmax.f32 %v3916_v39, %v7245_v12  ;;  %v7214_v61 = vld [vmem:[%s10514_s12 + $0x1d0] sm:$0xff] }
 0x43d   : > { %7027 = vst [vmem:[%s10797_s16 + $0x10] sm:$0xff] %v7009_v41  ;;  %v4145_v30 = vmax.f32 %v4112_v55, %v7339_v52  ;;  %v7327_v11 = vld [vmem:[%s10514_s12 + $0x558] sm:$0xff]  ;;  %v4375_v0 = vmax.f32 %v4342_v46, %v7450_v1  ;;  %v7277_v40 = vld [vmem:[%s10514_s12 + $0x3c8] sm:$0xff]  ;;  %v3818_v41 = vmax.f32 %v3785_v58, %v7182_v37  ;;  %v7230_v32 = vld [vmem:[%s10514_s12 + $0x250] sm:$0xff] }
 0x43e   : > { %7028 = vst.msk [vmem:[%s10797_s16 + $0x18] sm:$0xff] %vm7025_vm1, %v6963_v31  ;;  %v7575_v47 = vld [vmem:[%s10514_s12 + $0xd18] sm:$0xff]  ;;  %v4476_v16 = vmax.f32 %v4443_v8, %v7500_v63  ;;  %v7482_v31 = vld [vmem:[%s10514_s12 + $0xa30] sm:$0xff]  ;;  %v4116_v21 = vmax.f32 %v4083_v20, %v7327_v11  ;;  %v3982_v42 = vmax.f32 %v3949_v34, %v7261_v28  ;;  %v7325_v46 = vld [vmem:[%s10514_s12 + $0x548] sm:$0xff] }
 0x43f   : > { %v4178_v43 = vmax.f32 %v4145_v30, %v7355_v45  ;;  %v7387_v26 = vld [vmem:[%s10514_s12 + $0x738] sm:$0xff]  ;;  %v4408_v35 = vmax.f32 %v4375_v0, %v7466_v3  ;;  %v4636_v10 = vmax.f32 %v4603_v17, %v7575_v47  ;;  %v3851_v52 = vmax.f32 %v3818_v41, %v7198_v44  ;;  %v7514_v29 = vld [vmem:[%s10514_s12 + $0xb30] sm:$0xff]  ;;  %v7548_v11 = vld [vmem:[%s10514_s12 + $0xc40] sm:$0xff] }
 0x440   : > { %v7343_v36 = vld [vmem:[%s10514_s12 + $0x5d8] sm:$0xff]  ;;  %v4509_v48 = vmax.f32 %v4476_v16, %v7516_v18  ;;  %v4015_v59 = vmax.f32 %v3982_v42, %v7277_v40  ;;  %v7246_v63 = vld [vmem:[%s10514_s12 + $0x2d0] sm:$0xff]  ;;  %v7564_v39 = vld [vmem:[%s10514_s12 + $0xcc0] sm:$0xff] }
 0x441   : > { %v4211_v60 = vmax.f32 %v4178_v43, %v7371_v53  ;;  %v7403_v5 = vld [vmem:[%s10514_s12 + $0x7b8] sm:$0xff]  ;;  %v4149_v54 = vmax.f32 %v4116_v21, %v7343_v36  ;;  %v4441_v49 = vmax.f32 %v4408_v35, %v7482_v31  ;;  %v7262_v17 = vld [vmem:[%s10514_s12 + $0x350] sm:$0xff]  ;;  %v7341_v43 = vld [vmem:[%s10514_s12 + $0x5c8] sm:$0xff] }
 0x442   : > { %v6971_v13 = vpop.permute.xlu2 %6970  ;;  %v6965_v38 = vpop.permute.xlu1 %6964  ;;  %v7359_v19 = vld [vmem:[%s10514_s12 + $0x658] sm:$0xff]  ;;  %v4048_v14 = vmax.f32 %v4015_v59, %v7293_v51  ;;  %v4542_v30 = vmax.f32 %v4509_v48, %v7532_v22  ;;  %v7530_v47 = vld [vmem:[%s10514_s12 + $0xbb0] sm:$0xff]  ;;  %v7357_v34 = vld [vmem:[%s10514_s12 + $0x648] sm:$0xff] }
 0x443   : > { %v7013_v24 = vsel %vm6177_vm0, %v4638_v57, %v6971_v13  ;;  %7036 = vst.msk [vmem:[%s10797_s16 + $0x58] sm:$0xff] %vm7025_vm1, %v6971_v13  ;;  %v7010_v25 = vsel %vm6177_vm0, %v4635_v7, %v6965_v38  ;;  %v4244_v6 = vmax.f32 %v4211_v60, %v7387_v26  ;;  %v7419_v23 = vld [vmem:[%s10514_s12 + $0x838] sm:$0xff]  ;;  %v4182_v27 = vmax.f32 %v4149_v54, %v7359_v19  ;;  %v7278_v26 = vld [vmem:[%s10514_s12 + $0x3d0] sm:$0xff]  ;;  %v7373_v42 = vld [vmem:[%s10514_s12 + $0x6c8] sm:$0xff] }
 0x444   : > { %7035 = vst [vmem:[%s10797_s16 + $0x50] sm:$0xff] %v7013_v24  ;;  %v7375_v15 = vld [vmem:[%s10514_s12 + $0x6d8] sm:$0xff]  ;;  %v3884_v57 = vmax.f32 %v3851_v52, %v7214_v61  ;;  %v4474_v8 = vmax.f32 %v4441_v49, %v7498_v50  ;;  %v3789_v36 = vld [vmem:[%s10514_s12 + $0x70] sm:$0xff]  ;;  %v4575_v31 = vmax.f32 %v4542_v30, %v7548_v11  ;;  %v7389_v59 = vld [vmem:[%s10514_s12 + $0x748] sm:$0xff] }
 0x445   : > { %7029 = vst [vmem:[%s10797_s16 + $0x20] sm:$0xff] %v7010_v25  ;;  %v4277_v9 = vmax.f32 %v4244_v6, %v7403_v5  ;;  %v7435_v55 = vld [vmem:[%s10514_s12 + $0x8b8] sm:$0xff]  ;;  %v4215_v62 = vmax.f32 %v4182_v27, %v7375_v15  ;;  %v7186_v28 = vld [vmem:[%s10514_s12 + $0xf0] sm:$0xff] }
 0x446   : > { %7030 = vst.msk [vmem:[%s10797_s16 + $0x28] sm:$0xff] %vm7025_vm1, %v6965_v38  ;;  %v7391_v56 = vld [vmem:[%s10514_s12 + $0x758] sm:$0xff]  ;;  %v3917_v53 = vmax.f32 %v3884_v57, %v7230_v32  ;;  %v4081_v38 = vmax.f32 %v4048_v14, %v7309_v2  ;;  %v4507_v24 = vmax.f32 %v4474_v8, %v7514_v29  ;;  %v3822_v37 = vmax.f32 %v3789_v36, %v7186_v28  ;;  %v7294_v40 = vld [vmem:[%s10514_s12 + $0x450] sm:$0xff]  ;;  %v7405_v14 = vld [vmem:[%s10514_s12 + $0x7c8] sm:$0xff] }
 0x447   : > { %v4310_v45 = vmax.f32 %v4277_v9, %v7419_v23  ;;  %v7451_v33 = vld [vmem:[%s10514_s12 + $0x938] sm:$0xff]  ;;  %v4248_v13 = vmax.f32 %v4215_v62, %v7391_v56  ;;  %v7202_v41 = vld [vmem:[%s10514_s12 + $0x170] sm:$0xff]  ;;  %v4608_v22 = vmax.f32 %v4575_v31, %v7564_v39  ;;  %v7580_v56 = vld [vmem:[%s10514_s12 + $0xd40] sm:$0xff] }
 0x448   : > { %v7407_v4 = vld [vmem:[%s10514_s12 + $0x7d8] sm:$0xff]  ;;  %v3950_v20 = vmax.f32 %v3917_v53, %v7246_v63  ;;  %v4114_v0 = vmax.f32 %v4081_v38, %v7325_v46  ;;  %v7218_v6 = vld [vmem:[%s10514_s12 + $0x1f0] sm:$0xff]  ;;  %v3855_v61 = vmax.f32 %v3822_v37, %v7202_v41 }
 0x449   : > { %v4343_v12 = vmax.f32 %v4310_v45, %v7435_v55  ;;  %v7467_v18 = vld [vmem:[%s10514_s12 + $0x9b8] sm:$0xff]  ;;  %v4281_v16 = vmax.f32 %v4248_v13, %v7407_v4  ;;  %v7546_v48 = vld [vmem:[%s10514_s12 + $0xc30] sm:$0xff]  ;;  %v4641_v13 = vmax.f32 %v4608_v22, %v7580_v56 }
 0x44a   : > { %v6967_v7 = vpop.permute.xlu1 %6966  ;;  %v7423_v3 = vld [vmem:[%s10514_s12 + $0x858] sm:$0xff]  ;;  %v3983_v58 = vmax.f32 %v3950_v20, %v7262_v17  ;;  %v4147_v19 = vmax.f32 %v4114_v0, %v7341_v43  ;;  %v7310_v51 = vld [vmem:[%s10514_s12 + $0x4d0] sm:$0xff]  ;;  %v3888_v55 = vmax.f32 %v3855_v61, %v7218_v6  ;;  %v7421_v17 = vld [vmem:[%s10514_s12 + $0x848] sm:$0xff] }
 0x44b   : > { %v7011_v1 = vsel %vm6177_vm0, %v4636_v10, %v6967_v7  ;;  %7032 = vst.msk [vmem:[%s10797_s16 + $0x38] sm:$0xff] %vm7025_vm1, %v6967_v7  ;;  %v4376_v25 = vmax.f32 %v4343_v12, %v7451_v33  ;;  %v7483_v60 = vld [vmem:[%s10514_s12 + $0xa38] sm:$0xff]  ;;  %v4314_v5 = vmax.f32 %v4281_v16, %v7423_v3  ;;  %v4540_v10 = vmax.f32 %v4507_v24, %v7530_v47  ;;  %v7234_v52 = vld [vmem:[%s10514_s12 + $0x270] sm:$0xff]  ;;  %v3787_v24 = vld [vmem:[%s10514_s12 + $0x60] sm:$0xff] }
 0x44c   : > { %7031 = vst [vmem:[%s10797_s16 + $0x30] sm:$0xff] %v7011_v1  ;;  %v7439_v21 = vld [vmem:[%s10514_s12 + $0x8d8] sm:$0xff]  ;;  %v4016_v44 = vmax.f32 %v3983_v58, %v7278_v26  ;;  %v4180_v15 = vmax.f32 %v4147_v19, %v7357_v34  ;;  %v7326_v8 = vld [vmem:[%s10514_s12 + $0x550] sm:$0xff]  ;;  %v3921_v1 = vmax.f32 %v3888_v55, %v7234_v52  ;;  %v7437_v16 = vld [vmem:[%s10514_s12 + $0x8c8] sm:$0xff] }
 0x44d   : > { %v4409_v35 = vmax.f32 %v4376_v25, %v7467_v18  ;;  %v7499_v23 = vld [vmem:[%s10514_s12 + $0xab8] sm:$0xff]  ;;  %v4347_v50 = vmax.f32 %v4314_v5, %v7439_v21  ;;  %v7250_v29 = vld [vmem:[%s10514_s12 + $0x2f0] sm:$0xff]  ;;  %v4573_v30 = vmax.f32 %v4540_v10, %v7546_v48  ;;  %v7184_v25 = vld [vmem:[%s10514_s12 + $0xe0] sm:$0xff] }
 0x44e   : > { %v7455_v54 = vld [vmem:[%s10514_s12 + $0x958] sm:$0xff]  ;;  %v4049_v32 = vmax.f32 %v4016_v44, %v7294_v40  ;;  %v4213_v7 = vmax.f32 %v4180_v15, %v7373_v42  ;;  %v7562_v45 = vld [vmem:[%s10514_s12 + $0xcb0] sm:$0xff]  ;;  %v3954_v3 = vmax.f32 %v3921_v1, %v7250_v29  ;;  %v3820_v28 = vmax.f32 %v3787_v24, %v7184_v25  ;;  %v7200_v5 = vld [vmem:[%s10514_s12 + $0x160] sm:$0xff] }
 0x44f   : > { %v4442_v49 = vmax.f32 %v4409_v35, %v7483_v60  ;;  %v7515_v9 = vld [vmem:[%s10514_s12 + $0xb38] sm:$0xff]  ;;  %v4380_v57 = vmax.f32 %v4347_v50, %v7455_v54  ;;  %v7342_v11 = vld [vmem:[%s10514_s12 + $0x5d0] sm:$0xff]  ;;  %v4606_v60 = vmax.f32 %v4573_v30, %v7562_v45  ;;  %v7216_v19 = vld [vmem:[%s10514_s12 + $0x1e0] sm:$0xff] }
 0x450   : > { %v7471_v27 = vld [vmem:[%s10514_s12 + $0x9d8] sm:$0xff]  ;;  %v4082_v63 = vmax.f32 %v4049_v32, %v7310_v51  ;;  %v4246_v53 = vmax.f32 %v4213_v7, %v7389_v59  ;;  %v7266_v12 = vld [vmem:[%s10514_s12 + $0x370] sm:$0xff]  ;;  %v3853_v44 = vmax.f32 %v3820_v28, %v7200_v5  ;;  %v7469_v50 = vld [vmem:[%s10514_s12 + $0x9c8] sm:$0xff] }
 0x451   : > { %v4475_v2 = vmax.f32 %v4442_v49, %v7499_v23  ;;  %v7487_v62 = vld [vmem:[%s10514_s12 + $0xa58] sm:$0xff]  ;;  %v4413_v46 = vmax.f32 %v4380_v57, %v7471_v27  ;;  %v7358_v18 = vld [vmem:[%s10514_s12 + $0x650] sm:$0xff]  ;;  %v3987_v36 = vmax.f32 %v3954_v3, %v7266_v12  ;;  %v7453_v23 = vld [vmem:[%s10514_s12 + $0x948] sm:$0xff] }
 0x452   : > { %v7531_v4 = vld [vmem:[%s10514_s12 + $0xbb8] sm:$0xff]  ;;  %v4115_v47 = vmax.f32 %v4082_v63, %v7326_v8  ;;  %v4279_v20 = vmax.f32 %v4246_v53, %v7405_v14  ;;  %v7282_v39 = vld [vmem:[%s10514_s12 + $0x3f0] sm:$0xff]  ;;  %v7232_v49 = vld [vmem:[%s10514_s12 + $0x260] sm:$0xff]  ;;  %v3886_v52 = vmax.f32 %v3853_v44, %v7216_v19 }
 0x453   : > { %v4508_v33 = vmax.f32 %v4475_v2, %v7515_v9  ;;  %v7503_v38 = vld [vmem:[%s10514_s12 + $0xad8] sm:$0xff]  ;;  %v4446_v43 = vmax.f32 %v4413_v46, %v7487_v62  ;;  %v7374_v26 = vld [vmem:[%s10514_s12 + $0x6d0] sm:$0xff]  ;;  %v4020_v42 = vmax.f32 %v3987_v36, %v7282_v39  ;;  %v7248_v55 = vld [vmem:[%s10514_s12 + $0x2e0] sm:$0xff] }
 0x454   : > { %v4148_v0 = vmax.f32 %v4115_v47, %v7342_v11  ;;  %v7578_v21 = vld [vmem:[%s10514_s12 + $0xd30] sm:$0xff]  ;;  %v4312_v37 = vmax.f32 %v4279_v20, %v7421_v17  ;;  %v7547_v41 = vld [vmem:[%s10514_s12 + $0xc38] sm:$0xff]  ;;  %v7485_v7 = vld [vmem:[%s10514_s12 + $0xa48] sm:$0xff]  ;;  %v3919_v45 = vmax.f32 %v3886_v52, %v7232_v49 }
 0x455   : > { %v4541_v34 = vmax.f32 %v4508_v33, %v7531_v4  ;;  %v4479_v58 = vmax.f32 %v4446_v43, %v7503_v38  ;;  %v7298_v35 = vld [vmem:[%s10514_s12 + $0x470] sm:$0xff]  ;;  %v7519_v6 = vld [vmem:[%s10514_s12 + $0xb58] sm:$0xff]  ;;  %v4639_v56 = vmax.f32 %v4606_v60, %v7578_v21  ;;  %v7264_v1 = vld [vmem:[%s10514_s12 + $0x360] sm:$0xff] }
 0x456   : > { %v4181_v54 = vmax.f32 %v4148_v0, %v7358_v18  ;;  %v4345_v61 = vmax.f32 %v4312_v37, %v7437_v16  ;;  %v7390_v10 = vld [vmem:[%s10514_s12 + $0x750] sm:$0xff]  ;;  %v4053_v51 = vmax.f32 %v4020_v42, %v7298_v35  ;;  %v7563_v2 = vld [vmem:[%s10514_s12 + $0xcb8] sm:$0xff]  ;;  %v7501_v33 = vld [vmem:[%s10514_s12 + $0xac8] sm:$0xff]  ;;  %v3952_v11 = vmax.f32 %v3919_v45, %v7248_v55 }
 0x457   : > { %v7314_v48 = vld [vmem:[%s10514_s12 + $0x4f0] sm:$0xff]  ;;  %v4574_v22 = vmax.f32 %v4541_v34, %v7547_v41  ;;  %v4512_v9 = vmax.f32 %v4479_v58, %v7519_v6  ;;  %v7535_v57 = vld [vmem:[%s10514_s12 + $0xbd8] sm:$0xff]  ;;  %v7280_v3 = vld [vmem:[%s10514_s12 + $0x3e0] sm:$0xff] }
 0x458   : > { %v4214_v15 = vmax.f32 %v4181_v54, %v7374_v26  ;;  %v4378_v27 = vmax.f32 %v4345_v61, %v7453_v23  ;;  %v7406_v59 = vld [vmem:[%s10514_s12 + $0x7d0] sm:$0xff]  ;;  %v4086_v29 = vmax.f32 %v4053_v51, %v7314_v48  ;;  %v7551_v30 = vld [vmem:[%s10514_s12 + $0xc58] sm:$0xff]  ;;  %v3788_v43 = vld [vmem:[%s10514_s12 + $0x68] sm:$0xff]  ;;  %v3985_v0 = vmax.f32 %v3952_v11, %v7264_v1 }
 0x459   : > { %v7330_v32 = vld [vmem:[%s10514_s12 + $0x570] sm:$0xff]  ;;  %v7579_v38 = vld [vmem:[%s10514_s12 + $0xd38] sm:$0xff]  ;;  %v4545_v17 = vmax.f32 %v4512_v9, %v7535_v57  ;;  %v7517_v39 = vld [vmem:[%s10514_s12 + $0xb48] sm:$0xff] }
 0x45a   : > { %v6977_v31 = vpop.permute.xlu2 %6976  ;;  %v4247_v8 = vmax.f32 %v4214_v15, %v7390_v10  ;;  %v4411_v62 = vmax.f32 %v4378_v27, %v7469_v50  ;;  %v7422_v14 = vld [vmem:[%s10514_s12 + $0x850] sm:$0xff]  ;;  %v4119_v53 = vmax.f32 %v4086_v29, %v7330_v32  ;;  %v7185_v26 = vld [vmem:[%s10514_s12 + $0xe8] sm:$0xff]  ;;  %v4018_v37 = vmax.f32 %v3985_v0, %v7280_v3  ;;  %v7312_v6 = vld [vmem:[%s10514_s12 + $0x4e0] sm:$0xff] }
 0x45b   : > { %v7016_v40 = vsel %vm6177_vm0, %v4641_v13, %v6977_v31  ;;  %7042 = vst.msk [vmem:[%s10797_s16 + $0x88] sm:$0xff] %vm7025_vm1, %v6977_v31  ;;  %v7346_v63 = vld [vmem:[%s10514_s12 + $0x5f0] sm:$0xff]  ;;  %v4607_v13 = vmax.f32 %v4574_v22, %v7563_v2  ;;  %v7296_v31 = vld [vmem:[%s10514_s12 + $0x460] sm:$0xff]  ;;  %v3821_v60 = vmax.f32 %v3788_v43, %v7185_v26  ;;  %v7201_v21 = vld [vmem:[%s10514_s12 + $0x168] sm:$0xff]  ;;  %v4578_v5 = vmax.f32 %v4545_v17, %v7551_v30 }
 0x45c   : > { %7041 = vst [vmem:[%s10797_s16 + $0x80] sm:$0xff] %v7016_v40  ;;  %v4280_v4 = vmax.f32 %v4247_v8, %v7406_v59  ;;  %v7438_v46 = vld [vmem:[%s10514_s12 + $0x8d0] sm:$0xff]  ;;  %v4444_v47 = vmax.f32 %v4411_v62, %v7485_v7  ;;  %v4152_v16 = vmax.f32 %v4119_v53, %v7346_v63  ;;  %v7217_v35 = vld [vmem:[%s10514_s12 + $0x1e8] sm:$0xff]  ;;  %v7567_v42 = vld [vmem:[%s10514_s12 + $0xcd8] sm:$0xff]  ;;  %v4051_v48 = vmax.f32 %v4018_v37, %v7296_v31 }
 0x45d   : > { %v7362_v18 = vld [vmem:[%s10514_s12 + $0x670] sm:$0xff]  ;;  %v3854_v23 = vmax.f32 %v3821_v60, %v7201_v21  ;;  %v4640_v54 = vmax.f32 %v4607_v13, %v7579_v38  ;;  %v7533_v44 = vld [vmem:[%s10514_s12 + $0xbc8] sm:$0xff]  ;;  %v7328_v51 = vld [vmem:[%s10514_s12 + $0x560] sm:$0xff]  ;;  %v4611_v2 = vmax.f32 %v4578_v5, %v7567_v42 }
 0x45e   : > { %v4313_v24 = vmax.f32 %v4280_v4, %v7422_v14  ;;  %v7454_v25 = vld [vmem:[%s10514_s12 + $0x950] sm:$0xff]  ;;  %v4477_v36 = vmax.f32 %v4444_v47, %v7501_v33  ;;  %v4185_v58 = vmax.f32 %v4152_v16, %v7362_v18  ;;  %v7233_v49 = vld [vmem:[%s10514_s12 + $0x268] sm:$0xff]  ;;  %v7583_v22 = vld [vmem:[%s10514_s12 + $0xd58] sm:$0xff]  ;;  %v4084_v32 = vmax.f32 %v4051_v48, %v7312_v6 }
 0x45f   : > { %v7378_v28 = vld [vmem:[%s10514_s12 + $0x6f0] sm:$0xff]  ;;  %v3887_v52 = vmax.f32 %v3854_v23, %v7217_v35  ;;  %v7549_v9 = vld [vmem:[%s10514_s12 + $0xc48] sm:$0xff]  ;;  %v7344_v29 = vld [vmem:[%s10514_s12 + $0x5e0] sm:$0xff]  ;;  %v4644_v43 = vmax.f32 %v4611_v2, %v7583_v22 }
 0x460   : > { %v4346_v34 = vmax.f32 %v4313_v24, %v7438_v46  ;;  %v4510_v19 = vmax.f32 %v4477_v36, %v7517_v39  ;;  %v7470_v40 = vld [vmem:[%s10514_s12 + $0x9d0] sm:$0xff]  ;;  %v4218_v10 = vmax.f32 %v4185_v58, %v7378_v28  ;;  %v7249_v55 = vld [vmem:[%s10514_s12 + $0x2e8] sm:$0xff]  ;;  %v4117_v33 = vmax.f32 %v4084_v32, %v7328_v51  ;;  %v7360_v46 = vld [vmem:[%s10514_s12 + $0x660] sm:$0xff] }
 0x461   : > { %v7394_v41 = vld [vmem:[%s10514_s12 + $0x770] sm:$0xff]  ;;  %v3920_v45 = vmax.f32 %v3887_v52, %v7233_v49  ;;  %v7265_v4 = vld [vmem:[%s10514_s12 + $0x368] sm:$0xff]  ;;  %v3790_v11 = vld [vmem:[%s10514_s12 + $0x78] sm:$0xff] }
 0x462   : > { %v6973_v12 = vpop.permute.xlu0 %6972  ;;  %v4379_v61 = vmax.f32 %v4346_v34, %v7454_v25  ;;  %v7486_v50 = vld [vmem:[%s10514_s12 + $0xa50] sm:$0xff]  ;;  %v4251_v59 = vmax.f32 %v4218_v10, %v7394_v41  ;;  %v4543_v57 = vmax.f32 %v4510_v19, %v7533_v44  ;;  %v4150_v17 = vmax.f32 %v4117_v33, %v7344_v29  ;;  %v7281_v47 = vld [vmem:[%s10514_s12 + $0x3e8] sm:$0xff]  ;;  %v7203_v3 = vld [vmem:[%s10514_s12 + $0x178] sm:$0xff] }
 0x463   : > { %v7014_v20 = vsel %vm6177_vm0, %v4639_v56, %v6973_v12  ;;  %7038 = vst.msk [vmem:[%s10797_s16 + $0x68] sm:$0xff] %vm7025_vm1, %v6973_v12  ;;  %v7410_v15 = vld [vmem:[%s10514_s12 + $0x7f0] sm:$0xff]  ;;  %v3953_v53 = vmax.f32 %v3920_v45, %v7249_v55  ;;  %v7187_v12 = vld [vmem:[%s10514_s12 + $0xf8] sm:$0xff]  ;;  %v7376_v24 = vld [vmem:[%s10514_s12 + $0x6e0] sm:$0xff] }
 0x464   : > { %7037 = vst [vmem:[%s10797_s16 + $0x60] sm:$0xff] %v7014_v20  ;;  %v4412_v27 = vmax.f32 %v4379_v61, %v7470_v40  ;;  %v7502_v7 = vld [vmem:[%s10514_s12 + $0xad0] sm:$0xff]  ;;  %v4284_v1 = vmax.f32 %v4251_v59, %v7410_v15  ;;  %v3823_v18 = vmax.f32 %v3790_v11, %v7187_v12  ;;  %v4576_v20 = vmax.f32 %v4543_v57, %v7549_v9  ;;  %v7219_v16 = vld [vmem:[%s10514_s12 + $0x1f8] sm:$0xff]  ;;  %v7565_v0 = vld [vmem:[%s10514_s12 + $0xcc8] sm:$0xff] }
 0x465   : > { %v7426_v8 = vld [vmem:[%s10514_s12 + $0x870] sm:$0xff]  ;;  %v3986_v25 = vmax.f32 %v3953_v53, %v7265_v4  ;;  %v4183_v28 = vmax.f32 %v4150_v17, %v7360_v46  ;;  %v7297_v31 = vld [vmem:[%s10514_s12 + $0x468] sm:$0xff]  ;;  %v7392_v58 = vld [vmem:[%s10514_s12 + $0x760] sm:$0xff] }
 0x466   : > { %v4445_v14 = vmax.f32 %v4412_v27, %v7486_v50  ;;  %v7518_v63 = vld [vmem:[%s10514_s12 + $0xb50] sm:$0xff]  ;;  %v4317_v38 = vmax.f32 %v4284_v1, %v7426_v8  ;;  %v3856_v60 = vmax.f32 %v3823_v18, %v7203_v3  ;;  %v7313_v19 = vld [vmem:[%s10514_s12 + $0x4e8] sm:$0xff]  ;;  %v7235_v41 = vld [vmem:[%s10514_s12 + $0x278] sm:$0xff]  ;;  %v4609_v23 = vmax.f32 %v4576_v20, %v7565_v0 }
 0x467   : > { %v7442_v30 = vld [vmem:[%s10514_s12 + $0x8f0] sm:$0xff]  ;;  %v4019_v37 = vmax.f32 %v3986_v25, %v7281_v47  ;;  %v4216_v5 = vmax.f32 %v4183_v28, %v7376_v24  ;;  %v7408_v42 = vld [vmem:[%s10514_s12 + $0x7e0] sm:$0xff]  ;;  %v7581_v10 = vld [vmem:[%s10514_s12 + $0xd48] sm:$0xff] }
 0x468   : > { %v4478_v13 = vmax.f32 %v4445_v14, %v7502_v7  ;;  %v7458_v39 = vld [vmem:[%s10514_s12 + $0x970] sm:$0xff]  ;;  %v4350_v36 = vmax.f32 %v4317_v38, %v7442_v30  ;;  %v3889_v40 = vmax.f32 %v3856_v60, %v7219_v16  ;;  %v7329_v15 = vld [vmem:[%s10514_s12 + $0x568] sm:$0xff]  ;;  %v7251_v51 = vld [vmem:[%s10514_s12 + $0x2f8] sm:$0xff]  ;;  %v4642_v45 = vmax.f32 %v4609_v23, %v7581_v10 }
 0x469   : > { %v7534_v21 = vld [vmem:[%s10514_s12 + $0xbd0] sm:$0xff]  ;;  %v4052_v44 = vmax.f32 %v4019_v37, %v7297_v31  ;;  %v4249_v50 = vmax.f32 %v4216_v5, %v7392_v58  ;;  %v7424_v9 = vld [vmem:[%s10514_s12 + $0x860] sm:$0xff]  ;;  %v7267_v2 = vld [vmem:[%s10514_s12 + $0x378] sm:$0xff] }
 0x46a   : > { %v6975_v56 = vpop.permute.xlu1 %6974  ;;  %v4511_v26 = vmax.f32 %v4478_v13, %v7518_v63  ;;  %v7474_v34 = vld [vmem:[%s10514_s12 + $0x9f0] sm:$0xff]  ;;  %v4383_v35 = vmax.f32 %v4350_v36, %v7458_v39  ;;  %v3922_v59 = vmax.f32 %v3889_v40, %v7235_v41  ;;  %v7440_v7 = vld [vmem:[%s10514_s12 + $0x8e0] sm:$0xff]  ;;  %v7361_v1 = vld [vmem:[%s10514_s12 + $0x668] sm:$0xff] }
 0x46b   : > { %v7015_v62 = vsel %vm6177_vm0, %v4640_v54, %v6975_v56  ;;  %7040 = vst.msk [vmem:[%s10797_s16 + $0x78] sm:$0xff] %vm7025_vm1, %v6975_v56  ;;  %v7490_v54 = vld [vmem:[%s10514_s12 + $0xa70] sm:$0xff]  ;;  %v4085_v27 = vmax.f32 %v4052_v44, %v7313_v19  ;;  %v4282_v55 = vmax.f32 %v4249_v50, %v7408_v42  ;;  %v7345_v56 = vld [vmem:[%s10514_s12 + $0x5e8] sm:$0xff]  ;;  %v7283_v30 = vld [vmem:[%s10514_s12 + $0x3f8] sm:$0xff] }
 0x46c   : > { %7039 = vst [vmem:[%s10797_s16 + $0x70] sm:$0xff] %v7015_v62  ;;  %v4544_v48 = vmax.f32 %v4511_v26, %v7534_v21  ;;  %v4416_v49 = vmax.f32 %v4383_v35, %v7474_v34  ;;  %v7550_v52 = vld [vmem:[%s10514_s12 + $0xc50] sm:$0xff]  ;;  %v3955_v29 = vmax.f32 %v3922_v59, %v7251_v51  ;;  %v7456_v46 = vld [vmem:[%s10514_s12 + $0x960] sm:$0xff]  ;;  %v7377_v38 = vld [vmem:[%s10514_s12 + $0x6e8] sm:$0xff] }
 0x46d   : > { %v7506_v22 = vld [vmem:[%s10514_s12 + $0xaf0] sm:$0xff]  ;;  %v4118_v8 = vmax.f32 %v4085_v27, %v7329_v15  ;;  %v4315_v63 = vmax.f32 %v4282_v55, %v7424_v9  ;;  %v7299_v17 = vld [vmem:[%s10514_s12 + $0x478] sm:$0xff]  ;;  %v7472_v18 = vld [vmem:[%s10514_s12 + $0x9e0] sm:$0xff] }
 0x46e   : > { %v4449_v32 = vmax.f32 %v4416_v49, %v7490_v54  ;;  %v7522_v57 = vld [vmem:[%s10514_s12 + $0xb70] sm:$0xff]  ;;  %v4577_v62 = vmax.f32 %v4544_v48, %v7550_v52  ;;  %v3988_v11 = vmax.f32 %v3955_v29, %v7267_v2  ;;  %v7393_v16 = vld [vmem:[%s10514_s12 + $0x768] sm:$0xff]  ;;  %v7315_v0 = vld [vmem:[%s10514_s12 + $0x4f8] sm:$0xff] }
 0x46f   : > { %v7566_v33 = vld [vmem:[%s10514_s12 + $0xcd0] sm:$0xff]  ;;  %v4151_v53 = vmax.f32 %v4118_v8, %v7345_v56  ;;  %v4348_v13 = vmax.f32 %v4315_v63, %v7440_v7  ;;  %v7488_v28 = vld [vmem:[%s10514_s12 + $0xa60] sm:$0xff]  ;;  %v7409_v34 = vld [vmem:[%s10514_s12 + $0x7e8] sm:$0xff] }
 0x470   : > { %v4482_v14 = vmax.f32 %v4449_v32, %v7506_v22  ;;  %v7538_v4 = vld [vmem:[%s10514_s12 + $0xbf0] sm:$0xff]  ;;  %v4610_v39 = vmax.f32 %v4577_v62, %v7566_v33  ;;  %v7331_v58 = vld [vmem:[%s10514_s12 + $0x578] sm:$0xff]  ;;  %v7504_v37 = vld [vmem:[%s10514_s12 + $0xae0] sm:$0xff] }
 0x471   : > { %v4184_v3 = vmax.f32 %v4151_v53, %v7361_v1  ;;  %v4381_v25 = vmax.f32 %v4348_v13, %v7456_v46  ;;  %v7582_v26 = vld [vmem:[%s10514_s12 + $0xd50] sm:$0xff]  ;;  %v7347_v23 = vld [vmem:[%s10514_s12 + $0x5f8] sm:$0xff]  ;;  %v7520_v42 = vld [vmem:[%s10514_s12 + $0xb60] sm:$0xff] }
 0x472   : > { %v6983_v6 = vpop.permute.xlu2 %6982  ;;  %v4515_v12 = vmax.f32 %v4482_v14, %v7522_v57  ;;  %v7554_v36 = vld [vmem:[%s10514_s12 + $0xc70] sm:$0xff]  ;;  %v4643_v19 = vmax.f32 %v4610_v39, %v7582_v26  ;;  %v7441_v48 = vld [vmem:[%s10514_s12 + $0x8e8] sm:$0xff]  ;;  %v7363_v49 = vld [vmem:[%s10514_s12 + $0x678] sm:$0xff] }
 0x473   : > { %v7019_v61 = vsel %vm6177_vm0, %v4644_v43, %v6983_v6  ;;  %7048 = vst.msk [vmem:[%s10797_s16 + $0xb8] sm:$0xff] %vm7025_vm1, %v6983_v6  ;;  %v4021_v43 = vmax.f32 %v3988_v11, %v7283_v30  ;;  %v4217_v31 = vmax.f32 %v4184_v3, %v7377_v38  ;;  %v4414_v21 = vmax.f32 %v4381_v25, %v7472_v18  ;;  %v7425_v6 = vld [vmem:[%s10514_s12 + $0x868] sm:$0xff]  ;;  %v7570_v54 = vld [vmem:[%s10514_s12 + $0xcf0] sm:$0xff]  ;;  %v7536_v15 = vld [vmem:[%s10514_s12 + $0xbe0] sm:$0xff] }
 0x474   : > { %7047 = vst [vmem:[%s10797_s16 + $0xb0] sm:$0xff] %v7019_v61  ;;  %v4548_v24 = vmax.f32 %v4515_v12, %v7538_v4  ;;  %v7457_v59 = vld [vmem:[%s10514_s12 + $0x968] sm:$0xff]  ;;  %v7379_v32 = vld [vmem:[%s10514_s12 + $0x6f8] sm:$0xff]  ;;  %v7586_v55 = vld [vmem:[%s10514_s12 + $0xd70] sm:$0xff] }
 0x475   : > { %v4054_v60 = vmax.f32 %v4021_v43, %v7299_v17  ;;  %v4250_v35 = vmax.f32 %v4217_v31, %v7393_v16  ;;  %v4447_v41 = vmax.f32 %v4414_v21, %v7488_v28  ;;  %v7552_v56 = vld [vmem:[%s10514_s12 + $0xc60] sm:$0xff]  ;;  %v7473_v8 = vld [vmem:[%s10514_s12 + $0x9e8] sm:$0xff]  ;;  %v7395_v29 = vld [vmem:[%s10514_s12 + $0x778] sm:$0xff] }
 0x476   : > { %v4581_v40 = vmax.f32 %v4548_v24, %v7554_v36  ;;  %v7489_v1 = vld [vmem:[%s10514_s12 + $0xa68] sm:$0xff]  ;;  %v7411_v30 = vld [vmem:[%s10514_s12 + $0x7f8] sm:$0xff]  ;;  %v7568_v33 = vld [vmem:[%s10514_s12 + $0xce0] sm:$0xff] }
 0x477   : > { %v4087_v5 = vmax.f32 %v4054_v60, %v7315_v0  ;;  %v4283_v44 = vmax.f32 %v4250_v35, %v7409_v34  ;;  %v4480_v10 = vmax.f32 %v4447_v41, %v7504_v37  ;;  %v7505_v53 = vld [vmem:[%s10514_s12 + $0xae8] sm:$0xff]  ;;  %v7427_v11 = vld [vmem:[%s10514_s12 + $0x878] sm:$0xff]  ;;  %v7584_v43 = vld [vmem:[%s10514_s12 + $0xd60] sm:$0xff] }
 0x478   : > { %v4614_v9 = vmax.f32 %v4581_v40, %v7570_v54  ;;  %v7521_v18 = vld [vmem:[%s10514_s12 + $0xb68] sm:$0xff]  ;;  %v7443_v3 = vld [vmem:[%s10514_s12 + $0x8f8] sm:$0xff] }
 0x479   : > { %v4120_v61 = vmax.f32 %v4087_v5, %v7331_v58  ;;  %v4316_v51 = vmax.f32 %v4283_v44, %v7425_v6  ;;  %v4513_v27 = vmax.f32 %v4480_v10, %v7520_v42  ;;  %v7537_v24 = vld [vmem:[%s10514_s12 + $0xbe8] sm:$0xff]  ;;  %v7459_v25 = vld [vmem:[%s10514_s12 + $0x978] sm:$0xff] }
 0x47a   : > { %v6979_v47 = vpop.permute.xlu0 %6978  ;;  %v4647_v14 = vmax.f32 %v4614_v9, %v7586_v55  ;;  %v7553_v36 = vld [vmem:[%s10514_s12 + $0xc68] sm:$0xff]  ;;  %v7475_v28 = vld [vmem:[%s10514_s12 + $0x9f8] sm:$0xff] }
 0x47b   : > { %v7017_v20 = vsel %vm6177_vm0, %v4642_v45, %v6979_v47  ;;  %7044 = vst.msk [vmem:[%s10797_s16 + $0x98] sm:$0xff] %vm7025_vm1, %v6979_v47  ;;  %v4153_v52 = vmax.f32 %v4120_v61, %v7347_v23  ;;  %v4349_v2 = vmax.f32 %v4316_v51, %v7441_v48  ;;  %v4546_v7 = vmax.f32 %v4513_v27, %v7536_v15  ;;  %v7569_v21 = vld [vmem:[%s10514_s12 + $0xce8] sm:$0xff]  ;;  %v7491_v34 = vld [vmem:[%s10514_s12 + $0xa78] sm:$0xff] }
 0x47c   : > { %7043 = vst [vmem:[%s10797_s16 + $0x90] sm:$0xff] %v7017_v20  ;;  %v7585_v41 = vld [vmem:[%s10514_s12 + $0xd68] sm:$0xff]  ;;  %v7523_v23 = vld [vmem:[%s10514_s12 + $0xb78] sm:$0xff] }
 0x47d   : > { %v4186_v57 = vmax.f32 %v4153_v52, %v7363_v49  ;;  %v4382_v45 = vmax.f32 %v4349_v2, %v7457_v59  ;;  %v4579_v63 = vmax.f32 %v4546_v7, %v7552_v56  ;;  %v7539_v61 = vld [vmem:[%s10514_s12 + $0xbf8] sm:$0xff] }
 0x47e   : > { %v7571_v51 = vld [vmem:[%s10514_s12 + $0xcf8] sm:$0xff] }
 0x47f   : > { %v4219_v62 = vmax.f32 %v4186_v57, %v7379_v32  ;;  %v4415_v4 = vmax.f32 %v4382_v45, %v7473_v8  ;;  %v4612_v47 = vmax.f32 %v4579_v63, %v7568_v33 }
 0x481   : > { %v4252_v46 = vmax.f32 %v4219_v62, %v7395_v29  ;;  %v4448_v13 = vmax.f32 %v4415_v4, %v7489_v1  ;;  %v4645_v26 = vmax.f32 %v4612_v47, %v7584_v43 }
 0x482   : > { %v6981_v50 = vpop.permute.xlu1 %6980 }
 0x483   : > { %v7018_v22 = vsel %vm6177_vm0, %v4643_v19, %v6981_v50  ;;  %7046 = vst.msk [vmem:[%s10797_s16 + $0xa8] sm:$0xff] %vm7025_vm1, %v6981_v50  ;;  %v4285_v38 = vmax.f32 %v4252_v46, %v7411_v30  ;;  %v4481_v20 = vmax.f32 %v4448_v13, %v7505_v53  ;;  %v7507_v19 = vld [vmem:[%s10514_s12 + $0xaf8] sm:$0xff] }
 0x484   : > { %7045 = vst [vmem:[%s10797_s16 + $0xa0] sm:$0xff] %v7018_v22  ;;  %v7555_v50 = vld [vmem:[%s10514_s12 + $0xc78] sm:$0xff] }
 0x485   : > { %v4318_v39 = vmax.f32 %v4285_v38, %v7427_v11  ;;  %v4514_v16 = vmax.f32 %v4481_v20, %v7521_v18  ;;  %v7587_v22 = vld [vmem:[%s10514_s12 + $0xd78] sm:$0xff] }
 0x487   : > { %v4351_v0 = vmax.f32 %v4318_v39, %v7443_v3  ;;  %v4547_v31 = vmax.f32 %v4514_v16, %v7537_v24 }
 0x489   : > { %v4384_v60 = vmax.f32 %v4351_v0, %v7459_v25  ;;  %v4580_v37 = vmax.f32 %v4547_v31, %v7553_v36 }
 0x48a   : > { %v6989_v12 = vpop.permute.xlu2 %6988 }
 0x48b   : > { %v7022_v17 = vsel %vm6177_vm0, %v4647_v14, %v6989_v12  ;;  %7054 = vst.msk [vmem:[%s10797_s16 + $0xe8] sm:$0xff] %vm7025_vm1, %v6989_v12  ;;  %v4417_v35 = vmax.f32 %v4384_v60, %v7475_v28  ;;  %v4613_v40 = vmax.f32 %v4580_v37, %v7569_v21 }
 0x48c   : > { %7053 = vst [vmem:[%s10797_s16 + $0xe0] sm:$0xff] %v7022_v17 }
 0x48d   : > { %v4450_v6 = vmax.f32 %v4417_v35, %v7491_v34  ;;  %v4646_v42 = vmax.f32 %v4613_v40, %v7585_v41 }
 0x48f   : > { %v4483_v54 = vmax.f32 %v4450_v6, %v7507_v19 }
 0x491   : > { %v4516_v44 = vmax.f32 %v4483_v54, %v7523_v23 }
 0x492   : > { %v6985_v58 = vpop.permute.xlu0 %6984 }
 0x493   : > { %v7020_v5 = vsel %vm6177_vm0, %v4645_v26, %v6985_v58  ;;  %7050 = vst.msk [vmem:[%s10797_s16 + $0xc8] sm:$0xff] %vm7025_vm1, %v6985_v58  ;;  %v4549_v49 = vmax.f32 %v4516_v44, %v7539_v61 }
 0x494   : > { %7049 = vst [vmem:[%s10797_s16 + $0xc0] sm:$0xff] %v7020_v5 }
 0x495   : > { %v4582_v15 = vmax.f32 %v4549_v49, %v7555_v50 }
 0x497   : > { %v4615_v52 = vmax.f32 %v4582_v15, %v7571_v51 }
 0x499   : > { %v4648_v9 = vmax.f32 %v4615_v52, %v7587_v22 }
 0x49a   : > { %v6987_v10 = vpop.permute.xlu1 %6986 }
 0x49b   : > { %v7021_v48 = vsel %vm6177_vm0, %v4646_v42, %v6987_v10  ;;  %7052 = vst.msk [vmem:[%s10797_s16 + $0xd8] sm:$0xff] %vm7025_vm1, %v6987_v10 }
 0x49c   : > { %7051 = vst [vmem:[%s10797_s16 + $0xd0] sm:$0xff] %v7021_v48 }
 0x4aa   : > { %v6991_v27 = vpop.permute.xlu0 %6990 }
 0x4ab   : > { %v7023_v59 = vsel %vm6177_vm0, %v4648_v9, %v6991_v27  ;;  %7056 = vst.msk [vmem:[%s10797_s16 + $0xf8] sm:$0xff] %vm7025_vm1, %v6991_v27 }
 0x4ac   : > { %7055 = vst [vmem:[%s10797_s16 + $0xf0] sm:$0xff] %v7023_v59 }
 0x4ad   : > { %8797 = shalt.err (!%p8794_p7)
}
 0x4ae   : > { %s8835_s10 = smov 256   ;;  %s8836_s16 = smov 16  }
 0x4af   : > { %8724 = dma.vmem_to_hbm [thread:$0]  (%p8906_p6), %s7072_s6, 4096, %s7074_s7, %s7058_s9, %s8835_s10, %s8835_s10, %s8836_s16  }
 0x4b0 PF: > { %p8730_p9 = scmp.ge.s32.totalorder %s8832_s21, 2  ;;  %s7088_s23 = sand.u32 1, %s8820_s18  }
 0x4b1   : > { %s7089_s25 = scalar_lea.sflag [#allocation4], %s7088_s23 }
 0x4b2   : > { %p8727_p10 = pnand %p8730_p9, %p8910_p8 }
 0x4b4   : > { %p8728_p11 = pneg %p8727_p10 }
 0x4b6   : > { %8815 = dma.done.wait (%p8728_p11), %s7089_s25, 4096  }
 0x4b7   : > { %8817 = vsyncadd (%p8728_p11), %s7089_s25, 4294963200  ;;  %p15_p12 = scmp.ge.s32.totalorder %s8892_s24, 6   ;;  %s11154_s18 = smov %s8824_s19 }
 0x4b8   : > { %s11155_s19 = smov %s8828_s20  ;;  %s11156_s20 = smov %s8904_s27 }
 0x4b9   : > { %s11157_s21 = smov %s8892_s24  ;;  %17 = sbr.rel (!%p15_p12) target bundleno = 3 (0x3), region = 167 }
 0x4be   :  { %7095 = vsyncpa [#allocation4], 1 }
 0x4bf   :  { %7097 = vsyncpa [#allocation4 + $0x1], 1 }

</bundles_post_ra>
